<compile_context>
chip_gen: v7x
topology: tpu7x:2x2x1
jax: 0.10.0
libtpu: 0.0.40
codegen_flags: <defaults>
</compile_context>

<pallas_src>
import jax
import jax.numpy as jnp
from jax import lax
from jax.experimental import pallas as pl
from jax.experimental.pallas import tpu as pltpu


_NUM_GROUPS = 32   # hard-coded in the PyTorch module (nn.GroupNorm(32, C))
_EPS = 1e-5        # PyTorch GroupNorm default


def _build_shift_masks(h2, w2):
    """Per-tap flat shifts and boundary masks for a 3x3 'same' conv.

    For tap (kh, kw), reading x[h+kh-1, w+kw-1] on the flattened spatial axis is
    a flat shift by s = (kh-1)*w2 + (kw-1); positions whose neighbour falls
    outside the image are zeroed by the mask (this also kills the wrap-around
    of the circular roll).
    """
    hw = h2 * w2
    p = jnp.arange(hw)
    h = p // w2
    w = p % w2
    shifts = []
    masks = []
    for kh in range(3):
        for kw in range(3):
            dy, dx = kh - 1, kw - 1
            shifts.append(dy * w2 + dx)
            valid = (h + dy >= 0) & (h + dy < h2) & (w + dx >= 0) & (w + dx < w2)
            masks.append(valid.astype(jnp.float32))
    return tuple(shifts), jnp.stack(masks).reshape(9, 1, hw)


def down_forward(x, params):
    """Down(channels) forward: MaxPool2d(2) -> DoubleConv(channels, channels)."""
    N, C, H, W = x.shape
    assert H % 2 == 0 and W % 2 == 0
    assert C % _NUM_GROUPS == 0, "GroupNorm(32, C) requires C % 32 == 0"
    H2, W2 = H // 2, W // 2
    HW = H2 * W2
    cpg = C // _NUM_GROUPS

    # --- 2x2 / stride-2 max pool, kept in NCHW. A single fused memory-bound
    # XLA pass over x (no transposes).
    # TODO(synk): fold the 2x2 max-pool into the Pallas kernel; it needs a
    # stride-2 lane de-interleave which is left to XLA for now.
    pooled = x.reshape(N, C, H2, 2, W2, 2).max(axis=(3, 5))
    # Free reshape of a contiguous NCHW tensor: spatial -> lane axis.
    x_flat = pooled.reshape(N, C, HW)

    # --- parameter re-packing (tiny tensors only; activations never move).
    w1x1 = params["conv1x1_w"].reshape(C, C).astype(jnp.float32)
    b1x1 = params["conv1x1_b"].reshape(C, 1).astype(jnp.float32)
    wc1 = jnp.transpose(params["conv1_w"], (2, 3, 0, 1)).reshape(9, C, C).astype(jnp.float32)
    bc1 = params["conv1_b"].reshape(C, 1).astype(jnp.float32)
    g1 = params["gn1_w"].reshape(C, 1).astype(jnp.float32)
    be1 = params["gn1_b"].reshape(C, 1).astype(jnp.float32)
    wc2 = jnp.transpose(params["conv2_w"], (2, 3, 0, 1)).reshape(9, C, C).astype(jnp.float32)
    bc2 = params["conv2_b"].reshape(C, 1).astype(jnp.float32)
    g2 = params["gn2_w"].reshape(C, 1).astype(jnp.float32)
    be2 = params["gn2_b"].reshape(C, 1).astype(jnp.float32)

    # Group-averaging matrix: (B @ t)[c] = mean over channels in c's group.
    gid = jnp.arange(C) // cpg
    bmat = (gid[:, None] == gid[None, :]).astype(jnp.float32) / float(cpg)

    shifts, masks = _build_shift_masks(H2, W2)

    def kernel(x_ref, m_ref, w1x1_ref, b1x1_ref, wc1_ref, bc1_ref, g1_ref,
               be1_ref, wc2_ref, bc2_ref, g2_ref, be2_ref, bmat_ref, o_ref):
        xin = x_ref[0]                                    # (C, HW), f32

        def conv3x3(t, w9_ref, b_ref):
            # 3x3 'same' conv = 9 lane-rotated + masked (C, C) x (C, HW) matmuls.
            acc = jnp.zeros((C, HW), jnp.float32)
            for tap in range(9):
                s = shifts[tap]
                if s == 0:
                    g = t
                else:
                    # pltpu.roll follows jnp.roll semantics; the mask zeroes the
                    # positions that wrapped around / fell outside the image.
                    g = pltpu.roll(t, (-s) % HW, 1) * m_ref[tap]
                acc = acc + jnp.dot(w9_ref[tap], g,
                                    preferred_element_type=jnp.float32)
            return acc + b_ref[...]

        def gn_relu(t, gamma_ref, beta_ref):
            # GroupNorm(32 groups) + ReLU, biased variance, eps=1e-5.
            gmean = jnp.mean(jnp.dot(bmat_ref[...], t,
                                     preferred_element_type=jnp.float32),
                             axis=1, keepdims=True)        # (C, 1)
            gmsq = jnp.mean(jnp.dot(bmat_ref[...], t * t,
                                    preferred_element_type=jnp.float32),
                            axis=1, keepdims=True)         # (C, 1)
            gvar = gmsq - gmean * gmean
            y = (t - gmean) * lax.rsqrt(gvar + _EPS)
            y = y * gamma_ref[...] + beta_ref[...]
            return jnp.maximum(y, 0.0)

        residual = jnp.dot(w1x1_ref[...], xin,
                           preferred_element_type=jnp.float32) + b1x1_ref[...]
        t1 = gn_relu(conv3x3(xin, wc1_ref, bc1_ref), g1_ref, be1_ref)
        t2 = gn_relu(conv3x3(t1, wc2_ref, bc2_ref), g2_ref, be2_ref)
        o_ref[0] = (t2 + residual).astype(o_ref.dtype)

    def full(shape):
        return pl.BlockSpec(shape, lambda n: (0,) * len(shape))

    out_flat = pl.pallas_call(
        kernel,
        out_shape=jax.ShapeDtypeStruct((N, C, HW), jnp.float32),
        grid_spec=pltpu.PrefetchScalarGridSpec(
            num_scalar_prefetch=0,
            grid=(N,),
            in_specs=[
                pl.BlockSpec((1, C, HW), lambda n: (n, 0, 0)),  # pooled image
                full((9, 1, HW)),                               # tap masks
                full((C, C)), full((C, 1)),                     # conv1x1
                full((9, C, C)), full((C, 1)),                  # conv1
                full((C, 1)), full((C, 1)),                     # gn1 gamma/beta
                full((9, C, C)), full((C, 1)),                  # conv2
                full((C, 1)), full((C, 1)),                     # gn2 gamma/beta
                full((C, C)),                                   # group matrix B
            ],
            out_specs=pl.BlockSpec((1, C, HW), lambda n: (n, 0, 0)),
        ),
        compiler_params=pltpu.CompilerParams(
            dimension_semantics=("parallel",),          # batch shards across TCs
            vmem_limit_bytes=32 * 1024 * 1024,          # safe on v5e/v6e/v7x
        ),
    )(x_flat, masks, w1x1, b1x1, wc1, bc1, g1, be1, wc2, bc2, g2, be2, bmat)

    return out_flat.reshape(N, C, H2, W2)


def _reference(x, params):
    """Plain-JAX reference of Down.forward (matches the PyTorch module)."""
    N, C, H, W = x.shape
    pooled = x.reshape(N, C, H // 2, 2, W // 2, 2).max(axis=(3, 5))

    def conv(v, w, b, pad):
        y = lax.conv_general_dilated(
            v, w, window_strides=(1, 1), padding=[(pad, pad), (pad, pad)],
            dimension_numbers=("NCHW", "OIHW", "NCHW"),
            precision=lax.Precision.HIGHEST)
        return y + b[None, :, None, None]

    def gn(v, gamma, beta):
        n, c, h, w = v.shape
        vg = v.reshape(n, _NUM_GROUPS, (c // _NUM_GROUPS) * h * w)
        mu = vg.mean(axis=-1, keepdims=True)
        var = vg.var(axis=-1, keepdims=True)
        vn = ((vg - mu) / jnp.sqrt(var + _EPS)).reshape(n, c, h, w)
        return vn * gamma[None, :, None, None] + beta[None, :, None, None]

    res = conv(pooled, params["conv1x1_w"], params["conv1x1_b"], 0)
    o = jax.nn.relu(gn(conv(pooled, params["conv1_w"], params["conv1_b"], 1),
                       params["gn1_w"], params["gn1_b"]))
    o = jax.nn.relu(gn(conv(o, params["conv2_w"], params["conv2_b"], 1),
                       params["gn2_w"], params["gn2_b"]))
    return o + res


if __name__ == "__main__":
    key = jax.random.PRNGKey(0)
    keys = jax.random.split(key, 11)

    # Smallest shapes consistent with the module: GroupNorm(32, C) needs
    # C % 32 == 0, so channels=32; spatial 32x32 pools to 16x16 (HW=256 lanes).
    N, C, H, W = 2, 32, 32, 32

    x = jax.random.normal(keys[0], (N, C, H, W), dtype=jnp.float32)
    k1 = 1.0 / (C ** 0.5)
    k9 = 1.0 / ((9 * C) ** 0.5)
    params = {
        "conv1x1_w": jax.random.uniform(keys[1], (C, C, 1, 1), jnp.float32, -k1, k1),
        "conv1x1_b": jax.random.uniform(keys[2], (C,), jnp.float32, -k1, k1),
        "conv1_w": jax.random.uniform(keys[3], (C, C, 3, 3), jnp.float32, -k9, k9),
        "conv1_b": jax.random.uniform(keys[4], (C,), jnp.float32, -k9, k9),
        "gn1_w": 1.0 + 0.1 * jax.random.normal(keys[5], (C,), jnp.float32),
        "gn1_b": 0.1 * jax.random.normal(keys[6], (C,), jnp.float32),
        "conv2_w": jax.random.uniform(keys[7], (C, C, 3, 3), jnp.float32, -k9, k9),
        "conv2_b": jax.random.uniform(keys[8], (C,), jnp.float32, -k9, k9),
        "gn2_w": 1.0 + 0.1 * jax.random.normal(keys[9], (C,), jnp.float32),
        "gn2_b": 0.1 * jax.random.normal(keys[10], (C,), jnp.float32),
    }

    y = down_forward(x, params)
    y = jax.block_until_ready(y)

    ref = _reference(x, params)
    assert y.shape == (N, C, H // 2, W // 2)
    err = float(jnp.max(jnp.abs(y - ref)))
    assert jnp.allclose(y, ref, atol=5e-3, rtol=5e-3), f"max abs err = {err}"

    print("KERNEL_OK")
</pallas_src>

<mosaic_0001>
module attributes {stable_mosaic.version = 11 : i64} {
  func.func @kernel(%arg0: i32, %arg1: memref<1x32x256xf32, #tpu.memory_space<vmem>>, %arg2: memref<9x1x256xf32, #tpu.memory_space<vmem>>, %arg3: memref<32x32xf32, #tpu.memory_space<vmem>>, %arg4: memref<32x1xf32, #tpu.memory_space<vmem>>, %arg5: memref<9x32x32xf32, #tpu.memory_space<vmem>>, %arg6: memref<32x1xf32, #tpu.memory_space<vmem>>, %arg7: memref<32x1xf32, #tpu.memory_space<vmem>>, %arg8: memref<32x1xf32, #tpu.memory_space<vmem>>, %arg9: memref<9x32x32xf32, #tpu.memory_space<vmem>>, %arg10: memref<32x1xf32, #tpu.memory_space<vmem>>, %arg11: memref<32x1xf32, #tpu.memory_space<vmem>>, %arg12: memref<32x1xf32, #tpu.memory_space<vmem>>, %arg13: memref<32x32xf32, #tpu.memory_space<vmem>>, %arg14: memref<1x32x256xf32, #tpu.memory_space<vmem>>) attributes {dimension_semantics = [#tpu.dimension_semantics<parallel>], iteration_bounds = array<i64: 2>, scalar_prefetch = 0 : i64, scratch_operands = 0 : i64, tpu.core_type = #tpu.core_type<tc>, window_params = [{transform_indices = @transform_0, window_bounds = array<i64: 1, 32, 256>}, {pipeline_mode = #tpu.pipeline_mode<synchronous>, transform_indices = @transform_1, window_bounds = array<i64: 9, 1, 256>}, {pipeline_mode = #tpu.pipeline_mode<synchronous>, transform_indices = @transform_2, window_bounds = array<i64: 32, 32>}, {pipeline_mode = #tpu.pipeline_mode<synchronous>, transform_indices = @transform_3, window_bounds = array<i64: 32, 1>}, {pipeline_mode = #tpu.pipeline_mode<synchronous>, transform_indices = @transform_4, window_bounds = array<i64: 9, 32, 32>}, {pipeline_mode = #tpu.pipeline_mode<synchronous>, transform_indices = @transform_5, window_bounds = array<i64: 32, 1>}, {pipeline_mode = #tpu.pipeline_mode<synchronous>, transform_indices = @transform_6, window_bounds = array<i64: 32, 1>}, {pipeline_mode = #tpu.pipeline_mode<synchronous>, transform_indices = @transform_7, window_bounds = array<i64: 32, 1>}, {pipeline_mode = #tpu.pipeline_mode<synchronous>, transform_indices = @transform_8, window_bounds = array<i64: 9, 32, 32>}, {pipeline_mode = #tpu.pipeline_mode<synchronous>, transform_indices = @transform_9, window_bounds = array<i64: 32, 1>}, {pipeline_mode = #tpu.pipeline_mode<synchronous>, transform_indices = @transform_10, window_bounds = array<i64: 32, 1>}, {pipeline_mode = #tpu.pipeline_mode<synchronous>, transform_indices = @transform_11, window_bounds = array<i64: 32, 1>}, {pipeline_mode = #tpu.pipeline_mode<synchronous>, transform_indices = @transform_12, window_bounds = array<i64: 32, 32>}, {transform_indices = @transform_13, window_bounds = array<i64: 1, 32, 256>}]} {
    %c0 = arith.constant 0 : index
    %c0_0 = arith.constant 0 : index
    %c0_1 = arith.constant 0 : index
    %0 = vector.load %arg1[%c0, %c0_0, %c0_1] : memref<1x32x256xf32, #tpu.memory_space<vmem>>, vector<1x32x256xf32>
    %1 = vector.shape_cast %0 : vector<1x32x256xf32> to vector<32x256xf32>
    %c0_2 = arith.constant 0 : index
    %c0_3 = arith.constant 0 : index
    %2 = vector.load %arg3[%c0_2, %c0_3] : memref<32x32xf32, #tpu.memory_space<vmem>>, vector<32x32xf32>
    %cst = arith.constant dense<0.000000e+00> : vector<32x256xf32>
    %3 = tpu.matmul %2, %1, %cst {dimension_numbers = #tpu.dot_dimension_numbers<[1], [0], [0], [1], [0, 0, 1, 1], [], []>} : vector<32x32xf32>, vector<32x256xf32>, vector<32x256xf32> -> vector<32x256xf32>
    %c0_4 = arith.constant 0 : index
    %c0_5 = arith.constant 0 : index
    %4 = vector.load %arg4[%c0_4, %c0_5] : memref<32x1xf32, #tpu.memory_space<vmem>>, vector<32x1xf32>
    %5 = vector.broadcast %4 : vector<32x1xf32> to vector<32x256xf32>
    %6 = arith.addf %3, %5 : vector<32x256xf32>
    %cst_6 = arith.constant 0.000000e+00 : f32
    %7 = vector.broadcast %cst_6 : f32 to vector<32x256xf32>
    %c17_i32 = arith.constant 17 : i32
    %8 = tpu.dynamic_rotate %1 by %c17_i32 dim 1 : vector<32x256xf32>, i32 -> vector<32x256xf32>
    %c0_7 = arith.constant 0 : index
    %c0_8 = arith.constant 0 : index
    %c0_9 = arith.constant 0 : index
    %9 = vector.load %arg2[%c0_7, %c0_8, %c0_9] : memref<9x1x256xf32, #tpu.memory_space<vmem>>, vector<1x1x256xf32>
    %10 = vector.shape_cast %9 : vector<1x1x256xf32> to vector<1x256xf32>
    %11 = vector.broadcast %10 : vector<1x256xf32> to vector<32x256xf32>
    %12 = arith.mulf %8, %11 : vector<32x256xf32>
    %c0_10 = arith.constant 0 : index
    %c0_11 = arith.constant 0 : index
    %c0_12 = arith.constant 0 : index
    %13 = vector.load %arg5[%c0_10, %c0_11, %c0_12] : memref<9x32x32xf32, #tpu.memory_space<vmem>>, vector<1x32x32xf32>
    %14 = vector.shape_cast %13 : vector<1x32x32xf32> to vector<32x32xf32>
    %cst_13 = arith.constant dense<0.000000e+00> : vector<32x256xf32>
    %15 = tpu.matmul %14, %12, %cst_13 {dimension_numbers = #tpu.dot_dimension_numbers<[1], [0], [0], [1], [0, 0, 1, 1], [], []>} : vector<32x32xf32>, vector<32x256xf32>, vector<32x256xf32> -> vector<32x256xf32>
    %16 = arith.addf %7, %15 : vector<32x256xf32>
    %c16_i32 = arith.constant 16 : i32
    %17 = tpu.dynamic_rotate %1 by %c16_i32 dim 1 : vector<32x256xf32>, i32 -> vector<32x256xf32>
    %c1 = arith.constant 1 : index
    %c0_14 = arith.constant 0 : index
    %c0_15 = arith.constant 0 : index
    %18 = vector.load %arg2[%c1, %c0_14, %c0_15] : memref<9x1x256xf32, #tpu.memory_space<vmem>>, vector<1x1x256xf32>
    %19 = vector.shape_cast %18 : vector<1x1x256xf32> to vector<1x256xf32>
    %20 = vector.broadcast %19 : vector<1x256xf32> to vector<32x256xf32>
    %21 = arith.mulf %17, %20 : vector<32x256xf32>
    %c1_16 = arith.constant 1 : index
    %c0_17 = arith.constant 0 : index
    %c0_18 = arith.constant 0 : index
    %22 = vector.load %arg5[%c1_16, %c0_17, %c0_18] : memref<9x32x32xf32, #tpu.memory_space<vmem>>, vector<1x32x32xf32>
    %23 = vector.shape_cast %22 : vector<1x32x32xf32> to vector<32x32xf32>
    %cst_19 = arith.constant dense<0.000000e+00> : vector<32x256xf32>
    %24 = tpu.matmul %23, %21, %cst_19 {dimension_numbers = #tpu.dot_dimension_numbers<[1], [0], [0], [1], [0, 0, 1, 1], [], []>} : vector<32x32xf32>, vector<32x256xf32>, vector<32x256xf32> -> vector<32x256xf32>
    %25 = arith.addf %16, %24 : vector<32x256xf32>
    %c15_i32 = arith.constant 15 : i32
    %26 = tpu.dynamic_rotate %1 by %c15_i32 dim 1 : vector<32x256xf32>, i32 -> vector<32x256xf32>
    %c2 = arith.constant 2 : index
    %c0_20 = arith.constant 0 : index
    %c0_21 = arith.constant 0 : index
    %27 = vector.load %arg2[%c2, %c0_20, %c0_21] : memref<9x1x256xf32, #tpu.memory_space<vmem>>, vector<1x1x256xf32>
    %28 = vector.shape_cast %27 : vector<1x1x256xf32> to vector<1x256xf32>
    %29 = vector.broadcast %28 : vector<1x256xf32> to vector<32x256xf32>
    %30 = arith.mulf %26, %29 : vector<32x256xf32>
    %c2_22 = arith.constant 2 : index
    %c0_23 = arith.constant 0 : index
    %c0_24 = arith.constant 0 : index
    %31 = vector.load %arg5[%c2_22, %c0_23, %c0_24] : memref<9x32x32xf32, #tpu.memory_space<vmem>>, vector<1x32x32xf32>
    %32 = vector.shape_cast %31 : vector<1x32x32xf32> to vector<32x32xf32>
    %cst_25 = arith.constant dense<0.000000e+00> : vector<32x256xf32>
    %33 = tpu.matmul %32, %30, %cst_25 {dimension_numbers = #tpu.dot_dimension_numbers<[1], [0], [0], [1], [0, 0, 1, 1], [], []>} : vector<32x32xf32>, vector<32x256xf32>, vector<32x256xf32> -> vector<32x256xf32>
    %34 = arith.addf %25, %33 : vector<32x256xf32>
    %c1_i32 = arith.constant 1 : i32
    %35 = tpu.dynamic_rotate %1 by %c1_i32 dim 1 : vector<32x256xf32>, i32 -> vector<32x256xf32>
    %c3 = arith.constant 3 : index
    %c0_26 = arith.constant 0 : index
    %c0_27 = arith.constant 0 : index
    %36 = vector.load %arg2[%c3, %c0_26, %c0_27] : memref<9x1x256xf32, #tpu.memory_space<vmem>>, vector<1x1x256xf32>
    %37 = vector.shape_cast %36 : vector<1x1x256xf32> to vector<1x256xf32>
    %38 = vector.broadcast %37 : vector<1x256xf32> to vector<32x256xf32>
    %39 = arith.mulf %35, %38 : vector<32x256xf32>
    %c3_28 = arith.constant 3 : index
    %c0_29 = arith.constant 0 : index
    %c0_30 = arith.constant 0 : index
    %40 = vector.load %arg5[%c3_28, %c0_29, %c0_30] : memref<9x32x32xf32, #tpu.memory_space<vmem>>, vector<1x32x32xf32>
    %41 = vector.shape_cast %40 : vector<1x32x32xf32> to vector<32x32xf32>
    %cst_31 = arith.constant dense<0.000000e+00> : vector<32x256xf32>
    %42 = tpu.matmul %41, %39, %cst_31 {dimension_numbers = #tpu.dot_dimension_numbers<[1], [0], [0], [1], [0, 0, 1, 1], [], []>} : vector<32x32xf32>, vector<32x256xf32>, vector<32x256xf32> -> vector<32x256xf32>
    %43 = arith.addf %34, %42 : vector<32x256xf32>
    %c4 = arith.constant 4 : index
    %c0_32 = arith.constant 0 : index
    %c0_33 = arith.constant 0 : index
    %44 = vector.load %arg5[%c4, %c0_32, %c0_33] : memref<9x32x32xf32, #tpu.memory_space<vmem>>, vector<1x32x32xf32>
    %45 = vector.shape_cast %44 : vector<1x32x32xf32> to vector<32x32xf32>
    %cst_34 = arith.constant dense<0.000000e+00> : vector<32x256xf32>
    %46 = tpu.matmul %45, %1, %cst_34 {dimension_numbers = #tpu.dot_dimension_numbers<[1], [0], [0], [1], [0, 0, 1, 1], [], []>} : vector<32x32xf32>, vector<32x256xf32>, vector<32x256xf32> -> vector<32x256xf32>
    %47 = arith.addf %43, %46 : vector<32x256xf32>
    %c255_i32 = arith.constant 255 : i32
    %48 = tpu.dynamic_rotate %1 by %c255_i32 dim 1 : vector<32x256xf32>, i32 -> vector<32x256xf32>
    %c5 = arith.constant 5 : index
    %c0_35 = arith.constant 0 : index
    %c0_36 = arith.constant 0 : index
    %49 = vector.load %arg2[%c5, %c0_35, %c0_36] : memref<9x1x256xf32, #tpu.memory_space<vmem>>, vector<1x1x256xf32>
    %50 = vector.shape_cast %49 : vector<1x1x256xf32> to vector<1x256xf32>
    %51 = vector.broadcast %50 : vector<1x256xf32> to vector<32x256xf32>
    %52 = arith.mulf %48, %51 : vector<32x256xf32>
    %c5_37 = arith.constant 5 : index
    %c0_38 = arith.constant 0 : index
    %c0_39 = arith.constant 0 : index
    %53 = vector.load %arg5[%c5_37, %c0_38, %c0_39] : memref<9x32x32xf32, #tpu.memory_space<vmem>>, vector<1x32x32xf32>
    %54 = vector.shape_cast %53 : vector<1x32x32xf32> to vector<32x32xf32>
    %cst_40 = arith.constant dense<0.000000e+00> : vector<32x256xf32>
    %55 = tpu.matmul %54, %52, %cst_40 {dimension_numbers = #tpu.dot_dimension_numbers<[1], [0], [0], [1], [0, 0, 1, 1], [], []>} : vector<32x32xf32>, vector<32x256xf32>, vector<32x256xf32> -> vector<32x256xf32>
    %56 = arith.addf %47, %55 : vector<32x256xf32>
    %c241_i32 = arith.constant 241 : i32
    %57 = tpu.dynamic_rotate %1 by %c241_i32 dim 1 : vector<32x256xf32>, i32 -> vector<32x256xf32>
    %c6 = arith.constant 6 : index
    %c0_41 = arith.constant 0 : index
    %c0_42 = arith.constant 0 : index
    %58 = vector.load %arg2[%c6, %c0_41, %c0_42] : memref<9x1x256xf32, #tpu.memory_space<vmem>>, vector<1x1x256xf32>
    %59 = vector.shape_cast %58 : vector<1x1x256xf32> to vector<1x256xf32>
    %60 = vector.broadcast %59 : vector<1x256xf32> to vector<32x256xf32>
    %61 = arith.mulf %57, %60 : vector<32x256xf32>
    %c6_43 = arith.constant 6 : index
    %c0_44 = arith.constant 0 : index
    %c0_45 = arith.constant 0 : index
    %62 = vector.load %arg5[%c6_43, %c0_44, %c0_45] : memref<9x32x32xf32, #tpu.memory_space<vmem>>, vector<1x32x32xf32>
    %63 = vector.shape_cast %62 : vector<1x32x32xf32> to vector<32x32xf32>
    %cst_46 = arith.constant dense<0.000000e+00> : vector<32x256xf32>
    %64 = tpu.matmul %63, %61, %cst_46 {dimension_numbers = #tpu.dot_dimension_numbers<[1], [0], [0], [1], [0, 0, 1, 1], [], []>} : vector<32x32xf32>, vector<32x256xf32>, vector<32x256xf32> -> vector<32x256xf32>
    %65 = arith.addf %56, %64 : vector<32x256xf32>
    %c240_i32 = arith.constant 240 : i32
    %66 = tpu.dynamic_rotate %1 by %c240_i32 dim 1 : vector<32x256xf32>, i32 -> vector<32x256xf32>
    %c7 = arith.constant 7 : index
    %c0_47 = arith.constant 0 : index
    %c0_48 = arith.constant 0 : index
    %67 = vector.load %arg2[%c7, %c0_47, %c0_48] : memref<9x1x256xf32, #tpu.memory_space<vmem>>, vector<1x1x256xf32>
    %68 = vector.shape_cast %67 : vector<1x1x256xf32> to vector<1x256xf32>
    %69 = vector.broadcast %68 : vector<1x256xf32> to vector<32x256xf32>
    %70 = arith.mulf %66, %69 : vector<32x256xf32>
    %c7_49 = arith.constant 7 : index
    %c0_50 = arith.constant 0 : index
    %c0_51 = arith.constant 0 : index
    %71 = vector.load %arg5[%c7_49, %c0_50, %c0_51] : memref<9x32x32xf32, #tpu.memory_space<vmem>>, vector<1x32x32xf32>
    %72 = vector.shape_cast %71 : vector<1x32x32xf32> to vector<32x32xf32>
    %cst_52 = arith.constant dense<0.000000e+00> : vector<32x256xf32>
    %73 = tpu.matmul %72, %70, %cst_52 {dimension_numbers = #tpu.dot_dimension_numbers<[1], [0], [0], [1], [0, 0, 1, 1], [], []>} : vector<32x32xf32>, vector<32x256xf32>, vector<32x256xf32> -> vector<32x256xf32>
    %74 = arith.addf %65, %73 : vector<32x256xf32>
    %c239_i32 = arith.constant 239 : i32
    %75 = tpu.dynamic_rotate %1 by %c239_i32 dim 1 : vector<32x256xf32>, i32 -> vector<32x256xf32>
    %c8 = arith.constant 8 : index
    %c0_53 = arith.constant 0 : index
    %c0_54 = arith.constant 0 : index
    %76 = vector.load %arg2[%c8, %c0_53, %c0_54] : memref<9x1x256xf32, #tpu.memory_space<vmem>>, vector<1x1x256xf32>
    %77 = vector.shape_cast %76 : vector<1x1x256xf32> to vector<1x256xf32>
    %78 = vector.broadcast %77 : vector<1x256xf32> to vector<32x256xf32>
    %79 = arith.mulf %75, %78 : vector<32x256xf32>
    %c8_55 = arith.constant 8 : index
    %c0_56 = arith.constant 0 : index
    %c0_57 = arith.constant 0 : index
    %80 = vector.load %arg5[%c8_55, %c0_56, %c0_57] : memref<9x32x32xf32, #tpu.memory_space<vmem>>, vector<1x32x32xf32>
    %81 = vector.shape_cast %80 : vector<1x32x32xf32> to vector<32x32xf32>
    %cst_58 = arith.constant dense<0.000000e+00> : vector<32x256xf32>
    %82 = tpu.matmul %81, %79, %cst_58 {dimension_numbers = #tpu.dot_dimension_numbers<[1], [0], [0], [1], [0, 0, 1, 1], [], []>} : vector<32x32xf32>, vector<32x256xf32>, vector<32x256xf32> -> vector<32x256xf32>
    %83 = arith.addf %74, %82 : vector<32x256xf32>
    %c0_59 = arith.constant 0 : index
    %c0_60 = arith.constant 0 : index
    %84 = vector.load %arg6[%c0_59, %c0_60] : memref<32x1xf32, #tpu.memory_space<vmem>>, vector<32x1xf32>
    %85 = vector.broadcast %84 : vector<32x1xf32> to vector<32x256xf32>
    %86 = arith.addf %83, %85 : vector<32x256xf32>
    %c0_61 = arith.constant 0 : index
    %c0_62 = arith.constant 0 : index
    %87 = vector.load %arg13[%c0_61, %c0_62] : memref<32x32xf32, #tpu.memory_space<vmem>>, vector<32x32xf32>
    %cst_63 = arith.constant dense<0.000000e+00> : vector<32x256xf32>
    %88 = tpu.matmul %87, %86, %cst_63 {dimension_numbers = #tpu.dot_dimension_numbers<[1], [0], [0], [1], [0, 0, 1, 1], [], []>} : vector<32x32xf32>, vector<32x256xf32>, vector<32x256xf32> -> vector<32x256xf32>
    %cst_64 = arith.constant dense<0.000000e+00> : vector<32xf32>
    %89 = vector.multi_reduction <add>, %88, %cst_64 [1] : vector<32x256xf32> to vector<32xf32>
    %90 = vector.shape_cast %89 : vector<32xf32> to vector<32x1xf32>
    %cst_65 = arith.constant 2.560000e+02 : f32
    %91 = vector.broadcast %cst_65 : f32 to vector<32x1xf32>
    %92 = arith.divf %90, %91 : vector<32x1xf32>
    %c0_66 = arith.constant 0 : index
    %c0_67 = arith.constant 0 : index
    %93 = vector.load %arg13[%c0_66, %c0_67] : memref<32x32xf32, #tpu.memory_space<vmem>>, vector<32x32xf32>
    %94 = arith.mulf %86, %86 : vector<32x256xf32>
    %cst_68 = arith.constant dense<0.000000e+00> : vector<32x256xf32>
    %95 = tpu.matmul %93, %94, %cst_68 {dimension_numbers = #tpu.dot_dimension_numbers<[1], [0], [0], [1], [0, 0, 1, 1], [], []>} : vector<32x32xf32>, vector<32x256xf32>, vector<32x256xf32> -> vector<32x256xf32>
    %cst_69 = arith.constant dense<0.000000e+00> : vector<32xf32>
    %96 = vector.multi_reduction <add>, %95, %cst_69 [1] : vector<32x256xf32> to vector<32xf32>
    %97 = vector.shape_cast %96 : vector<32xf32> to vector<32x1xf32>
    %cst_70 = arith.constant 2.560000e+02 : f32
    %98 = vector.broadcast %cst_70 : f32 to vector<32x1xf32>
    %99 = arith.divf %97, %98 : vector<32x1xf32>
    %100 = arith.mulf %92, %92 : vector<32x1xf32>
    %101 = arith.subf %99, %100 : vector<32x1xf32>
    %102 = vector.broadcast %92 : vector<32x1xf32> to vector<32x256xf32>
    %103 = arith.subf %86, %102 : vector<32x256xf32>
    %cst_71 = arith.constant 9.99999974E-6 : f32
    %104 = vector.broadcast %cst_71 : f32 to vector<32x1xf32>
    %105 = arith.addf %101, %104 : vector<32x1xf32>
    %106 = math.rsqrt %105 : vector<32x1xf32>
    %107 = vector.broadcast %106 : vector<32x1xf32> to vector<32x256xf32>
    %108 = arith.mulf %103, %107 : vector<32x256xf32>
    %c0_72 = arith.constant 0 : index
    %c0_73 = arith.constant 0 : index
    %109 = vector.load %arg7[%c0_72, %c0_73] : memref<32x1xf32, #tpu.memory_space<vmem>>, vector<32x1xf32>
    %110 = vector.broadcast %109 : vector<32x1xf32> to vector<32x256xf32>
    %111 = arith.mulf %108, %110 : vector<32x256xf32>
    %c0_74 = arith.constant 0 : index
    %c0_75 = arith.constant 0 : index
    %112 = vector.load %arg8[%c0_74, %c0_75] : memref<32x1xf32, #tpu.memory_space<vmem>>, vector<32x1xf32>
    %113 = vector.broadcast %112 : vector<32x1xf32> to vector<32x256xf32>
    %114 = arith.addf %111, %113 : vector<32x256xf32>
    %cst_76 = arith.constant 0.000000e+00 : f32
    %115 = vector.broadcast %cst_76 : f32 to vector<32x256xf32>
    %116 = arith.maximumf %114, %115 : vector<32x256xf32>
    %cst_77 = arith.constant 0.000000e+00 : f32
    %117 = vector.broadcast %cst_77 : f32 to vector<32x256xf32>
    %c17_i32_78 = arith.constant 17 : i32
    %118 = tpu.dynamic_rotate %116 by %c17_i32_78 dim 1 : vector<32x256xf32>, i32 -> vector<32x256xf32>
    %c0_79 = arith.constant 0 : index
    %c0_80 = arith.constant 0 : index
    %c0_81 = arith.constant 0 : index
    %119 = vector.load %arg2[%c0_79, %c0_80, %c0_81] : memref<9x1x256xf32, #tpu.memory_space<vmem>>, vector<1x1x256xf32>
    %120 = vector.shape_cast %119 : vector<1x1x256xf32> to vector<1x256xf32>
    %121 = vector.broadcast %120 : vector<1x256xf32> to vector<32x256xf32>
    %122 = arith.mulf %118, %121 : vector<32x256xf32>
    %c0_82 = arith.constant 0 : index
    %c0_83 = arith.constant 0 : index
    %c0_84 = arith.constant 0 : index
    %123 = vector.load %arg9[%c0_82, %c0_83, %c0_84] : memref<9x32x32xf32, #tpu.memory_space<vmem>>, vector<1x32x32xf32>
    %124 = vector.shape_cast %123 : vector<1x32x32xf32> to vector<32x32xf32>
    %cst_85 = arith.constant dense<0.000000e+00> : vector<32x256xf32>
    %125 = tpu.matmul %124, %122, %cst_85 {dimension_numbers = #tpu.dot_dimension_numbers<[1], [0], [0], [1], [0, 0, 1, 1], [], []>} : vector<32x32xf32>, vector<32x256xf32>, vector<32x256xf32> -> vector<32x256xf32>
    %126 = arith.addf %117, %125 : vector<32x256xf32>
    %c16_i32_86 = arith.constant 16 : i32
    %127 = tpu.dynamic_rotate %116 by %c16_i32_86 dim 1 : vector<32x256xf32>, i32 -> vector<32x256xf32>
    %c1_87 = arith.constant 1 : index
    %c0_88 = arith.constant 0 : index
    %c0_89 = arith.constant 0 : index
    %128 = vector.load %arg2[%c1_87, %c0_88, %c0_89] : memref<9x1x256xf32, #tpu.memory_space<vmem>>, vector<1x1x256xf32>
    %129 = vector.shape_cast %128 : vector<1x1x256xf32> to vector<1x256xf32>
    %130 = vector.broadcast %129 : vector<1x256xf32> to vector<32x256xf32>
    %131 = arith.mulf %127, %130 : vector<32x256xf32>
    %c1_90 = arith.constant 1 : index
    %c0_91 = arith.constant 0 : index
    %c0_92 = arith.constant 0 : index
    %132 = vector.load %arg9[%c1_90, %c0_91, %c0_92] : memref<9x32x32xf32, #tpu.memory_space<vmem>>, vector<1x32x32xf32>
    %133 = vector.shape_cast %132 : vector<1x32x32xf32> to vector<32x32xf32>
    %cst_93 = arith.constant dense<0.000000e+00> : vector<32x256xf32>
    %134 = tpu.matmul %133, %131, %cst_93 {dimension_numbers = #tpu.dot_dimension_numbers<[1], [0], [0], [1], [0, 0, 1, 1], [], []>} : vector<32x32xf32>, vector<32x256xf32>, vector<32x256xf32> -> vector<32x256xf32>
    %135 = arith.addf %126, %134 : vector<32x256xf32>
    %c15_i32_94 = arith.constant 15 : i32
    %136 = tpu.dynamic_rotate %116 by %c15_i32_94 dim 1 : vector<32x256xf32>, i32 -> vector<32x256xf32>
    %c2_95 = arith.constant 2 : index
    %c0_96 = arith.constant 0 : index
    %c0_97 = arith.constant 0 : index
    %137 = vector.load %arg2[%c2_95, %c0_96, %c0_97] : memref<9x1x256xf32, #tpu.memory_space<vmem>>, vector<1x1x256xf32>
    %138 = vector.shape_cast %137 : vector<1x1x256xf32> to vector<1x256xf32>
    %139 = vector.broadcast %138 : vector<1x256xf32> to vector<32x256xf32>
    %140 = arith.mulf %136, %139 : vector<32x256xf32>
    %c2_98 = arith.constant 2 : index
    %c0_99 = arith.constant 0 : index
    %c0_100 = arith.constant 0 : index
    %141 = vector.load %arg9[%c2_98, %c0_99, %c0_100] : memref<9x32x32xf32, #tpu.memory_space<vmem>>, vector<1x32x32xf32>
    %142 = vector.shape_cast %141 : vector<1x32x32xf32> to vector<32x32xf32>
    %cst_101 = arith.constant dense<0.000000e+00> : vector<32x256xf32>
    %143 = tpu.matmul %142, %140, %cst_101 {dimension_numbers = #tpu.dot_dimension_numbers<[1], [0], [0], [1], [0, 0, 1, 1], [], []>} : vector<32x32xf32>, vector<32x256xf32>, vector<32x256xf32> -> vector<32x256xf32>
    %144 = arith.addf %135, %143 : vector<32x256xf32>
    %c1_i32_102 = arith.constant 1 : i32
    %145 = tpu.dynamic_rotate %116 by %c1_i32_102 dim 1 : vector<32x256xf32>, i32 -> vector<32x256xf32>
    %c3_103 = arith.constant 3 : index
    %c0_104 = arith.constant 0 : index
    %c0_105 = arith.constant 0 : index
    %146 = vector.load %arg2[%c3_103, %c0_104, %c0_105] : memref<9x1x256xf32, #tpu.memory_space<vmem>>, vector<1x1x256xf32>
    %147 = vector.shape_cast %146 : vector<1x1x256xf32> to vector<1x256xf32>
    %148 = vector.broadcast %147 : vector<1x256xf32> to vector<32x256xf32>
    %149 = arith.mulf %145, %148 : vector<32x256xf32>
    %c3_106 = arith.constant 3 : index
    %c0_107 = arith.constant 0 : index
    %c0_108 = arith.constant 0 : index
    %150 = vector.load %arg9[%c3_106, %c0_107, %c0_108] : memref<9x32x32xf32, #tpu.memory_space<vmem>>, vector<1x32x32xf32>
    %151 = vector.shape_cast %150 : vector<1x32x32xf32> to vector<32x32xf32>
    %cst_109 = arith.constant dense<0.000000e+00> : vector<32x256xf32>
    %152 = tpu.matmul %151, %149, %cst_109 {dimension_numbers = #tpu.dot_dimension_numbers<[1], [0], [0], [1], [0, 0, 1, 1], [], []>} : vector<32x32xf32>, vector<32x256xf32>, vector<32x256xf32> -> vector<32x256xf32>
    %153 = arith.addf %144, %152 : vector<32x256xf32>
    %c4_110 = arith.constant 4 : index
    %c0_111 = arith.constant 0 : index
    %c0_112 = arith.constant 0 : index
    %154 = vector.load %arg9[%c4_110, %c0_111, %c0_112] : memref<9x32x32xf32, #tpu.memory_space<vmem>>, vector<1x32x32xf32>
    %155 = vector.shape_cast %154 : vector<1x32x32xf32> to vector<32x32xf32>
    %cst_113 = arith.constant dense<0.000000e+00> : vector<32x256xf32>
    %156 = tpu.matmul %155, %116, %cst_113 {dimension_numbers = #tpu.dot_dimension_numbers<[1], [0], [0], [1], [0, 0, 1, 1], [], []>} : vector<32x32xf32>, vector<32x256xf32>, vector<32x256xf32> -> vector<32x256xf32>
    %157 = arith.addf %153, %156 : vector<32x256xf32>
    %c255_i32_114 = arith.constant 255 : i32
    %158 = tpu.dynamic_rotate %116 by %c255_i32_114 dim 1 : vector<32x256xf32>, i32 -> vector<32x256xf32>
    %c5_115 = arith.constant 5 : index
    %c0_116 = arith.constant 0 : index
    %c0_117 = arith.constant 0 : index
    %159 = vector.load %arg2[%c5_115, %c0_116, %c0_117] : memref<9x1x256xf32, #tpu.memory_space<vmem>>, vector<1x1x256xf32>
    %160 = vector.shape_cast %159 : vector<1x1x256xf32> to vector<1x256xf32>
    %161 = vector.broadcast %160 : vector<1x256xf32> to vector<32x256xf32>
    %162 = arith.mulf %158, %161 : vector<32x256xf32>
    %c5_118 = arith.constant 5 : index
    %c0_119 = arith.constant 0 : index
    %c0_120 = arith.constant 0 : index
    %163 = vector.load %arg9[%c5_118, %c0_119, %c0_120] : memref<9x32x32xf32, #tpu.memory_space<vmem>>, vector<1x32x32xf32>
    %164 = vector.shape_cast %163 : vector<1x32x32xf32> to vector<32x32xf32>
    %cst_121 = arith.constant dense<0.000000e+00> : vector<32x256xf32>
    %165 = tpu.matmul %164, %162, %cst_121 {dimension_numbers = #tpu.dot_dimension_numbers<[1], [0], [0], [1], [0, 0, 1, 1], [], []>} : vector<32x32xf32>, vector<32x256xf32>, vector<32x256xf32> -> vector<32x256xf32>
    %166 = arith.addf %157, %165 : vector<32x256xf32>
    %c241_i32_122 = arith.constant 241 : i32
    %167 = tpu.dynamic_rotate %116 by %c241_i32_122 dim 1 : vector<32x256xf32>, i32 -> vector<32x256xf32>
    %c6_123 = arith.constant 6 : index
    %c0_124 = arith.constant 0 : index
    %c0_125 = arith.constant 0 : index
    %168 = vector.load %arg2[%c6_123, %c0_124, %c0_125] : memref<9x1x256xf32, #tpu.memory_space<vmem>>, vector<1x1x256xf32>
    %169 = vector.shape_cast %168 : vector<1x1x256xf32> to vector<1x256xf32>
    %170 = vector.broadcast %169 : vector<1x256xf32> to vector<32x256xf32>
    %171 = arith.mulf %167, %170 : vector<32x256xf32>
    %c6_126 = arith.constant 6 : index
    %c0_127 = arith.constant 0 : index
    %c0_128 = arith.constant 0 : index
    %172 = vector.load %arg9[%c6_126, %c0_127, %c0_128] : memref<9x32x32xf32, #tpu.memory_space<vmem>>, vector<1x32x32xf32>
    %173 = vector.shape_cast %172 : vector<1x32x32xf32> to vector<32x32xf32>
    %cst_129 = arith.constant dense<0.000000e+00> : vector<32x256xf32>
    %174 = tpu.matmul %173, %171, %cst_129 {dimension_numbers = #tpu.dot_dimension_numbers<[1], [0], [0], [1], [0, 0, 1, 1], [], []>} : vector<32x32xf32>, vector<32x256xf32>, vector<32x256xf32> -> vector<32x256xf32>
    %175 = arith.addf %166, %174 : vector<32x256xf32>
    %c240_i32_130 = arith.constant 240 : i32
    %176 = tpu.dynamic_rotate %116 by %c240_i32_130 dim 1 : vector<32x256xf32>, i32 -> vector<32x256xf32>
    %c7_131 = arith.constant 7 : index
    %c0_132 = arith.constant 0 : index
    %c0_133 = arith.constant 0 : index
    %177 = vector.load %arg2[%c7_131, %c0_132, %c0_133] : memref<9x1x256xf32, #tpu.memory_space<vmem>>, vector<1x1x256xf32>
    %178 = vector.shape_cast %177 : vector<1x1x256xf32> to vector<1x256xf32>
    %179 = vector.broadcast %178 : vector<1x256xf32> to vector<32x256xf32>
    %180 = arith.mulf %176, %179 : vector<32x256xf32>
    %c7_134 = arith.constant 7 : index
    %c0_135 = arith.constant 0 : index
    %c0_136 = arith.constant 0 : index
    %181 = vector.load %arg9[%c7_134, %c0_135, %c0_136] : memref<9x32x32xf32, #tpu.memory_space<vmem>>, vector<1x32x32xf32>
    %182 = vector.shape_cast %181 : vector<1x32x32xf32> to vector<32x32xf32>
    %cst_137 = arith.constant dense<0.000000e+00> : vector<32x256xf32>
    %183 = tpu.matmul %182, %180, %cst_137 {dimension_numbers = #tpu.dot_dimension_numbers<[1], [0], [0], [1], [0, 0, 1, 1], [], []>} : vector<32x32xf32>, vector<32x256xf32>, vector<32x256xf32> -> vector<32x256xf32>
    %184 = arith.addf %175, %183 : vector<32x256xf32>
    %c239_i32_138 = arith.constant 239 : i32
    %185 = tpu.dynamic_rotate %116 by %c239_i32_138 dim 1 : vector<32x256xf32>, i32 -> vector<32x256xf32>
    %c8_139 = arith.constant 8 : index
    %c0_140 = arith.constant 0 : index
    %c0_141 = arith.constant 0 : index
    %186 = vector.load %arg2[%c8_139, %c0_140, %c0_141] : memref<9x1x256xf32, #tpu.memory_space<vmem>>, vector<1x1x256xf32>
    %187 = vector.shape_cast %186 : vector<1x1x256xf32> to vector<1x256xf32>
    %188 = vector.broadcast %187 : vector<1x256xf32> to vector<32x256xf32>
    %189 = arith.mulf %185, %188 : vector<32x256xf32>
    %c8_142 = arith.constant 8 : index
    %c0_143 = arith.constant 0 : index
    %c0_144 = arith.constant 0 : index
    %190 = vector.load %arg9[%c8_142, %c0_143, %c0_144] : memref<9x32x32xf32, #tpu.memory_space<vmem>>, vector<1x32x32xf32>
    %191 = vector.shape_cast %190 : vector<1x32x32xf32> to vector<32x32xf32>
    %cst_145 = arith.constant dense<0.000000e+00> : vector<32x256xf32>
    %192 = tpu.matmul %191, %189, %cst_145 {dimension_numbers = #tpu.dot_dimension_numbers<[1], [0], [0], [1], [0, 0, 1, 1], [], []>} : vector<32x32xf32>, vector<32x256xf32>, vector<32x256xf32> -> vector<32x256xf32>
    %193 = arith.addf %184, %192 : vector<32x256xf32>
    %c0_146 = arith.constant 0 : index
    %c0_147 = arith.constant 0 : index
    %194 = vector.load %arg10[%c0_146, %c0_147] : memref<32x1xf32, #tpu.memory_space<vmem>>, vector<32x1xf32>
    %195 = vector.broadcast %194 : vector<32x1xf32> to vector<32x256xf32>
    %196 = arith.addf %193, %195 : vector<32x256xf32>
    %c0_148 = arith.constant 0 : index
    %c0_149 = arith.constant 0 : index
    %197 = vector.load %arg13[%c0_148, %c0_149] : memref<32x32xf32, #tpu.memory_space<vmem>>, vector<32x32xf32>
    %cst_150 = arith.constant dense<0.000000e+00> : vector<32x256xf32>
    %198 = tpu.matmul %197, %196, %cst_150 {dimension_numbers = #tpu.dot_dimension_numbers<[1], [0], [0], [1], [0, 0, 1, 1], [], []>} : vector<32x32xf32>, vector<32x256xf32>, vector<32x256xf32> -> vector<32x256xf32>
    %cst_151 = arith.constant dense<0.000000e+00> : vector<32xf32>
    %199 = vector.multi_reduction <add>, %198, %cst_151 [1] : vector<32x256xf32> to vector<32xf32>
    %200 = vector.shape_cast %199 : vector<32xf32> to vector<32x1xf32>
    %cst_152 = arith.constant 2.560000e+02 : f32
    %201 = vector.broadcast %cst_152 : f32 to vector<32x1xf32>
    %202 = arith.divf %200, %201 : vector<32x1xf32>
    %c0_153 = arith.constant 0 : index
    %c0_154 = arith.constant 0 : index
    %203 = vector.load %arg13[%c0_153, %c0_154] : memref<32x32xf32, #tpu.memory_space<vmem>>, vector<32x32xf32>
    %204 = arith.mulf %196, %196 : vector<32x256xf32>
    %cst_155 = arith.constant dense<0.000000e+00> : vector<32x256xf32>
    %205 = tpu.matmul %203, %204, %cst_155 {dimension_numbers = #tpu.dot_dimension_numbers<[1], [0], [0], [1], [0, 0, 1, 1], [], []>} : vector<32x32xf32>, vector<32x256xf32>, vector<32x256xf32> -> vector<32x256xf32>
    %cst_156 = arith.constant dense<0.000000e+00> : vector<32xf32>
    %206 = vector.multi_reduction <add>, %205, %cst_156 [1] : vector<32x256xf32> to vector<32xf32>
    %207 = vector.shape_cast %206 : vector<32xf32> to vector<32x1xf32>
    %cst_157 = arith.constant 2.560000e+02 : f32
    %208 = vector.broadcast %cst_157 : f32 to vector<32x1xf32>
    %209 = arith.divf %207, %208 : vector<32x1xf32>
    %210 = arith.mulf %202, %202 : vector<32x1xf32>
    %211 = arith.subf %209, %210 : vector<32x1xf32>
    %212 = vector.broadcast %202 : vector<32x1xf32> to vector<32x256xf32>
    %213 = arith.subf %196, %212 : vector<32x256xf32>
    %cst_158 = arith.constant 9.99999974E-6 : f32
    %214 = vector.broadcast %cst_158 : f32 to vector<32x1xf32>
    %215 = arith.addf %211, %214 : vector<32x1xf32>
    %216 = math.rsqrt %215 : vector<32x1xf32>
    %217 = vector.broadcast %216 : vector<32x1xf32> to vector<32x256xf32>
    %218 = arith.mulf %213, %217 : vector<32x256xf32>
    %c0_159 = arith.constant 0 : index
    %c0_160 = arith.constant 0 : index
    %219 = vector.load %arg11[%c0_159, %c0_160] : memref<32x1xf32, #tpu.memory_space<vmem>>, vector<32x1xf32>
    %220 = vector.broadcast %219 : vector<32x1xf32> to vector<32x256xf32>
    %221 = arith.mulf %218, %220 : vector<32x256xf32>
    %c0_161 = arith.constant 0 : index
    %c0_162 = arith.constant 0 : index
    %222 = vector.load %arg12[%c0_161, %c0_162] : memref<32x1xf32, #tpu.memory_space<vmem>>, vector<32x1xf32>
    %223 = vector.broadcast %222 : vector<32x1xf32> to vector<32x256xf32>
    %224 = arith.addf %221, %223 : vector<32x256xf32>
    %cst_163 = arith.constant 0.000000e+00 : f32
    %225 = vector.broadcast %cst_163 : f32 to vector<32x256xf32>
    %226 = arith.maximumf %224, %225 : vector<32x256xf32>
    %227 = arith.addf %226, %6 : vector<32x256xf32>
    %c0_164 = arith.constant 0 : index
    %c0_165 = arith.constant 0 : index
    %c0_166 = arith.constant 0 : index
    %228 = vector.load %arg14[%c0_164, %c0_165, %c0_166] : memref<1x32x256xf32, #tpu.memory_space<vmem>>, vector<1x32x256xf32>
    %229 = vector.shape_cast %228 : vector<1x32x256xf32> to vector<32x256xf32>
    %230 = vector.shape_cast %227 : vector<32x256xf32> to vector<1x32x256xf32>
    tpu.vector_store %arg14[%c0_164, %c0_165, %c0_166], %230 {strides = array<i32>} : memref<1x32x256xf32, #tpu.memory_space<vmem>>, vector<1x32x256xf32>,
    return
  }
  func.func @transform_0(%arg0: i32) -> (i32, i32, i32) {
    %c0_i32 = arith.constant 0 : i32
    %c0_i32_0 = arith.constant 0 : i32
    %c0_i32_1 = arith.constant 0 : i32
    return %arg0, %c0_i32, %c0_i32_0 : i32, i32, i32
  }
  func.func @transform_1(%arg0: i32) -> (i32, i32, i32) {
    %c0_i32 = arith.constant 0 : i32
    %c0_i32_0 = arith.constant 0 : i32
    %c0_i32_1 = arith.constant 0 : i32
    %c0_i32_2 = arith.constant 0 : i32
    return %c0_i32, %c0_i32_0, %c0_i32_1 : i32, i32, i32
  }
  func.func @transform_2(%arg0: i32) -> (i32, i32) {
    %c0_i32 = arith.constant 0 : i32
    %c0_i32_0 = arith.constant 0 : i32
    %c0_i32_1 = arith.constant 0 : i32
    return %c0_i32, %c0_i32_0 : i32, i32
  }
  func.func @transform_3(%arg0: i32) -> (i32, i32) {
    %c0_i32 = arith.constant 0 : i32
    %c0_i32_0 = arith.constant 0 : i32
    %c0_i32_1 = arith.constant 0 : i32
    return %c0_i32, %c0_i32_0 : i32, i32
  }
  func.func @transform_4(%arg0: i32) -> (i32, i32, i32) {
    %c0_i32 = arith.constant 0 : i32
    %c0_i32_0 = arith.constant 0 : i32
    %c0_i32_1 = arith.constant 0 : i32
    %c0_i32_2 = arith.constant 0 : i32
    return %c0_i32, %c0_i32_0, %c0_i32_1 : i32, i32, i32
  }
  func.func @transform_5(%arg0: i32) -> (i32, i32) {
    %c0_i32 = arith.constant 0 : i32
    %c0_i32_0 = arith.constant 0 : i32
    %c0_i32_1 = arith.constant 0 : i32
    return %c0_i32, %c0_i32_0 : i32, i32
  }
  func.func @transform_6(%arg0: i32) -> (i32, i32) {
    %c0_i32 = arith.constant 0 : i32
    %c0_i32_0 = arith.constant 0 : i32
    %c0_i32_1 = arith.constant 0 : i32
    return %c0_i32, %c0_i32_0 : i32, i32
  }
  func.func @transform_7(%arg0: i32) -> (i32, i32) {
    %c0_i32 = arith.constant 0 : i32
    %c0_i32_0 = arith.constant 0 : i32
    %c0_i32_1 = arith.constant 0 : i32
    return %c0_i32, %c0_i32_0 : i32, i32
  }
  func.func @transform_8(%arg0: i32) -> (i32, i32, i32) {
    %c0_i32 = arith.constant 0 : i32
    %c0_i32_0 = arith.constant 0 : i32
    %c0_i32_1 = arith.constant 0 : i32
    %c0_i32_2 = arith.constant 0 : i32
    return %c0_i32, %c0_i32_0, %c0_i32_1 : i32, i32, i32
  }
  func.func @transform_9(%arg0: i32) -> (i32, i32) {
    %c0_i32 = arith.constant 0 : i32
    %c0_i32_0 = arith.constant 0 : i32
    %c0_i32_1 = arith.constant 0 : i32
    return %c0_i32, %c0_i32_0 : i32, i32
  }
  func.func @transform_10(%arg0: i32) -> (i32, i32) {
    %c0_i32 = arith.constant 0 : i32
    %c0_i32_0 = arith.constant 0 : i32
    %c0_i32_1 = arith.constant 0 : i32
    return %c0_i32, %c0_i32_0 : i32, i32
  }
  func.func @transform_11(%arg0: i32) -> (i32, i32) {
    %c0_i32 = arith.constant 0 : i32
    %c0_i32_0 = arith.constant 0 : i32
    %c0_i32_1 = arith.constant 0 : i32
    return %c0_i32, %c0_i32_0 : i32, i32
  }
  func.func @transform_12(%arg0: i32) -> (i32, i32) {
    %c0_i32 = arith.constant 0 : i32
    %c0_i32_0 = arith.constant 0 : i32
    %c0_i32_1 = arith.constant 0 : i32
    return %c0_i32, %c0_i32_0 : i32, i32
  }
  func.func @transform_13(%arg0: i32) -> (i32, i32, i32) {
    %c0_i32 = arith.constant 0 : i32
    %c0_i32_0 = arith.constant 0 : i32
    %c0_i32_1 = arith.constant 0 : i32
    return %arg0, %c0_i32, %c0_i32_0 : i32, i32, i32
  }
}

</mosaic_0001>

<bundles_post_ra>
// kernel: tpu_custom_call.1
= control target key start
LH: loop header
LB: loop body
LE: loop exit
PB: predicated region body
PF: predicated region fallthrough
CT: control target
= control target key end

     0   :  { %s6272_s0 = inlined_call_operand.vmem [shape: f32[2,32,256], index: 0, kind: input, shape index: {}]   ;;  %s6273_s1 = inlined_call_operand.vmem [shape: f32[9,1,256], index: 1, kind: input, shape index: {}]   ;;  %s6274_s2 = inlined_call_operand.vmem [shape: f32[32,32], index: 2, kind: input, shape index: {}]   ;;  %s6275_s3 = inlined_call_operand.vmem [shape: f32[32,1], index: 3, kind: input, shape index: {}]   ;;  %s6276_s4 = inlined_call_operand.hbm [shape: f32[9,32,32], index: 4, kind: input, shape index: {}]   ;;  %s6277_s5 = inlined_call_operand.vmem [shape: f32[32,1], index: 5, kind: input, shape index: {}]   ;;  %s6278_s6 = inlined_call_operand.vmem [shape: f32[32,1], index: 6, kind: input, shape index: {}]   ;;  %s6279_s7 = inlined_call_operand.vmem [shape: f32[32,1], index: 7, kind: input, shape index: {}]   ;;  %s6280_s8 = inlined_call_operand.hbm [shape: f32[9,32,32], index: 8, kind: input, shape index: {}]   ;;  %s6281_s9 = inlined_call_operand.vmem [shape: f32[32,1], index: 9, kind: input, shape index: {}]   ;;  %s6282_s10 = inlined_call_operand.vmem [shape: f32[32,1], index: 10, kind: input, shape index: {}]   ;;  %s6283_s11 = inlined_call_operand.vmem [shape: f32[32,1], index: 11, kind: input, shape index: {}]   ;;  %s6284_s12 = inlined_call_operand.vmem [shape: f32[32,32], index: 12, kind: input, shape index: {}]   ;;  %s6285_s13 = inlined_call_operand.hbm [shape: f32[2,32,256], index: 13, kind: output, shape index: {}]  }
   0x1   :  { %6296 = sst [smem:[#allocation17_spill]] %s6285_s13 }
   0x2   :  { %18 = vsyncpa [#allocation3], 0 }
   0x3   :  { %19 = vsyncpa [#allocation6], 0 }
   0x4   :  { %20 = vsyncpa [#allocation4], 0 }
   0x5   :  { %22 = vsyncpa [#allocation4 + $0x1], 0  ;;  %s4831_s25 = smov 0   ;;  %s4833_s26 = smov 0  }
   0x6   :  { %s4835_s27 = smov 0   ;;  %s4837_s28 = smov 0  }
   0x7 LB: > { %6297 = sst [smem:[#allocation11_spill]] %s4731_s25  ;;  %s4852_s29 = sadd.s32 4294967295, %s4743_s28   ;;  %s4743_s28 = sphi %s4837_s28, %s6319_s28   ;;  %s4739_s27 = sphi %s4835_s27, %s6324_s27   ;;  %s4735_s26 = sphi %s4833_s26, %s6323_s26   ;;  %s4731_s25 = sphi %s4831_s25, %s6322_s25  }
   0x8   : > { %6298 = sst [smem:[#allocation12_spill]] %s4739_s27  ;;  %s4089_s30 = sadd.s32 4294967294, %s4743_s28  }
   0x9   : > { %6299 = sst [smem:[#allocation13_spill]] %s4743_s28  ;;  %s4856_s14 = sadd.s32 1, %s4743_s28  }
   0xa   : > { %6300 = sst [smem:[#allocation14_spill]] %s4856_s14  ;;  %s313_s15 = sadd.s32 1, %s4739_s27 }
   0xb   : > { %s310_s16 = ssub.s32 %s4743_s28, %s4856_s14  ;;  %p323_p0 = scmp.ne.s32.totalorder %s4739_s27, %s4735_s26 }
   0xc   : > { %p311_p1 = scmp.eq.s32.totalorder %s310_s16, 0  ;;  %p324_p2 = scmp.eq.s32.totalorder %s4852_s29, 1 }
   0xd   : > { %p329_p3 = scmp.ne.s32.totalorder %s4735_s26, %s4731_s25  ;;  %p330_p4 = scmp.eq.s32.totalorder %s4089_s30, 1 }
   0xe   : > { %s4867_s17 = scalar_select %p311_p1, %s4739_s27, %s313_s15  }
   0xf   : > { %p4869_p5 = por %p324_p2, %p323_p0  ;;  %p4873_p6 = por %p330_p4, %p329_p3 }
  0x10   : > { %6301 = sst [smem:[#allocation15_spill]] %s4867_s17  ;;  %p4090_p7 = scmp.ge.s32.totalorder %s4743_s28, 1 }
  0x11   : > { %s6302_s18 = scalar_select %p4869_p5, 1, 0 }
  0x12   : > { %s6303_s19 = scalar_select %p4873_p6, 1, 0 }
  0x13   : > { %p337_p8 = scmp.lt.s32.totalorder %s4743_s28, 3  ;;  %p6290_p9 = scmp.eq.s32.totalorder %s4852_s29, 0 }
  0x14   : > { %6304 = sst [smem:[#allocation16_spill]] %s6303_s19  ;;  %s4745_s21 = smov [#allocation2]  }
  0x15   : > { %p4880_p10 = pnand %p4090_p7, %p337_p8  ;;  %s358_s22 = sshll.u32 %s4745_s21, 4  ;;  %s359_s22 = int_to_ptr.vmem [resolvable:$true] %s358_s22 }
  0x16   : > { %s4746_s24 = smov [#allocation5]   ;;  %s4617_s17 = scalar_lea.hbm %s6276_s4, 4608 }
  0x17   : > { %s6305_s20 = scalar_select %p4880_p10, 1, 0 }
  0x18   : > { %p4532_p11 = pneg %p4880_p10  ;;  %s380_s30 = sshll.u32 %s4746_s24, 4  ;;  %s4892_s30 = int_to_ptr.vmem [resolvable:$true] %s380_s30 }
  0x19   : > { %p4618_p13 = scmp.ne.s32.totalorder %s6276_s4, %s4617_s17  ;;  %p4624_p3 = scmp.lt.u32.totalorder %s4617_s17, %s6276_s4 }
  0x1a   : > { %p4888_p12 = pnand %p6290_p9, %p4532_p11 }
  0x1c   : > { %p4619_p0 = pneg %p4888_p12 }
  0x1e   : > { %p4620_p1 = pnand %p4619_p0, %p4618_p13 }
  0x20   : > { %p4621_p2 = pneg %p4620_p1 }
  0x22   : > { %p4626_p4 = pnand %p4624_p3, %p4621_p2 }
  0x24   : > { %4629 = shalt.err (!%p4626_p4)
}
  0x25   : > { %s4630_s24 = scalar_lea.vmem %s359_s22, 4608  ;;  %p4638_p9 = scmp.lt.s32.totalorder %s359_s22, %s359_s22 }
  0x26   : > { %p4631_p7 = scmp.ne.s32.totalorder %s359_s22, %s4630_s24  ;;  %p4639_p6 = scmp.lt.s32.totalorder %s4630_s24, %s4630_s24 }
  0x28   : > { %p4633_p8 = pnand %p4631_p7, %p4619_p0  ;;  %p4640_p5 = por %p4639_p6, %p4638_p9 }
  0x2a   : > { %p4634_p11 = pneg %p4633_p8 }
  0x2c   : > { %p4641_p10 = pnand %p4640_p5, %p4634_p11 }
  0x2e   : > { %4644 = shalt.err (!%p4641_p10)
}
  0x2f   : > { %s4747_s27 = smov 128   ;;  %s4748_s15 = smov 8  }
  0x30   : > { %4535 = dma.hbm_to_vmem [thread:$0]  (!%p4888_p12), %s6276_s4, 4608, %s359_s22, [#allocation3], %s4747_s27, %s4747_s27, %s4748_s15  }
  0x31   : > { %s4645_s21 = scalar_lea.hbm %s6280_s8, 4608 }
  0x32   : > { %p4646_p13 = scmp.ne.s32.totalorder %s6280_s8, %s4645_s21  ;;  %p4652_p9 = scmp.lt.u32.totalorder %s4645_s21, %s6280_s8 }
  0x34   : > { %p4648_p5 = pnand %p4646_p13, %p4619_p0 }
  0x36   : > { %p4649_p6 = pneg %p4648_p5 }
  0x38   : > { %p4654_p10 = pnand %p4652_p9, %p4649_p6 }
  0x3a   : > { %4657 = shalt.err (!%p4654_p10)
}
  0x3b   : > { %s4658_s22 = scalar_lea.vmem %s4892_s30, 4608  ;;  %p4666_p4 = scmp.lt.s32.totalorder %s4892_s30, %s4892_s30 }
  0x3c   : > { %p4659_p1 = scmp.ne.s32.totalorder %s4892_s30, %s4658_s22  ;;  %p4667_p7 = scmp.lt.s32.totalorder %s4658_s22, %s4658_s22 }
  0x3e   : > { %p4661_p2 = pnand %p4659_p1, %p4619_p0  ;;  %p4668_p8 = por %p4667_p7, %p4666_p4 }
  0x40   : > { %p4662_p3 = pneg %p4661_p2 }
  0x42   : > { %p4669_p11 = pnand %p4668_p8, %p4662_p3 }
  0x44   : > { %4672 = shalt.err (!%p4669_p11)
}
  0x45   : > { %4538 = dma.hbm_to_vmem [thread:$0]  (!%p4888_p12), %s6280_s8, 4608, %s4892_s30, [#allocation6], %s4747_s27, %s4747_s27, %s4748_s15  }
  0x46   : > { %p6307_p13 = scmp.ne.s32.totalorder %s6305_s20, 0 }
  0x47   : > { %p6308_p5 = scmp.eq.s32.totalorder (!%p6307_p13), %s4852_s29, 0 }
  0x48   : > { %416 = sbr.rel (%p6307_p13) target bundleno = 1915 (0x77b), region = 72 }
  0x4f   : > { %4718 = dma.done.wait (%p6308_p5), [#allocation3], 4608   ;;  %p6309_p0 = pmov %p6308_p5 }
  0x51   : > { %4720 = vsyncadd (%p6309_p0), [#allocation3], 4294962688  ;;  %p6310_p6 = pmov %p6309_p0 }
  0x52   : > { %p6311_p9 = pmov %p6309_p0 }
  0x53   : > { %4722 = dma.done.wait (%p6310_p6), [#allocation6], 4608  }
  0x54   : > { %4724 = vsyncadd (%p6311_p9), [#allocation6], 4294962688  ;;  %p464_p10 = scmp.lt.s32.totalorder %s4852_s29, 1  ;;  %v4749_v0 = vmov 0.0   ;;  %s4750_s15 = smov 16   ;;  %v479_v13 = vld [vmem:[%s6274_s2 + $0x10] sm:$0xff]  ;;  %v623_v15 = vlaneseq }
  0x55   : > { %594 = vmatprep.mubr.f32.mxu1 %v4749_v0  ;;  %582 = vmatprep.mubr.f32.mxu0 %v4749_v0  ;;  %vm505_vm0 = vcmask 261120   ;;  %v480_v14 = vld [vmem:[%s6274_s2 + $0x18] sm:$0xff]  ;;  %s4751_s21 = smov 17   ;;  %s4752_s24 = smov 15   ;;  %v4104_v20 = vld [vmem:[%s6273_s1 + $0x2] sm:$0x3] }
  0x56   : > { %s465_s28 = scalar_select %p464_p10, %s4852_s29, 1  ;;  %v637_v16 = vshrl.u32 %v623_v15, 7  ;;  %v5120_v17 = vand.u32 127, %v623_v15  ;;  %v634_v49 = vld [vmem:[%s6273_s1] sm:$0x3] }
  0x57   : > { %s4753_s22 = smov 1   ;;  %s4754_s13 = smov 127   ;;  %v705_v56 = vld [vmem:[#allocation2 + $0x20] sm:$0xff] }
  0x58   : > { %s4204_s20 = sshll.u32 %s465_s28, 6  ;;  %s4755_s25 = smov 113   ;;  %v5122_v18 = vsub.s32 0, %v637_v16  ;;  %v5124_v19 = vsub.s32 1, %v637_v16  ;;  %vm674_vm1 = vcmp.lt.s32.totalorder %v5120_v17, 16  ;;  %vm625_vm2 = vcmp.lt.s32.totalorder %v5120_v17, 17 }
  0x59   : > { %s468_s27 = scalar_lea.vmem %s6272_s0, %s4204_s20  ;;  %s4756_s28 = smov 112   ;;  %vm927_vm3 = vcmp.lt.s32.totalorder %v5120_v17, 15  ;;  %vm1087_vm4 = vcmp.lt.s32.totalorder %v5120_v17, 1  ;;  %vm1361_vm5 = vcmp.lt.s32.totalorder %v5120_v17, 127  ;;  %vm1521_vm6 = vcmp.lt.s32.totalorder %v5120_v17, 113 }
  0x5a   : > { %v4958_v1 = vld [vmem:[%s468_s27 + $0x8] sm:$0xff]  ;;  %v4960_v2 = vld [vmem:[%s468_s27] sm:$0xff]  ;;  %v4962_v3 = vld [vmem:[%s468_s27 + $0x18] sm:$0xff]  ;;  %s4757_s30 = smov 111   ;;  %v5135_v23 = vrot.slane %v4104_v20, %v5122_v18  ;;  %v5138_v24 = vrot.slane %v4104_v20, %v5124_v19  ;;  %v5181_v54 = vrot.slane %v634_v49, %v5122_v18  ;;  %v5184_v55 = vrot.slane %v634_v49, %v5124_v19  ;;  %s461_s23 = sand.u32 1, %s4735_s26  }
  0x5b   : > { %666 = vrot.lane.b32.xlu1 %v4958_v1, %s4750_s15  ;;  %658 = vrot.lane.b32.xlu0 %v4960_v2, %s4750_s15  ;;  %v4968_v4 = vld [vmem:[%s468_s27 + $0x10] sm:$0xff]  ;;  %v4972_v5 = vpack.c.bf16 %v4962_v3, %v4958_v1  ;;  %v4974_v6 = vld [vmem:[%s468_s27 + $0x38] sm:$0xff]  ;;  %vm1681_vm7 = vcmp.lt.s32.totalorder %v5120_v17, 112  ;;  %vm1841_vm8 = vcmp.lt.s32.totalorder %v5120_v17, 111  ;;  %p6314_p1 = scmp.ne.s32.totalorder %s6302_s18, 0  ;;  %s4759_s19 = smov [#allocation7]  }
  0x5c   : > { %v4976_v7 = vld [vmem:[%s468_s27 + $0x28] sm:$0xff]  ;;  %v4980_v8 = vpack.c.bf16 %v4968_v4, %v4960_v2  ;;  %v4982_v9 = vld [vmem:[%s468_s27 + $0x30] sm:$0xff]  ;;  %v4984_v10 = vld [vmem:[%s468_s27 + $0x20] sm:$0xff]  ;;  %s4097_s27 = sshll.u32 %s461_s23, 6  ;;  %s4677_s16 = sshll.u32 %s4759_s19, 4  ;;  %s4678_s16 = int_to_ptr.vmem [resolvable:$false] %s4677_s16 }
  0x5d   : > { %4390 = vmatprep.subr.bf16.mxu1 %v4972_v5  ;;  %v4989_v11 = vpack.c.bf16 %v4974_v6, %v4976_v7  ;;  %4207 = vmatprep.subr.bf16.mxu0 %v4972_v5  ;;  %v4995_v12 = vpack.c.bf16 %v4982_v9, %v4984_v10  ;;  %v3364_v17 = vld [vmem:[#allocation5 + $0xf0] sm:$0xff]  ;;  %s4679_s20 = scalar_lea.vmem %s4678_s16, 2048 }
  0x5e   : > { %4392 = vmatpush1.bf16.msra.mxu1 %v4980_v8  ;;  %4209 = vmatpush1.bf16.msra.mxu0 %v4980_v8 }
  0x5f   : > { %668 = vrot.lane.b32.xlu1 %v4962_v3, %s4750_s15  ;;  %660 = vrot.lane.b32.xlu0 %v4968_v4, %s4750_s15 }
  0x60   : > { %4391 = vmatprep.subr.bf16.mxu1 %v4989_v11  ;;  %4211 = vmatprep.subr.bf16.mxu0 %v4989_v11 }
  0x62   : > { %4393 = vmatpush1.bf16.msra.mxu1 %v4995_v12  ;;  %4213 = vmatpush1.bf16.msra.mxu0 %v4995_v12 }
  0x63   : > { %664 = vrot.lane.b32.xlu1 %v4982_v9, %s4750_s15  ;;  %662 = vrot.lane.b32.xlu0 %v4984_v10, %s4750_s15 }
  0x65   : > { %4102 = vmatmul.mubr.msk.f32.vlgmr.msra.gmra.mrb[0].mxu1 %vm505_vm0, %v479_v13  ;;  %v707_v13 = vld [vmem:[#allocation2 + $0x30] sm:$0xff] }
  0x66   : > { %600 = vmatprep.mubr.f32.mxu1 %v4749_v0 }
  0x67   : > { %672 = vrot.lane.b32.xlu1 %v4974_v6, %s4750_s15  ;;  %670 = vrot.lane.b32.xlu0 %v4976_v7, %s4750_s15 }
  0x69   : > { %4103 = vmatmul.mubr.msk.f32.gmra.mrb[2].mxu1 %vm505_vm0, %v480_v14 }
  0x6a   : > { %785 = vmatprep.mubr.f32.mxu1 %v4749_v0 }
  0x6b   : > { %609 = vrot.lane.b32.xlu1 %v4968_v4, %s4751_s21  ;;  %607 = vrot.lane.b32.xlu0 %v4960_v2, %s4751_s21 }
  0x6f   : > { %617 = vrot.lane.b32.xlu1 %v4962_v3, %s4751_s21  ;;  %615 = vrot.lane.b32.xlu0 %v4958_v1, %s4751_s21 }
  0x73   : > { %613 = vrot.lane.b32.xlu1 %v4982_v9, %s4751_s21  ;;  %611 = vrot.lane.b32.xlu0 %v4984_v10, %s4751_s21 }
  0x77   : > { %621 = vrot.lane.b32.xlu1 %v4974_v6, %s4751_s21  ;;  %619 = vrot.lane.b32.xlu0 %v4976_v7, %s4751_s21 }
  0x7b   : > { %913 = vrot.lane.b32.xlu1 %v4968_v4, %s4752_s24  ;;  %911 = vrot.lane.b32.xlu0 %v4960_v2, %s4752_s24 }
  0x7f   : > { %921 = vrot.lane.b32.xlu1 %v4962_v3, %s4752_s24  ;;  %919 = vrot.lane.b32.xlu0 %v4958_v1, %s4752_s24 }
  0x83   : > { %917 = vrot.lane.b32.xlu1 %v4982_v9, %s4752_s24  ;;  %915 = vrot.lane.b32.xlu0 %v4984_v10, %s4752_s24 }
  0x87   : > { %925 = vrot.lane.b32.xlu1 %v4974_v6, %s4752_s24  ;;  %923 = vrot.lane.b32.xlu0 %v4976_v7, %s4752_s24 }
  0x8b   : > { %1073 = vrot.lane.b32.xlu1 %v4968_v4, %s4753_s22  ;;  %1071 = vrot.lane.b32.xlu0 %v4960_v2, %s4753_s22 }
  0x8f   : > { %1081 = vrot.lane.b32.xlu1 %v4962_v3, %s4753_s22  ;;  %1079 = vrot.lane.b32.xlu0 %v4958_v1, %s4753_s22 }
  0x93   : > { %1077 = vrot.lane.b32.xlu1 %v4982_v9, %s4753_s22  ;;  %1075 = vrot.lane.b32.xlu0 %v4984_v10, %s4753_s22 }
  0x97   : > { %1085 = vrot.lane.b32.xlu1 %v4974_v6, %s4753_s22  ;;  %1083 = vrot.lane.b32.xlu0 %v4976_v7, %s4753_s22 }
  0x9b   : > { %1347 = vrot.lane.b32.xlu1 %v4968_v4, %s4754_s13  ;;  %1345 = vrot.lane.b32.xlu0 %v4960_v2, %s4754_s13 }
  0x9f   : > { %1355 = vrot.lane.b32.xlu1 %v4962_v3, %s4754_s13  ;;  %1353 = vrot.lane.b32.xlu0 %v4958_v1, %s4754_s13 }
  0xa3   : > { %1351 = vrot.lane.b32.xlu1 %v4982_v9, %s4754_s13  ;;  %1349 = vrot.lane.b32.xlu0 %v4984_v10, %s4754_s13 }
  0xa7   : > { %1359 = vrot.lane.b32.xlu1 %v4974_v6, %s4754_s13  ;;  %1357 = vrot.lane.b32.xlu0 %v4976_v7, %s4754_s13 }
  0xab   : > { %1507 = vrot.lane.b32.xlu1 %v4968_v4, %s4755_s25  ;;  %1505 = vrot.lane.b32.xlu0 %v4960_v2, %s4755_s25 }
  0xaf   : > { %1515 = vrot.lane.b32.xlu1 %v4962_v3, %s4755_s25  ;;  %1513 = vrot.lane.b32.xlu0 %v4958_v1, %s4755_s25 }
  0xb3   : > { %1511 = vrot.lane.b32.xlu1 %v4982_v9, %s4755_s25  ;;  %1509 = vrot.lane.b32.xlu0 %v4984_v10, %s4755_s25 }
  0xb7   : > { %1519 = vrot.lane.b32.xlu1 %v4974_v6, %s4755_s25  ;;  %1517 = vrot.lane.b32.xlu0 %v4976_v7, %s4755_s25 }
  0xbb   : > { %1667 = vrot.lane.b32.xlu1 %v4968_v4, %s4756_s28  ;;  %1665 = vrot.lane.b32.xlu0 %v4960_v2, %s4756_s28 }
  0xbf   : > { %1675 = vrot.lane.b32.xlu1 %v4962_v3, %s4756_s28  ;;  %1673 = vrot.lane.b32.xlu0 %v4958_v1, %s4756_s28 }
  0xc3   : > { %1671 = vrot.lane.b32.xlu1 %v4982_v9, %s4756_s28  ;;  %1669 = vrot.lane.b32.xlu0 %v4984_v10, %s4756_s28 }
  0xc7   : > { %1679 = vrot.lane.b32.xlu1 %v4974_v6, %s4756_s28  ;;  %1677 = vrot.lane.b32.xlu0 %v4976_v7, %s4756_s28 }
  0xcb   : > { %1827 = vrot.lane.b32.xlu1 %v4968_v4, %s4757_s30  ;;  %1825 = vrot.lane.b32.xlu0 %v4960_v2, %s4757_s30  ;;  %v706_v4 = vld [vmem:[#allocation2 + $0x28] sm:$0xff] }
  0xcd   : > { %v667_v21 = vpop.permute.xlu1 %666  ;;  %v659_v22 = vpop.permute.xlu0 %658 }
  0xce   : > { %v679_v25 = vsel %vm674_vm1, %v667_v21, %v659_v22  ;;  %v675_v26 = vsel %vm674_vm1, %v659_v22, %v667_v21 }
  0xcf   : > { %1835 = vrot.lane.b32.xlu1 %v4962_v3, %s4757_s30  ;;  %1833 = vrot.lane.b32.xlu0 %v4958_v1, %s4757_s30  ;;  %v696_v29 = vmul.f32 %v5135_v23, %v679_v25  ;;  %v697_v32 = vmul.f32 %v5138_v24, %v675_v26 }
  0xd1   : > { %v669_v27 = vpop.permute.xlu1 %668  ;;  %v661_v28 = vpop.permute.xlu0 %660 }
  0xd2   : > { %v676_v30 = vsel %vm674_vm1, %v661_v28, %v669_v27  ;;  %v680_v31 = vsel %vm674_vm1, %v669_v27, %v661_v28 }
  0xd3   : > { %v698_v33 = vmul.f32 %v5135_v23, %v680_v31  ;;  %v699_v34 = vmul.f32 %v5138_v24, %v676_v30  ;;  %1831 = vrot.lane.b32.xlu1 %v4982_v9, %s4757_s30  ;;  %1829 = vrot.lane.b32.xlu0 %v4984_v10, %s4757_s30  ;;  %v4113_v30 = vld [vmem:[%s6273_s1 + $0x4] sm:$0x3] }
  0xd5   : > { %v4216_v35 = vpack.c.bf16 %v698_v33, %v696_v29  ;;  %v665_v36 = vpop.permute.xlu1 %664  ;;  %v663_v37 = vpop.permute.xlu0 %662  ;;  %v4214_v38 = vpack.c.bf16 %v699_v34, %v697_v32  ;;  %v708_v29 = vld [vmem:[#allocation2 + $0x38] sm:$0xff] }
  0xd7   : > { %4215 = vmatprep.subr.bf16.mxu1 %v4214_v38  ;;  %1839 = vrot.lane.b32.xlu1 %v4974_v6, %s4757_s30  ;;  %v654_v38 = vld [vmem:[#allocation2] sm:$0xff] }
  0xd8   : > { %4217 = vmatpush1.bf16.msra.mxu1 %v4216_v35  ;;  %1837 = vrot.lane.b32.xlu0 %v4976_v7, %s4757_s30  ;;  %v5222_v35 = vrot.slane %v4113_v30, %v5122_v18 }
  0xd9   : > { %v673_v39 = vpop.permute.xlu1 %672  ;;  %v671_v40 = vpop.permute.xlu0 %670 }
  0xda   : > { %v678_v41 = vsel %vm674_vm1, %v665_v36, %v673_v39  ;;  %v682_v42 = vsel %vm674_vm1, %v673_v39, %v665_v36  ;;  %v677_v43 = vsel %vm674_vm1, %v663_v37, %v671_v40  ;;  %v681_v44 = vsel %vm674_vm1, %v671_v40, %v663_v37  ;;  %v1986_v37 = vld [vmem:[%s6277_s5 + $0x8] sm:$0xff] }
  0xdb   : > { %v702_v45 = vmul.f32 %v5135_v23, %v682_v42  ;;  %v703_v46 = vmul.f32 %v5138_v24, %v678_v41  ;;  %v700_v47 = vmul.f32 %v5135_v23, %v681_v44  ;;  %v701_v48 = vmul.f32 %v5138_v24, %v677_v43  ;;  %v1985_v42 = vld [vmem:[%s6277_s5] sm:$0xff] }
  0xdc   : > { %v5225_v36 = vrot.slane %v4113_v30, %v5124_v19  ;;  %v4758_v41 = vmov 0   ;;  %v958_v30 = vld [vmem:[#allocation2 + $0x40] sm:$0xff] }
  0xdd   : > { %v4220_v50 = vpack.c.bf16 %v702_v45, %v700_v47  ;;  %v610_v51 = vpop.permute.xlu1 %609  ;;  %v608_v52 = vpop.permute.xlu0 %607  ;;  %v4218_v53 = vpack.c.bf16 %v703_v46, %v701_v48  ;;  %4596 = vset.pattern.permute.xlu1 %v4758_v41  ;;  %4595 = vset.pattern.permute.xlu0 %v4758_v41 }
  0xde   : > { %1996 = vperm.xlu1 %4596, %v1986_v37   ;;  %1991 = vperm.xlu0 %4595, %v1985_v42  }
  0xdf   : > { %4219 = vmatprep.subr.bf16.mxu1 %v4218_v53 }
  0xe0   : > { %4221 = vmatpush1.bf16.msra.mxu1 %v4220_v50 }
  0xe1   : > { %v618_v57 = vpop.permute.xlu1 %617  ;;  %v616_v58 = vpop.permute.xlu0 %615 }
  0xe2   : > { %v627_v59 = vsel %vm625_vm2, %v610_v51, %v618_v57  ;;  %v631_v60 = vsel %vm625_vm2, %v618_v57, %v610_v51  ;;  %v626_v61 = vsel %vm625_vm2, %v608_v52, %v616_v58  ;;  %v630_v62 = vsel %vm625_vm2, %v616_v58, %v608_v52  ;;  %v1987_v51 = vld [vmem:[%s6277_s5 + $0x10] sm:$0xff]  ;;  %v655_v52 = vld [vmem:[#allocation2 + $0x8] sm:$0xff] }
  0xe3   : > { %v648_v63 = vmul.f32 %v5181_v54, %v631_v60  ;;  %v649_v1 = vmul.f32 %v5184_v55, %v627_v59  ;;  %v646_v2 = vmul.f32 %v5181_v54, %v630_v62  ;;  %v647_v3 = vmul.f32 %v5184_v55, %v626_v61  ;;  %4105 = vmatmul.mubr.msk.f32.vlgmr.msra.gmra.mrb[4].mxu1 %vm505_vm0, %v705_v56  ;;  %v1988_v59 = vld [vmem:[%s6277_s5 + $0x18] sm:$0xff]  ;;  %v2285_v60 = vld [vmem:[%s6278_s6 + $0x8] sm:$0xff]  ;;  %v656_v61 = vld [vmem:[#allocation2 + $0x10] sm:$0xff] }
  0xe4   : > { %791 = vmatprep.mubr.f32.mxu1 %v4749_v0  ;;  %2001 = vperm.xlu1 %4596, %v1987_v51  }
  0xe5   : > { %v4224_v6 = vpack.c.bf16 %v648_v63, %v646_v2  ;;  %v614_v7 = vpop.permute.xlu1 %613  ;;  %v612_v9 = vpop.permute.xlu0 %611  ;;  %v4222_v10 = vpack.c.bf16 %v649_v1, %v647_v3  ;;  %2006 = vperm.xlu0 %4595, %v1988_v59  }
  0xe7   : > { %4106 = vmatmul.mubr.msk.f32.gmra.mrb[6].mxu1 %vm505_vm0, %v706_v4  ;;  %4223 = vmatprep.subr.bf16.mxu1 %v4222_v10 }
  0xe8   : > { %4225 = vmatpush1.bf16.msra.mxu1 %v4224_v6  ;;  %797 = vmatprep.mubr.f32.mxu1 %v4749_v0  ;;  %v2284_v6 = vld [vmem:[%s6278_s6] sm:$0xff] }
  0xe9   : > { %v622_v14 = vpop.permute.xlu1 %621  ;;  %v620_v15 = vpop.permute.xlu0 %619  ;;  %2295 = vperm.xlu1 %4596, %v2285_v60   ;;  %2290 = vperm.xlu0 %4595, %v2284_v6  }
  0xea   : > { %v629_v16 = vsel %vm625_vm2, %v614_v7, %v622_v14  ;;  %v633_v20 = vsel %vm625_vm2, %v622_v14, %v614_v7  ;;  %v628_v21 = vsel %vm625_vm2, %v612_v9, %v620_v15  ;;  %v632_v22 = vsel %vm625_vm2, %v620_v15, %v612_v9  ;;  %v2316_v14 = vld [vmem:[%s6279_s7] sm:$0xff]  ;;  %v657_v15 = vld [vmem:[#allocation2 + $0x18] sm:$0xff] }
  0xeb   : > { %v652_v25 = vmul.f32 %v5181_v54, %v633_v20  ;;  %v653_v26 = vmul.f32 %v5184_v55, %v629_v16  ;;  %v650_v27 = vmul.f32 %v5181_v54, %v632_v22  ;;  %v651_v28 = vmul.f32 %v5184_v55, %v628_v21  ;;  %4107 = vmatmul.mubr.msk.f32.gmra.mrb[8].mxu1 %vm505_vm0, %v707_v13  ;;  %v4118_v16 = vld [vmem:[%s6273_s1 + $0x6] sm:$0x3] }
  0xec   : > { %803 = vmatprep.mubr.f32.mxu1 %v4749_v0 }
  0xed   : > { %v4228_v31 = vpack.c.bf16 %v652_v25, %v650_v27  ;;  %v914_v32 = vpop.permute.xlu1 %913  ;;  %v912_v33 = vpop.permute.xlu0 %911  ;;  %v4226_v34 = vpack.c.bf16 %v653_v26, %v651_v28  ;;  %2322 = vperm.xlu1 %4596, %v2316_v14   ;;  %v2317_v26 = vld [vmem:[%s6279_s7 + $0x8] sm:$0xff]  ;;  %v5288_v27 = vrot.slane %v4118_v16, %v5122_v18  ;;  %v5291_v28 = vrot.slane %v4118_v16, %v5124_v19 }
  0xee   : > { %2327 = vperm.xlu0 %4595, %v2317_v26  }
  0xef   : > { %4108 = vmatmul.mubr.msk.f32.gmra.mrb[10].mxu1 %vm505_vm0, %v708_v29  ;;  %4227 = vmatprep.subr.bf16.mxu1 %v4226_v34  ;;  %v2286_v29 = vld [vmem:[%s6278_s6 + $0x10] sm:$0xff] }
  0xf0   : > { %4229 = vmatpush1.bf16.msra.mxu1 %v4228_v31  ;;  %886 = vmatprep.mubr.f32.mxu1 %v4749_v0 }
  0xf1   : > { %v922_v39 = vpop.permute.xlu1 %921  ;;  %v920_v40 = vpop.permute.xlu0 %919  ;;  %2300 = vperm.xlu1 %4596, %v2286_v29  }
  0xf2   : > { %v929_v43 = vsel %vm927_vm3, %v914_v32, %v922_v39  ;;  %v933_v44 = vsel %vm927_vm3, %v922_v39, %v914_v32  ;;  %v928_v45 = vsel %vm927_vm3, %v912_v33, %v920_v40  ;;  %v932_v46 = vsel %vm927_vm3, %v920_v40, %v912_v33  ;;  %v2287_v39 = vld [vmem:[%s6278_s6 + $0x18] sm:$0xff] }
  0xf3   : > { %v951_v47 = vmul.f32 %v5222_v35, %v933_v44  ;;  %v952_v48 = vmul.f32 %v5225_v36, %v929_v43  ;;  %v949_v49 = vmul.f32 %v5222_v35, %v932_v46  ;;  %v950_v50 = vmul.f32 %v5225_v36, %v928_v45  ;;  %4109 = vmatmul.mubr.msk.f32.vlgmr.msra.gmra.mrb[4].mxu1 %vm505_vm0, %v654_v38  ;;  %v959_v44 = vld [vmem:[#allocation2 + $0x48] sm:$0xff] }
  0xf4   : > { %892 = vmatprep.mubr.f32.mxu1 %v4749_v0  ;;  %2305 = vperm.xlu0 %4595, %v2287_v39  }
  0xf5   : > { %v4232_v53 = vpack.c.bf16 %v951_v47, %v949_v49  ;;  %v918_v56 = vpop.permute.xlu1 %917  ;;  %v916_v57 = vpop.permute.xlu0 %915  ;;  %v4230_v58 = vpack.c.bf16 %v952_v48, %v950_v50  ;;  %v960_v49 = vld [vmem:[#allocation2 + $0x50] sm:$0xff] }
  0xf7   : > { %4110 = vmatmul.mubr.msk.f32.gmra.mrb[6].mxu1 %vm505_vm0, %v655_v52  ;;  %4231 = vmatprep.subr.bf16.mxu1 %v4230_v58 }
  0xf8   : > { %4233 = vmatpush1.bf16.msra.mxu1 %v4232_v53  ;;  %898 = vmatprep.mubr.f32.mxu1 %v4749_v0 }
  0xf9   : > { %v926_v62 = vpop.permute.xlu1 %925  ;;  %v924_v63 = vpop.permute.xlu0 %923 }
  0xfa   : > { %v931_v1 = vsel %vm927_vm3, %v918_v56, %v926_v62  ;;  %v935_v2 = vsel %vm927_vm3, %v926_v62, %v918_v56  ;;  %v930_v3 = vsel %vm927_vm3, %v916_v57, %v924_v63  ;;  %v934_v4 = vsel %vm927_vm3, %v924_v63, %v916_v57  ;;  %v961_v62 = vld [vmem:[#allocation2 + $0x58] sm:$0xff]  ;;  %v4127_v63 = vld [vmem:[%s6273_s1 + $0xa] sm:$0x3] }
  0xfb   : > { %v955_v7 = vmul.f32 %v5222_v35, %v935_v2  ;;  %v956_v9 = vmul.f32 %v5225_v36, %v931_v1  ;;  %v953_v10 = vmul.f32 %v5222_v35, %v934_v4  ;;  %v954_v13 = vmul.f32 %v5225_v36, %v930_v3  ;;  %4111 = vmatmul.mubr.msk.f32.gmra.mrb[8].mxu1 %vm505_vm0, %v656_v61 }
  0xfc   : > { %904 = vmatprep.mubr.f32.mxu1 %v4749_v0  ;;  %v5336_v6 = vrot.slane %v4127_v63, %v5124_v19  ;;  %v5353_v26 = vrot.slane %v4127_v63, %v5122_v18  ;;  %v1234_v63 = vld [vmem:[#allocation2 + $0x90] sm:$0xff] }
  0xfd   : > { %v4236_v20 = vpack.c.bf16 %v955_v7, %v953_v10  ;;  %v1074_v21 = vpop.permute.xlu1 %1073  ;;  %v1072_v22 = vpop.permute.xlu0 %1071  ;;  %v4234_v25 = vpack.c.bf16 %v956_v9, %v954_v13  ;;  %v1118_v7 = vld [vmem:[#allocation2 + $0x60] sm:$0xff] }
  0xff   : > { %4112 = vmatmul.mubr.msk.f32.gmra.mrb[10].mxu1 %vm505_vm0, %v657_v15  ;;  %4235 = vmatprep.subr.bf16.mxu1 %v4234_v25  ;;  %v1120_v25 = vld [vmem:[#allocation2 + $0x70] sm:$0xff] }
 0x100   : > { %4237 = vmatpush1.bf16.msra.mxu1 %v4236_v20  ;;  %1038 = vmatprep.mubr.f32.mxu1 %v4749_v0  ;;  %v1119_v20 = vld [vmem:[#allocation2 + $0x68] sm:$0xff] }
 0x101   : > { %v1082_v31 = vpop.permute.xlu1 %1081  ;;  %v1080_v32 = vpop.permute.xlu0 %1079 }
 0x102   : > { %v1089_v33 = vsel %vm1087_vm4, %v1074_v21, %v1082_v31  ;;  %v1093_v34 = vsel %vm1087_vm4, %v1082_v31, %v1074_v21  ;;  %v1088_v37 = vsel %vm1087_vm4, %v1072_v22, %v1080_v32  ;;  %v1092_v38 = vsel %vm1087_vm4, %v1080_v32, %v1072_v22 }
 0x103   : > { %v1111_v40 = vmul.f32 %v5288_v27, %v1093_v34  ;;  %v1112_v41 = vmul.f32 %v5291_v28, %v1089_v33  ;;  %v1109_v42 = vmul.f32 %v5288_v27, %v1092_v38  ;;  %v1110_v43 = vmul.f32 %v5291_v28, %v1088_v37  ;;  %4114 = vmatmul.mubr.msk.f32.vlgmr.msra.gmra.mrb[4].mxu1 %vm505_vm0, %v958_v30  ;;  %v1121_v34 = vld [vmem:[#allocation2 + $0x78] sm:$0xff]  ;;  %v4132_v37 = vld [vmem:[%s6273_s1 + $0xc] sm:$0x3] }
 0x104   : > { %1044 = vmatprep.mubr.f32.mxu1 %v4749_v0 }
 0x105   : > { %v4240_v45 = vpack.c.bf16 %v1111_v40, %v1109_v42  ;;  %v1078_v46 = vpop.permute.xlu1 %1077  ;;  %v1076_v47 = vpop.permute.xlu0 %1075  ;;  %v4238_v48 = vpack.c.bf16 %v1112_v41, %v1110_v43 }
 0x107   : > { %4115 = vmatmul.mubr.msk.f32.gmra.mrb[6].mxu1 %vm505_vm0, %v959_v44  ;;  %4239 = vmatprep.subr.bf16.mxu1 %v4238_v48  ;;  %v5380_v44 = vrot.slane %v4132_v37, %v5124_v19 }
 0x108   : > { %4241 = vmatpush1.bf16.msra.mxu1 %v4240_v45  ;;  %1050 = vmatprep.mubr.f32.mxu1 %v4749_v0 }
 0x109   : > { %v1086_v50 = vpop.permute.xlu1 %1085  ;;  %v1084_v51 = vpop.permute.xlu0 %1083 }
 0x10a   : > { %v1091_v52 = vsel %vm1087_vm4, %v1078_v46, %v1086_v50  ;;  %v1095_v53 = vsel %vm1087_vm4, %v1086_v50, %v1078_v46  ;;  %v1090_v56 = vsel %vm1087_vm4, %v1076_v47, %v1084_v51  ;;  %v1094_v57 = vsel %vm1087_vm4, %v1084_v51, %v1076_v47  ;;  %v1232_v46 = vld [vmem:[#allocation2 + $0x80] sm:$0xff] }
 0x10b   : > { %v1115_v58 = vmul.f32 %v5288_v27, %v1095_v53  ;;  %v1116_v59 = vmul.f32 %v5291_v28, %v1091_v52  ;;  %v1113_v60 = vmul.f32 %v5288_v27, %v1094_v57  ;;  %v1114_v61 = vmul.f32 %v5291_v28, %v1090_v56  ;;  %4116 = vmatmul.mubr.msk.f32.gmra.mrb[8].mxu1 %vm505_vm0, %v960_v49 }
 0x10c   : > { %1056 = vmatprep.mubr.f32.mxu1 %v4749_v0 }
 0x10d   : > { %v4244_v1 = vpack.c.bf16 %v1115_v58, %v1113_v60  ;;  %v4242_v2 = vpack.c.bf16 %v1116_v59, %v1114_v61  ;;  %v1348_v3 = vpop.permute.xlu1 %1347  ;;  %v1346_v4 = vpop.permute.xlu0 %1345  ;;  %v1233_v59 = vld [vmem:[#allocation2 + $0x88] sm:$0xff] }
 0x10f   : > { %4117 = vmatmul.mubr.msk.f32.gmra.mrb[10].mxu1 %vm505_vm0, %v961_v62  ;;  %4243 = vmatprep.subr.bf16.mxu1 %v4242_v2 }
 0x110   : > { %4245 = vmatpush1.bf16.msra.mxu1 %v4244_v1  ;;  %1198 = vmatprep.mubr.f32.mxu1 %v4749_v0  ;;  %v5396_v1 = vrot.slane %v4132_v37, %v5122_v18 }
 0x111   : > { %4247 = vmatprep.subr.bf16.mxu1 %v4972_v5  ;;  %v1356_v9 = vpop.permute.xlu1 %1355  ;;  %v1354_v10 = vpop.permute.xlu0 %1353 }
 0x112   : > { %v1367_v13 = vsel %vm1361_vm5, %v1356_v9, %v1348_v3  ;;  %v1366_v14 = vsel %vm1361_vm5, %v1354_v10, %v1346_v4  ;;  %v1363_v29 = vsel %vm1361_vm5, %v1348_v3, %v1356_v9 }
 0x113   : > { %4119 = vmatmul.mubr.msk.f32.vlgmr.msra.gmra.mrb[4].mxu1 %vm505_vm0, %v1118_v7  ;;  %v1386_v15 = vmul.f32 %v5336_v6, %v1367_v13  ;;  %v1384_v16 = vmul.f32 %v5336_v6, %v1366_v14  ;;  %v1385_v33 = vmul.f32 %v5353_v26, %v1363_v29 }
 0x114   : > { %1204 = vmatprep.mubr.f32.mxu1 %v4749_v0  ;;  %4249 = vmatpush1.bf16.msra.mxu1 %v4980_v8  ;;  %v1362_v8 = vsel %vm1361_vm5, %v1346_v4, %v1354_v10 }
 0x115   : > { %4251 = vmatprep.subr.bf16.mxu1 %v4989_v11  ;;  %v1352_v5 = vpop.permute.xlu1 %1351  ;;  %v1350_v21 = vpop.permute.xlu0 %1349  ;;  %v4254_v22 = vpack.c.bf16 %v1386_v15, %v1384_v16  ;;  %v1235_v15 = vld [vmem:[#allocation2 + $0x98] sm:$0xff]  ;;  %v4137_v16 = vld [vmem:[%s6273_s1 + $0xe] sm:$0x3] }
 0x117   : > { %4120 = vmatmul.mubr.msk.f32.gmra.mrb[6].mxu1 %vm505_vm0, %v1119_v20 }
 0x118   : > { %1210 = vmatprep.mubr.f32.mxu1 %v4749_v0  ;;  %4253 = vmatpush1.bf16.msra.mxu1 %v4995_v12  ;;  %v1383_v12 = vmul.f32 %v5353_v26, %v1362_v8  ;;  %v5422_v8 = vrot.slane %v4137_v16, %v5124_v19 }
 0x119   : > { %4255 = vmatprep.subr.bf16.mxu1 %v4254_v22  ;;  %v1360_v11 = vpop.permute.xlu1 %1359  ;;  %v1358_v30 = vpop.permute.xlu0 %1357 }
 0x11a   : > { %v1369_v31 = vsel %vm1361_vm5, %v1360_v11, %v1352_v5  ;;  %v1368_v32 = vsel %vm1361_vm5, %v1358_v30, %v1350_v21  ;;  %v1365_v38 = vsel %vm1361_vm5, %v1352_v5, %v1360_v11  ;;  %v1364_v40 = vsel %vm1361_vm5, %v1350_v21, %v1358_v30  ;;  %v1392_v30 = vld [vmem:[#allocation2 + $0xa0] sm:$0xff] }
 0x11b   : > { %4121 = vmatmul.mubr.msk.f32.gmra.mrb[8].mxu1 %vm505_vm0, %v1120_v25  ;;  %v1390_v39 = vmul.f32 %v5336_v6, %v1369_v31  ;;  %v1388_v41 = vmul.f32 %v5336_v6, %v1368_v32  ;;  %v4256_v45 = vpack.c.bf16 %v1385_v33, %v1383_v12  ;;  %v1389_v47 = vmul.f32 %v5353_v26, %v1365_v38 }
 0x11c   : > { %1216 = vmatprep.mubr.f32.mxu1 %v4749_v0  ;;  %v1387_v48 = vmul.f32 %v5353_v26, %v1364_v40 }
 0x11d   : > { %v1508_v42 = vpop.permute.xlu1 %1507  ;;  %v1506_v43 = vpop.permute.xlu0 %1505  ;;  %v4258_v49 = vpack.c.bf16 %v1390_v39, %v1388_v41 }
 0x11e   : > { %v4260_v58 = vpack.c.bf16 %v1389_v47, %v1387_v48  ;;  %v1394_v47 = vld [vmem:[#allocation2 + $0xb0] sm:$0xff]  ;;  %v5438_v48 = vrot.slane %v4137_v16, %v5122_v18  ;;  %v1552_v16 = vld [vmem:[#allocation2 + $0xc0] sm:$0xff] }
 0x11f   : > { %4122 = vmatmul.mubr.msk.f32.gmra.mrb[10].mxu1 %vm505_vm0, %v1121_v34 }
 0x120   : > { %1312 = vmatprep.mubr.f32.mxu1 %v4749_v0 }
 0x121   : > { %v1516_v50 = vpop.permute.xlu1 %1515  ;;  %v1514_v51 = vpop.permute.xlu0 %1513 }
 0x122   : > { %v1527_v52 = vsel %vm1521_vm6, %v1516_v50, %v1508_v42  ;;  %v1526_v53 = vsel %vm1521_vm6, %v1514_v51, %v1506_v43  ;;  %v1523_v2 = vsel %vm1521_vm6, %v1508_v42, %v1516_v50  ;;  %v1522_v3 = vsel %vm1521_vm6, %v1506_v43, %v1514_v51  ;;  %v1393_v42 = vld [vmem:[#allocation2 + $0xa8] sm:$0xff] }
 0x123   : > { %4123 = vmatmul.mubr.msk.f32.vlgmr.msra.gmra.mrb[4].mxu1 %vm505_vm0, %v1232_v46  ;;  %v1546_v56 = vmul.f32 %v5380_v44, %v1527_v52  ;;  %v1544_v57 = vmul.f32 %v5380_v44, %v1526_v53  ;;  %v1545_v13 = vmul.f32 %v5396_v1, %v1523_v2  ;;  %v1543_v14 = vmul.f32 %v5396_v1, %v1522_v3 }
 0x124   : > { %4257 = vmatpush1.bf16.msra.mxu1 %v4256_v45  ;;  %1318 = vmatprep.mubr.f32.mxu1 %v4749_v0 }
 0x125   : > { %4259 = vmatprep.subr.bf16.mxu1 %v4258_v49  ;;  %v1512_v60 = vpop.permute.xlu1 %1511  ;;  %v1510_v61 = vpop.permute.xlu0 %1509  ;;  %v4262_v62 = vpack.c.bf16 %v1546_v56, %v1544_v57  ;;  %v4264_v11 = vpack.c.bf16 %v1545_v13, %v1543_v14 }
 0x127   : > { %4124 = vmatmul.mubr.msk.f32.gmra.mrb[6].mxu1 %vm505_vm0, %v1233_v59 }
 0x128   : > { %1324 = vmatprep.mubr.f32.mxu1 %v4749_v0  ;;  %4261 = vmatpush1.bf16.msra.mxu1 %v4260_v58 }
 0x129   : > { %4263 = vmatprep.subr.bf16.mxu1 %v4262_v62  ;;  %v1520_v4 = vpop.permute.xlu1 %1519  ;;  %v1518_v7 = vpop.permute.xlu0 %1517  ;;  %v4142_v62 = vld [vmem:[%s6273_s1 + $0x10] sm:$0x3] }
 0x12a   : > { %v1529_v9 = vsel %vm1521_vm6, %v1520_v4, %v1512_v60  ;;  %v1528_v10 = vsel %vm1521_vm6, %v1518_v7, %v1510_v61  ;;  %v1525_v20 = vsel %vm1521_vm6, %v1512_v60, %v1520_v4  ;;  %v1524_v21 = vsel %vm1521_vm6, %v1510_v61, %v1518_v7  ;;  %v1395_v61 = vld [vmem:[#allocation2 + $0xb8] sm:$0xff] }
 0x12b   : > { %4125 = vmatmul.mubr.msk.f32.gmra.mrb[8].mxu1 %vm505_vm0, %v1234_v63  ;;  %v1550_v5 = vmul.f32 %v5380_v44, %v1529_v9  ;;  %v1548_v22 = vmul.f32 %v5380_v44, %v1528_v10  ;;  %v1549_v31 = vmul.f32 %v5396_v1, %v1525_v20  ;;  %v1547_v32 = vmul.f32 %v5396_v1, %v1524_v21 }
 0x12c   : > { %1330 = vmatprep.mubr.f32.mxu1 %v4749_v0  ;;  %v5472_v14 = vrot.slane %v4142_v62, %v5124_v19 }
 0x12d   : > { %v1668_v25 = vpop.permute.xlu1 %1667  ;;  %v1666_v29 = vpop.permute.xlu0 %1665  ;;  %v4266_v33 = vpack.c.bf16 %v1550_v5, %v1548_v22  ;;  %v4268_v41 = vpack.c.bf16 %v1549_v31, %v1547_v32  ;;  %v1553_v32 = vld [vmem:[#allocation2 + $0xc8] sm:$0xff] }
 0x12f   : > { %4126 = vmatmul.mubr.msk.f32.gmra.mrb[10].mxu1 %vm505_vm0, %v1235_v15 }
 0x130   : > { %1472 = vmatprep.mubr.f32.mxu1 %v4749_v0 }
 0x131   : > { %v1676_v12 = vpop.permute.xlu1 %1675  ;;  %v1674_v34 = vpop.permute.xlu0 %1673 }
 0x132   : > { %v1687_v37 = vsel %vm1681_vm7, %v1676_v12, %v1668_v25  ;;  %v1686_v38 = vsel %vm1681_vm7, %v1674_v34, %v1666_v29  ;;  %v1683_v50 = vsel %vm1681_vm7, %v1668_v25, %v1676_v12  ;;  %v1682_v51 = vsel %vm1681_vm7, %v1666_v29, %v1674_v34 }
 0x133   : > { %4128 = vmatmul.mubr.msk.f32.vlgmr.msra.gmra.mrb[4].mxu1 %vm505_vm0, %v1392_v30  ;;  %v1706_v39 = vmul.f32 %v5422_v8, %v1687_v37  ;;  %v1704_v40 = vmul.f32 %v5422_v8, %v1686_v38  ;;  %v1705_v59 = vmul.f32 %v5438_v48, %v1683_v50  ;;  %v1703_v60 = vmul.f32 %v5438_v48, %v1682_v51  ;;  %v1554_v37 = vld [vmem:[#allocation2 + $0xd0] sm:$0xff] }
 0x134   : > { %4265 = vmatpush1.bf16.msra.mxu1 %v4264_v11  ;;  %1478 = vmatprep.mubr.f32.mxu1 %v4749_v0  ;;  %v5488_v38 = vrot.slane %v4142_v62, %v5122_v18 }
 0x135   : > { %4267 = vmatprep.subr.bf16.mxu1 %v4266_v33  ;;  %v1672_v43 = vpop.permute.xlu1 %1671  ;;  %v1670_v45 = vpop.permute.xlu0 %1669  ;;  %v4270_v46 = vpack.c.bf16 %v1706_v39, %v1704_v40  ;;  %v4272_v15 = vpack.c.bf16 %v1705_v59, %v1703_v60 }
 0x137   : > { %4129 = vmatmul.mubr.msk.f32.gmra.mrb[6].mxu1 %vm505_vm0, %v1393_v42 }
 0x138   : > { %1484 = vmatprep.mubr.f32.mxu1 %v4749_v0  ;;  %4269 = vmatpush1.bf16.msra.mxu1 %v4268_v41  ;;  %v5440_v49 = vpop.f32.mrb[0].mxu1 }
 0x139   : > { %4271 = vmatprep.subr.bf16.mxu1 %v4270_v46  ;;  %v1680_v52 = vpop.permute.xlu1 %1679  ;;  %v1678_v53 = vpop.permute.xlu0 %1677 }
 0x13a   : > { %v1689_v56 = vsel %vm1681_vm7, %v1680_v52, %v1672_v43  ;;  %v1688_v57 = vsel %vm1681_vm7, %v1678_v53, %v1670_v45  ;;  %v5450_v58 = vpop.f32.mrb[1].mxu1  ;;  %v1685_v2 = vsel %vm1681_vm7, %v1672_v43, %v1680_v52  ;;  %v1684_v4 = vsel %vm1681_vm7, %v1670_v45, %v1678_v53 }
 0x13b   : > { %4130 = vmatmul.mubr.msk.f32.gmra.mrb[8].mxu1 %vm505_vm0, %v1394_v47  ;;  %v1710_v3 = vmul.f32 %v5422_v8, %v1689_v56  ;;  %v1708_v7 = vmul.f32 %v5422_v8, %v1688_v57  ;;  %v1709_v20 = vmul.f32 %v5438_v48, %v1685_v2  ;;  %v1707_v5 = vmul.f32 %v5438_v48, %v1684_v4  ;;  %v1555_v47 = vld [vmem:[#allocation2 + $0xd8] sm:$0xff]  ;;  %v1712_v57 = vld [vmem:[#allocation2 + $0xe0] sm:$0xff]  ;;  %v1713_v2 = vld [vmem:[#allocation2 + $0xe8] sm:$0xff] }
 0x13c   : > { %1490 = vmatprep.mubr.f32.mxu1 %v4749_v0  ;;  %v5459_v63 = vpop.f32.mrb[2].mxu1  ;;  %v1715_v4 = vld [vmem:[#allocation2 + $0xf8] sm:$0xff] }
 0x13d   : > { %v1828_v9 = vpop.permute.xlu1 %1827  ;;  %v1826_v10 = vpop.permute.xlu0 %1825  ;;  %v4274_v21 = vpack.c.bf16 %v1710_v3, %v1708_v7  ;;  %v4276_v31 = vpack.c.bf16 %v1709_v20, %v1707_v5  ;;  %v1714_v3 = vld [vmem:[#allocation2 + $0xf0] sm:$0xff]  ;;  %v1872_v7 = vld [vmem:[#allocation2 + $0x100] sm:$0xff]  ;;  %v478_v20 = vld [vmem:[%s6274_s2 + $0x8] sm:$0xff] }
 0x13e   : > { %v5467_v13 = vpop.f32.mrb[3].mxu1 }
 0x13f   : > { %4131 = vmatmul.mubr.msk.f32.gmra.mrb[10].mxu1 %vm505_vm0, %v1395_v61 }
 0x140   : > { %1632 = vmatprep.mubr.f32.mxu1 %v4749_v0 }
 0x141   : > { %v1836_v22 = vpop.permute.xlu1 %1835  ;;  %v1834_v25 = vpop.permute.xlu0 %1833 }
 0x142   : > { %v1847_v29 = vsel %vm1841_vm8, %v1836_v22, %v1828_v9  ;;  %v1846_v11 = vsel %vm1841_vm8, %v1834_v25, %v1826_v10  ;;  %v1843_v39 = vsel %vm1841_vm8, %v1828_v9, %v1836_v22  ;;  %v1842_v40 = vsel %vm1841_vm8, %v1826_v10, %v1834_v25  ;;  %v1873_v9 = vld [vmem:[#allocation2 + $0x108] sm:$0xff]  ;;  %v1874_v10 = vld [vmem:[#allocation2 + $0x110] sm:$0xff] }
 0x143   : > { %4133 = vmatmul.mubr.msk.f32.vlgmr.msra.gmra.mrb[4].mxu1 %vm505_vm0, %v1552_v16  ;;  %v1866_v19 = vmul.f32 %v5472_v14, %v1847_v29  ;;  %v1864_v30 = vmul.f32 %v5472_v14, %v1846_v11  ;;  %v1865_v18 = vmul.f32 %v5488_v38, %v1843_v39  ;;  %v1863_v46 = vmul.f32 %v5488_v38, %v1842_v40  ;;  %v477_v16 = vld [vmem:[%s6274_s2] sm:$0xff] }
 0x144   : > { %4273 = vmatpush1.bf16.msra.mxu1 %v4272_v15  ;;  %1638 = vmatprep.mubr.f32.mxu1 %v4749_v0  ;;  %v1875_v15 = vld [vmem:[#allocation2 + $0x118] sm:$0xff] }
 0x145   : > { %4275 = vmatprep.subr.bf16.mxu1 %v4274_v21  ;;  %v1832_v33 = vpop.permute.xlu1 %1831  ;;  %v1830_v12 = vpop.permute.xlu0 %1829  ;;  %v4278_v34 = vpack.c.bf16 %v1866_v19, %v1864_v30  ;;  %v4280_v56 = vpack.c.bf16 %v1865_v18, %v1863_v46  ;;  %4100 = vmatmul.mubr.msk.f32.vlgmr.msra.gmra.mrb[0].mxu0 %vm505_vm0, %v477_v16 }
 0x146   : > { %588 = vmatprep.mubr.f32.mxu0 %v4749_v0 }
 0x147   : > { %4134 = vmatmul.mubr.msk.f32.gmra.mrb[6].mxu1 %vm505_vm0, %v1553_v32 }
 0x148   : > { %1644 = vmatprep.mubr.f32.mxu1 %v4749_v0  ;;  %4277 = vmatpush1.bf16.msra.mxu1 %v4276_v31 }
 0x149   : > { %4279 = vmatprep.subr.bf16.mxu1 %v4278_v34  ;;  %v1840_v41 = vpop.permute.xlu1 %1839  ;;  %4101 = vmatmul.mubr.msk.f32.gmra.mrb[2].mxu0 %vm505_vm0, %v478_v20 }
 0x14a   : > { %v1849_v42 = vsel %vm1841_vm8, %v1840_v41, %v1832_v33  ;;  %v1838_v43 = vpop.permute.xlu0 %1837  ;;  %v1845_v50 = vsel %vm1841_vm8, %v1832_v33, %v1840_v41  ;;  %2097 = vmatprep.mubr.f32.mxu0 %v4749_v0 }
 0x14b   : > { %4135 = vmatmul.mubr.msk.f32.gmra.mrb[8].mxu1 %vm505_vm0, %v1554_v37  ;;  %v1848_v45 = vsel %vm1841_vm8, %v1838_v43, %v1830_v12  ;;  %v1870_v51 = vmul.f32 %v5472_v14, %v1849_v42  ;;  %v1844_v52 = vsel %vm1841_vm8, %v1830_v12, %v1838_v43  ;;  %v1869_v59 = vmul.f32 %v5488_v38, %v1845_v50 }
 0x14c   : > { %1650 = vmatprep.mubr.f32.mxu1 %v4749_v0  ;;  %v1868_v53 = vmul.f32 %v5472_v14, %v1848_v45  ;;  %v1867_v60 = vmul.f32 %v5488_v38, %v1844_v52 }
 0x14e   : > { %v4282_v61 = vpack.c.bf16 %v1870_v51, %v1868_v53  ;;  %v4284_v62 = vpack.c.bf16 %v1869_v59, %v1867_v60  ;;  %v2017_v60 = vld [vmem:[%s6284_s12] sm:$0xff] }
 0x14f   : > { %4136 = vmatmul.mubr.msk.f32.gmra.mrb[10].mxu1 %vm505_vm0, %v1555_v47 }
 0x150   : > { %1792 = vmatprep.mubr.f32.mxu1 %v4749_v0 }
 0x153   : > { %4138 = vmatmul.mubr.msk.f32.vlgmr.msra.gmra.mrb[4].mxu1 %vm505_vm0, %v1712_v57 }
 0x154   : > { %4281 = vmatpush1.bf16.msra.mxu1 %v4280_v56  ;;  %1798 = vmatprep.mubr.f32.mxu1 %v4749_v0 }
 0x155   : > { %4283 = vmatprep.subr.bf16.mxu1 %v4282_v61 }
 0x157   : > { %4139 = vmatmul.mubr.msk.f32.gmra.mrb[6].mxu1 %vm505_vm0, %v1713_v2 }
 0x158   : > { %1804 = vmatprep.mubr.f32.mxu1 %v4749_v0  ;;  %4285 = vmatpush1.bf16.msra.mxu1 %v4284_v62 }
 0x15b   : > { %4140 = vmatmul.mubr.msk.f32.gmra.mrb[8].mxu1 %vm505_vm0, %v1714_v3 }
 0x15c   : > { %1810 = vmatprep.mubr.f32.mxu1 %v4749_v0 }
 0x15d   : > { %v1997_v22 = vpop.permute.xlu1 %1996  ;;  %v1992_v29 = vpop.permute.xlu0 %1991 }
 0x15f   : > { %4141 = vmatmul.mubr.msk.f32.gmra.mrb[10].mxu1 %vm505_vm0, %v1715_v4 }
 0x160   : > { %1952 = vmatprep.mubr.f32.mxu1 %v4749_v0 }
 0x163   : > { %4143 = vmatmul.mubr.msk.f32.vlgmr.msra.gmra.mrb[4].mxu1 %vm505_vm0, %v1872_v7  ;;  %v2002_v41 = vpop.permute.xlu1 %2001  ;;  %v2018_v7 = vld [vmem:[%s6284_s12 + $0x8] sm:$0xff] }
 0x164   : > { %1958 = vmatprep.mubr.f32.mxu1 %v4749_v0  ;;  %v2007_v39 = vpop.permute.xlu0 %2006 }
 0x167   : > { %4144 = vmatmul.mubr.msk.f32.gmra.mrb[6].mxu1 %vm505_vm0, %v1873_v9 }
 0x168   : > { %1964 = vmatprep.mubr.f32.mxu1 %v4749_v0 }
 0x16b   : > { %4145 = vmatmul.mubr.msk.f32.gmra.mrb[8].mxu1 %vm505_vm0, %v1874_v10  ;;  %v2019_v10 = vld [vmem:[%s6284_s12 + $0x10] sm:$0xff] }
 0x16c   : > { %1970 = vmatprep.mubr.f32.mxu1 %v4749_v0 }
 0x16f   : > { %4146 = vmatmul.mubr.msk.f32.gmra.mrb[10].mxu1 %vm505_vm0, %v1875_v15  ;;  %v2020_v15 = vld [vmem:[%s6284_s12 + $0x18] sm:$0xff] }
 0x170   : > { %3717 = vmatprep.mubr.f32.mxu1 %v4749_v0 }
 0x218   : > { %v5606_v16 = vpop.f32.mrb[0].mxu0 }
 0x219   : > { %v5608_v20 = vpop.f32.mrb[1].mxu0 }
 0x236   : > { %v1954_v5 = vpop.f32.mrb[4].mxu1 }
 0x237   : > { %v1956_v21 = vpop.f32.mrb[5].mxu1  ;;  %v5544_v32 = vadd.f32 %v1992_v29, %v1954_v5  ;;  %v5610_v5 = vpop.f32.mrb[2].mxu0 }
 0x238   : > { %v5540_v30 = vadd.f32 %v1992_v29, %v1956_v21  ;;  %v5612_v21 = vpop.f32.mrb[3].mxu0 }
 0x239   : > { %v2139_v59 = vmul.f32 %v5544_v32, %v5544_v32 }
 0x23a   : > { %v1960_v25 = vpop.f32.mrb[6].mxu1  ;;  %v2140_v50 = vmul.f32 %v5540_v30, %v5540_v30 }
 0x23b   : > { %v5538_v11 = vadd.f32 %v1997_v22, %v1960_v25  ;;  %v1962_v19 = vpop.f32.mrb[7].mxu1 }
 0x23c   : > { %v5542_v31 = vadd.f32 %v1997_v22, %v1962_v19 }
 0x23d   : > { %v4288_v34 = vpack.c.bf16 %v5538_v11, %v5544_v32  ;;  %v2141_v52 = vmul.f32 %v5538_v11, %v5538_v11 }
 0x23e   : > { %v1966_v33 = vpop.f32.mrb[8].mxu1  ;;  %v4286_v12 = vpack.c.bf16 %v5542_v31, %v5540_v30  ;;  %v2142_v45 = vmul.f32 %v5542_v31, %v5542_v31 }
 0x23f   : > { %v1968_v37 = vpop.f32.mrb[9].mxu1  ;;  %v5558_v47 = vadd.f32 %v2002_v41, %v1966_v33  ;;  %v4296_v62 = vpack.c.bf16 %v2141_v52, %v2139_v59 }
 0x240   : > { %4287 = vmatprep.subr.bf16.mxu0 %v4286_v12  ;;  %v5554_v18 = vadd.f32 %v2002_v41, %v1968_v37  ;;  %v4294_v57 = vpack.c.bf16 %v2142_v45, %v2140_v50 }
 0x241   : > { %4289 = vmatpush1.bf16.msra.mxu0 %v4288_v34  ;;  %v2143_v4 = vmul.f32 %v5558_v47, %v5558_v47 }
 0x242   : > { %v1972_v40 = vpop.f32.mrb[10].mxu1  ;;  %v2144_v61 = vmul.f32 %v5554_v18, %v5554_v18 }
 0x243   : > { %v5550_v42 = vadd.f32 %v2007_v39, %v1972_v40  ;;  %v1974_v43 = vpop.f32.mrb[11].mxu1 }
 0x244   : > { %v5556_v46 = vadd.f32 %v2007_v39, %v1974_v43 }
 0x245   : > { %v4292_v53 = vpack.c.bf16 %v5550_v42, %v5558_v47  ;;  %v2145_v2 = vmul.f32 %v5550_v42, %v5550_v42 }
 0x246   : > { %v4290_v51 = vpack.c.bf16 %v5556_v46, %v5554_v18  ;;  %v2146_v56 = vmul.f32 %v5556_v46, %v5556_v46 }
 0x247   : > { %v4300_v9 = vpack.c.bf16 %v2145_v2, %v2143_v4  ;;  %v2319_v4 = vld [vmem:[%s6279_s7 + $0x18] sm:$0xff] }
 0x248   : > { %4291 = vmatprep.subr.bf16.mxu0 %v4290_v51  ;;  %v4298_v3 = vpack.c.bf16 %v2146_v56, %v2144_v61 }
 0x249   : > { %4293 = vmatpush1.bf16.msra.mxu0 %v4292_v53 }
 0x24a   : > { %4295 = vmatprep.subr.bf16.mxu0 %v4294_v57 }
 0x24c   : > { %4147 = vmatmul.mubr.msk.f32.vlgmr.msra.gmra.mrb[4].mxu0 %vm505_vm0, %v2017_v60 }
 0x24d   : > { %4297 = vmatpush1.bf16.msra.mxu0 %v4296_v62  ;;  %2103 = vmatprep.mubr.f32.mxu0 %v4749_v0 }
 0x24e   : > { %4299 = vmatprep.subr.bf16.mxu0 %v4298_v3  ;;  %v2318_v3 = vld [vmem:[%s6279_s7 + $0x10] sm:$0xff] }
 0x250   : > { %4148 = vmatmul.mubr.msk.f32.gmra.mrb[6].mxu0 %vm505_vm0, %v2018_v7 }
 0x251   : > { %4301 = vmatpush1.bf16.msra.mxu0 %v4300_v9  ;;  %2109 = vmatprep.mubr.f32.mxu0 %v4749_v0  ;;  %v2296_v9 = vpop.permute.xlu1 %2295 }
 0x254   : > { %4149 = vmatmul.mubr.msk.f32.gmra.mrb[8].mxu0 %vm505_vm0, %v2019_v10 }
 0x255   : > { %2115 = vmatprep.mubr.f32.mxu0 %v4749_v0 }
 0x258   : > { %4150 = vmatmul.mubr.msk.f32.gmra.mrb[10].mxu0 %vm505_vm0, %v2020_v15 }
 0x259   : > { %2211 = vmatprep.mubr.f32.mxu0 %v4749_v0 }
 0x25c   : > { %4151 = vmatmul.mubr.msk.f32.vlgmr.msra.gmra.mrb[12].mxu0 %vm505_vm0, %v2017_v60 }
 0x25d   : > { %2217 = vmatprep.mubr.f32.mxu0 %v4749_v0 }
 0x260   : > { %4152 = vmatmul.mubr.msk.f32.gmra.mrb[14].mxu0 %vm505_vm0, %v2018_v7  ;;  %v2291_v7 = vpop.permute.xlu0 %2290 }
 0x261   : > { %2223 = vmatprep.mubr.f32.mxu0 %v4749_v0 }
 0x264   : > { %4153 = vmatmul.mubr.msk.f32.gmra.mrb[16].mxu0 %vm505_vm0, %v2019_v10  ;;  %v5620_v10 = vpop.permute.xlu0 %2327 }
 0x265   : > { %2229 = vmatprep.mubr.f32.mxu0 %v4749_v0 }
 0x268   : > { %4154 = vmatmul.mubr.msk.f32.gmra.mrb[18].mxu0 %vm505_vm0, %v2020_v15  ;;  %v2323_v15 = vpop.permute.xlu1 %2322 }
 0x269   : > { %2505 = vmatprep.mubr.f32.mxu0 %v4749_v0 }
 0x31f   : > { %v2099_v22 = vpop.f32.mrb[4].mxu0 }
 0x320   : > { %v2101_v25 = vpop.f32.mrb[5].mxu0 }
 0x321   : > { %v2122_v29 = vadd.f32 %v2101_v25, %v2099_v22  ;;  %v5622_v22 = vpop.permute.xlu0 %2305  ;;  %v2301_v25 = vpop.permute.xlu1 %2300 }
 0x323   : > { %2123 = vadd.xlane.f32.xlu1 %v2122_v29  ;;  %v2105_v19 = vpop.f32.mrb[6].mxu0 }
 0x324   : > { %v2107_v33 = vpop.f32.mrb[7].mxu0 }
 0x325   : > { %v2125_v12 = vadd.f32 %v2107_v33, %v2105_v19 }
 0x327   : > { %2126 = vadd.xlane.f32.xlu0 %v2125_v12  ;;  %v2111_v34 = vpop.f32.mrb[8].mxu0 }
 0x328   : > { %v2113_v37 = vpop.f32.mrb[9].mxu0 }
 0x329   : > { %v2128_v39 = vadd.f32 %v2113_v37, %v2111_v34 }
 0x32b   : > { %2129 = vadd.xlane.f32.xlu0 %v2128_v39  ;;  %v2117_v40 = vpop.f32.mrb[10].mxu0 }
 0x32c   : > { %v2119_v41 = vpop.f32.mrb[11].mxu0 }
 0x32d   : > { %v2131_v43 = vadd.f32 %v2119_v41, %v2117_v40 }
 0x32f   : > { %v2213_v45 = vpop.f32.mrb[12].mxu0  ;;  %2132 = vadd.xlane.f32.xlu1 %v2131_v43 }
 0x330   : > { %v2215_v50 = vpop.f32.mrb[13].mxu0 }
 0x331   : > { %v2236_v51 = vadd.f32 %v2215_v50, %v2213_v45 }
 0x333   : > { %2237 = vadd.xlane.f32.xlu0 %v2236_v51  ;;  %v2219_v52 = vpop.f32.mrb[14].mxu0 }
 0x334   : > { %v2221_v53 = vpop.f32.mrb[15].mxu0 }
 0x335   : > { %v2239_v56 = vadd.f32 %v2221_v53, %v2219_v52 }
 0x337   : > { %v2225_v57 = vpop.f32.mrb[16].mxu0  ;;  %2240 = vadd.xlane.f32.xlu1 %v2239_v56 }
 0x338   : > { %v2227_v59 = vpop.f32.mrb[17].mxu0 }
 0x339   : > { %v2242_v60 = vadd.f32 %v2227_v59, %v2225_v57 }
 0x33b   : > { %2243 = vadd.xlane.f32.xlu0 %v2242_v60  ;;  %v2231_v61 = vpop.f32.mrb[18].mxu0 }
 0x33c   : > { %v2233_v62 = vpop.f32.mrb[19].mxu0 }
 0x33d   : > { %v2245_v2 = vadd.f32 %v2233_v62, %v2231_v61 }
 0x33f   : > { %2246 = vadd.xlane.f32.xlu1 %v2245_v2 }
 0x350   : > { %2332 = vperm.xlu1 %4596, %v2318_v3  }
 0x351   : > { %2337 = vperm.xlu0 %4595, %v2319_v4  }
 0x3b0   : > { %v2124_v19 = vpop.xlane.xlu1 %2123 }
 0x3b1   : > { %v2135_v12 = vmul.f32 0.00390625, %v2124_v19 }
 0x3b3   : > { %v2252_v40 = vmul.f32 %v2135_v12, %v2135_v12 }
 0x3b4   : > { %v2127_v29 = vpop.xlane.xlu0 %2126 }
 0x3b5   : > { %v2136_v39 = vmul.f32 0.00390625, %v2127_v29 }
 0x3b7   : > { %v2253_v52 = vmul.f32 %v2136_v39, %v2136_v39 }
 0x3b8   : > { %v2130_v33 = vpop.xlane.xlu0 %2129 }
 0x3b9   : > { %v2137_v50 = vmul.f32 0.00390625, %v2130_v33  ;;  %v2260_v33 = vsub.f32 %v5544_v32, %v2135_v12 }
 0x3bb   : > { %v2254_v61 = vmul.f32 %v2137_v50, %v2137_v50  ;;  %v2265_v32 = vsub.f32 %v5554_v18, %v2137_v50 }
 0x3bc   : > { %v2133_v34 = vpop.xlane.xlu1 %2132 }
 0x3bd   : > { %v2138_v59 = vmul.f32 0.00390625, %v2133_v34  ;;  %v2262_v34 = vsub.f32 %v5538_v11, %v2136_v39 }
 0x3bf   : > { %v2255_v29 = vmul.f32 %v2138_v59, %v2138_v59 }
 0x3c0   : > { %v2238_v37 = vpop.xlane.xlu0 %2237 }
 0x3c1   : > { %v2248_v41 = vmul.f32 0.00390625, %v2238_v37 }
 0x3c3   : > { %v2256_v43 = vsub.f32 %v2248_v41, %v2252_v40  ;;  %v2261_v40 = vsub.f32 %v5540_v30, %v2135_v12 }
 0x3c4   : > { %v2241_v45 = vpop.xlane.xlu1 %2240 }
 0x3c5   : > { %v2268_v51 = vadd.f32 1e-05, %v2256_v43  ;;  %v2249_v53 = vmul.f32 0.00390625, %v2241_v45 }
 0x3c7   : > { %4597 = vrsqrt.f32 %v2268_v51  ;;  %v2257_v56 = vsub.f32 %v2249_v53, %v2253_v52  ;;  %v2263_v52 = vsub.f32 %v5542_v31, %v2136_v39  ;;  %v2267_v39 = vsub.f32 %v5556_v46, %v2138_v59 }
 0x3c8   : > { %v2244_v57 = vpop.xlane.xlu0 %2243 }
 0x3c9   : > { %v2269_v60 = vadd.f32 1e-05, %v2257_v56  ;;  %v2250_v62 = vmul.f32 0.00390625, %v2244_v57 }
 0x3cb   : > { %4599 = vrsqrt.f32 %v2269_v60  ;;  %v2258_v2 = vsub.f32 %v2250_v62, %v2254_v61 }
 0x3cc   : > { %v2247_v3 = vpop.xlane.xlu1 %2246 }
 0x3cd   : > { %v2270_v4 = vadd.f32 1e-05, %v2258_v2  ;;  %v2251_v19 = vmul.f32 0.00390625, %v2247_v3  ;;  %v2264_v2 = vsub.f32 %v5558_v47, %v2137_v50 }
 0x3cf   : > { %4601 = vrsqrt.f32 %v2270_v4  ;;  %v2259_v37 = vsub.f32 %v2251_v19, %v2255_v29 }
 0x3d1   : > { %v4598_v41 = vpop.eup %4597  ;;  %v2271_v43 = vadd.f32 1e-05, %v2259_v37 }
 0x3d2   : > { %v2276_v45 = vmul.f32 %v4598_v41, %v2260_v33  ;;  %v2277_v51 = vmul.f32 %v4598_v41, %v2261_v40  ;;  %v2333_v33 = vpop.permute.xlu1 %2332 }
 0x3d3   : > { %4603 = vrsqrt.f32 %v2271_v43 }
 0x3d4   : > { %v2308_v53 = vmul.f32 %v2291_v7, %v2276_v45  ;;  %v2309_v56 = vmul.f32 %v2291_v7, %v2277_v51  ;;  %v2266_v7 = vsub.f32 %v5550_v42, %v2138_v59 }
 0x3d5   : > { %v4600_v57 = vpop.eup %4599 }
 0x3d6   : > { %v2340_v60 = vadd.f32 %v2323_v15, %v2308_v53  ;;  %v2278_v61 = vmul.f32 %v4600_v57, %v2262_v34  ;;  %v2279_v62 = vmul.f32 %v4600_v57, %v2263_v52  ;;  %v2341_v30 = vadd.f32 %v2323_v15, %v2309_v56 }
 0x3d8   : > { %v5630_v12 = vmax.f32 %v2340_v60, 0.0  ;;  %v2310_v3 = vmul.f32 %v2296_v9, %v2278_v61  ;;  %v2311_v29 = vmul.f32 %v2296_v9, %v2279_v62  ;;  %v5637_v47 = vmax.f32 %v2341_v30, 0.0 }
 0x3d9   : > { %v4602_v4 = vpop.eup %4601 }
 0x3da   : > { %v2342_v11 = vadd.f32 %v5620_v10, %v2310_v3  ;;  %v2280_v19 = vmul.f32 %v4602_v4, %v2264_v2  ;;  %v2281_v31 = vmul.f32 %v4602_v4, %v2265_v32  ;;  %2392 = vrot.lane.b32.xlu1 %v5630_v12, %s4750_s15  ;;  %v2343_v9 = vadd.f32 %v5620_v10, %v2311_v29 }
 0x3dc   : > { %v5639_v18 = vmax.f32 %v2342_v11, 0.0  ;;  %v2312_v15 = vmul.f32 %v2301_v25, %v2280_v19  ;;  %v2313_v50 = vmul.f32 %v2301_v25, %v2281_v31  ;;  %v5649_v45 = vmax.f32 %v2343_v9, 0.0  ;;  %v2338_v25 = vpop.permute.xlu0 %2337  ;;  %v3621_v31 = vld [vmem:[%s6281_s9] sm:$0xff] }
 0x3dd   : > { %v4604_v37 = vpop.eup %4603 }
 0x3de   : > { %v2282_v40 = vmul.f32 %v4604_v37, %v2266_v7  ;;  %v2283_v41 = vmul.f32 %v4604_v37, %v2267_v39  ;;  %v2344_v43 = vadd.f32 %v2333_v33, %v2312_v15  ;;  %2400 = vrot.lane.b32.xlu1 %v5637_v47, %s4750_s15  ;;  %2394 = vrot.lane.b32.xlu0 %v5639_v18, %s4750_s15  ;;  %v3623_v37 = vld [vmem:[%s6281_s9 + $0x10] sm:$0xff] }
 0x3df   : > { %v2345_v46 = vadd.f32 %v2333_v33, %v2313_v50 }
 0x3e0   : > { %v2314_v42 = vmul.f32 %v5622_v22, %v2282_v40  ;;  %v5647_v59 = vmax.f32 %v2344_v43, 0.0  ;;  %v2315_v10 = vmul.f32 %v5622_v22, %v2283_v41  ;;  %v3622_v41 = vld [vmem:[%s6281_s9 + $0x8] sm:$0xff] }
 0x3e1   : > { %v5658_v52 = vmax.f32 %v2345_v46, 0.0 }
 0x3e2   : > { %v2346_v51 = vadd.f32 %v2338_v25, %v2314_v42  ;;  %2396 = vrot.lane.b32.xlu1 %v5647_v59, %s4750_s15  ;;  %2402 = vrot.lane.b32.xlu0 %v5649_v45, %s4750_s15  ;;  %v2347_v53 = vadd.f32 %v2338_v25, %v2315_v10 }
 0x3e4   : > { %v5656_v34 = vmax.f32 %v2346_v51, 0.0  ;;  %v5664_v56 = vmax.f32 %v2347_v53, 0.0 }
 0x3e6   : > { %2404 = vrot.lane.b32.xlu1 %v5658_v52, %s4750_s15  ;;  %2398 = vrot.lane.b32.xlu0 %v5656_v34, %s4750_s15 }
 0x3ea   : > { %2356 = vrot.lane.b32.xlu1 %v5630_v12, %s4751_s21  ;;  %2406 = vrot.lane.b32.xlu0 %v5664_v56, %s4750_s15 }
 0x3ee   : > { %2364 = vrot.lane.b32.xlu1 %v5637_v47, %s4751_s21  ;;  %2358 = vrot.lane.b32.xlu0 %v5639_v18, %s4751_s21 }
 0x3f2   : > { %2360 = vrot.lane.b32.xlu1 %v5647_v59, %s4751_s21  ;;  %2366 = vrot.lane.b32.xlu0 %v5649_v45, %s4751_s21 }
 0x3f6   : > { %2368 = vrot.lane.b32.xlu1 %v5658_v52, %s4751_s21  ;;  %2362 = vrot.lane.b32.xlu0 %v5656_v34, %s4751_s21 }
 0x3fa   : > { %2631 = vrot.lane.b32.xlu1 %v5630_v12, %s4752_s24  ;;  %2370 = vrot.lane.b32.xlu0 %v5664_v56, %s4751_s21  ;;  %s6197_s21 = scalar_lea.vmem [#allocation7], %s4097_s27 }
 0x3fe   : > { %2639 = vrot.lane.b32.xlu1 %v5637_v47, %s4752_s24  ;;  %2633 = vrot.lane.b32.xlu0 %v5639_v18, %s4752_s24 }
 0x402   : > { %2635 = vrot.lane.b32.xlu1 %v5647_v59, %s4752_s24  ;;  %2641 = vrot.lane.b32.xlu0 %v5649_v45, %s4752_s24 }
 0x406   : > { %2643 = vrot.lane.b32.xlu1 %v5658_v52, %s4752_s24  ;;  %2637 = vrot.lane.b32.xlu0 %v5656_v34, %s4752_s24 }
 0x40a   : > { %2777 = vrot.lane.b32.xlu1 %v5630_v12, %s4753_s22  ;;  %2645 = vrot.lane.b32.xlu0 %v5664_v56, %s4752_s24  ;;  %s4205_s24 = sshll.u32 %s4852_s29, 10  ;;  %s6230_s29 = scalar_lea.sflag [#allocation4], %s461_s23 }
 0x40e   : > { %2785 = vrot.lane.b32.xlu1 %v5637_v47, %s4753_s22  ;;  %2779 = vrot.lane.b32.xlu0 %v5639_v18, %s4753_s22 }
 0x412   : > { %2781 = vrot.lane.b32.xlu1 %v5647_v59, %s4753_s22  ;;  %2787 = vrot.lane.b32.xlu0 %v5649_v45, %s4753_s22 }
 0x416   : > { %2789 = vrot.lane.b32.xlu1 %v5658_v52, %s4753_s22  ;;  %2783 = vrot.lane.b32.xlu0 %v5656_v34, %s4753_s22 }
 0x41a   : > { %3037 = vrot.lane.b32.xlu1 %v5630_v12, %s4754_s13  ;;  %2791 = vrot.lane.b32.xlu0 %v5664_v56, %s4753_s22  ;;  %s4005_s22 = sshll.u32 %s6197_s21, 4  ;;  %s6224_s22 = int_to_ptr.vmem [resolvable:$true] %s4005_s22 }
 0x41b   : > { %s4673_s17 = scalar_lea.vmem %s6224_s22, 1024  ;;  %p4680_p4 = scmp.lt.s32.totalorder %s6224_s22, %s4678_s16 }
 0x41c   : > { %p4674_p12 = scmp.ne.s32.totalorder %s6224_s22, %s4673_s17  ;;  %p4681_p7 = scmp.lt.s32.totalorder %s4679_s20, %s4673_s17 }
 0x41e   : > { %3045 = vrot.lane.b32.xlu1 %v5637_v47, %s4754_s13  ;;  %3039 = vrot.lane.b32.xlu0 %v5639_v18, %s4754_s13  ;;  %p4675_p2 = pnand %p4674_p12, %p6314_p1  ;;  %p4682_p8 = por %p4681_p7, %p4680_p4 }
 0x420   : > { %p4676_p3 = pneg %p4675_p2 }
 0x422   : > { %3041 = vrot.lane.b32.xlu1 %v5647_v59, %s4754_s13  ;;  %3047 = vrot.lane.b32.xlu0 %v5649_v45, %s4754_s13  ;;  %p4683_p11 = pnand %p4682_p8, %p4676_p3 }
 0x426   : > { %3049 = vrot.lane.b32.xlu1 %v5658_v52, %s4754_s13  ;;  %3043 = vrot.lane.b32.xlu0 %v5656_v34, %s4754_s13 }
 0x42a   : > { %3183 = vrot.lane.b32.xlu1 %v5630_v12, %s4755_s25  ;;  %3051 = vrot.lane.b32.xlu0 %v5664_v56, %s4754_s13 }
 0x42e   : > { %3191 = vrot.lane.b32.xlu1 %v5637_v47, %s4755_s25  ;;  %3185 = vrot.lane.b32.xlu0 %v5639_v18, %s4755_s25 }
 0x432   : > { %3187 = vrot.lane.b32.xlu1 %v5647_v59, %s4755_s25  ;;  %3193 = vrot.lane.b32.xlu0 %v5649_v45, %s4755_s25 }
 0x436   : > { %3195 = vrot.lane.b32.xlu1 %v5658_v52, %s4755_s25  ;;  %3189 = vrot.lane.b32.xlu0 %v5656_v34, %s4755_s25 }
 0x43a   : > { %3329 = vrot.lane.b32.xlu1 %v5630_v12, %s4756_s28  ;;  %3197 = vrot.lane.b32.xlu0 %v5664_v56, %s4755_s25 }
 0x43e   : > { %3337 = vrot.lane.b32.xlu1 %v5637_v47, %s4756_s28  ;;  %3331 = vrot.lane.b32.xlu0 %v5639_v18, %s4756_s28 }
 0x442   : > { %3333 = vrot.lane.b32.xlu1 %v5647_v59, %s4756_s28  ;;  %3339 = vrot.lane.b32.xlu0 %v5649_v45, %s4756_s28 }
 0x446   : > { %3341 = vrot.lane.b32.xlu1 %v5658_v52, %s4756_s28  ;;  %3335 = vrot.lane.b32.xlu0 %v5656_v34, %s4756_s28 }
 0x44a   : > { %3475 = vrot.lane.b32.xlu1 %v5630_v12, %s4757_s30  ;;  %3343 = vrot.lane.b32.xlu0 %v5664_v56, %s4756_s28  ;;  %s6312_s28 = sld [smem:[#allocation17_spill]] }
 0x44c   : > { %v2393_v22 = vpop.permute.xlu1 %2392 }
 0x44e   : > { %3483 = vrot.lane.b32.xlu1 %v5637_v47, %s4757_s30  ;;  %3477 = vrot.lane.b32.xlu0 %v5639_v18, %s4757_s30 }
 0x450   : > { %v2401_v57 = vpop.permute.xlu1 %2400  ;;  %v2395_v60 = vpop.permute.xlu0 %2394  ;;  %s6222_s14 = scalar_lea.hbm %s6312_s28, %s4205_s24 }
 0x451   : > { %v2408_v61 = vsel %vm674_vm1, %v2393_v22, %v2401_v57  ;;  %v2412_v62 = vsel %vm674_vm1, %v2401_v57, %v2393_v22  ;;  %v3904_v22 = vld [vmem:[%s6282_s10 + $0x8] sm:$0xff] }
 0x452   : > { %3479 = vrot.lane.b32.xlu1 %v5647_v59, %s4757_s30  ;;  %3485 = vrot.lane.b32.xlu0 %v5649_v45, %s4757_s30  ;;  %v2416_v4 = vmul.f32 %v2412_v62, %v5135_v23  ;;  %v2417_v29 = vmul.f32 %v2408_v61, %v5138_v24 }
 0x454   : > { %v2397_v2 = vpop.permute.xlu1 %2396  ;;  %v2403_v32 = vpop.permute.xlu0 %2402 }
 0x455   : > { %v2409_v30 = vsel %vm674_vm1, %v2395_v60, %v2403_v32  ;;  %v2413_v3 = vsel %vm674_vm1, %v2403_v32, %v2395_v60  ;;  %v3624_v60 = vld [vmem:[%s6281_s9 + $0x18] sm:$0xff] }
 0x456   : > { %3487 = vrot.lane.b32.xlu1 %v5658_v52, %s4757_s30  ;;  %v2418_v11 = vmul.f32 %v2413_v3, %v5135_v23  ;;  %v2419_v19 = vmul.f32 %v2409_v30, %v5138_v24  ;;  %3481 = vrot.lane.b32.xlu0 %v5656_v34, %s4757_s30  ;;  %v3903_v3 = vld [vmem:[%s6282_s10] sm:$0xff] }
 0x458   : > { %v2405_v7 = vpop.permute.xlu1 %2404  ;;  %v4304_v39 = vpack.c.bf16 %v2418_v11, %v2416_v4  ;;  %v2399_v15 = vpop.permute.xlu0 %2398  ;;  %v4302_v50 = vpack.c.bf16 %v2419_v19, %v2417_v29  ;;  %v2425_v4 = vld [vmem:[#allocation5 + $0x20] sm:$0xff] }
 0x459   : > { %v2410_v9 = vsel %vm674_vm1, %v2397_v2, %v2405_v7  ;;  %v2414_v33 = vsel %vm674_vm1, %v2405_v7, %v2397_v2 }
 0x45a   : > { %3627 = vperm.xlu1 %4596, %v3621_v31   ;;  %3489 = vrot.lane.b32.xlu0 %v5664_v56, %s4757_s30  ;;  %v2420_v25 = vmul.f32 %v2414_v33, %v5135_v23  ;;  %v2421_v10 = vmul.f32 %v2410_v9, %v5138_v24  ;;  %v3906_v9 = vld [vmem:[%s6282_s10 + $0x18] sm:$0xff]  ;;  %v2426_v33 = vld [vmem:[#allocation5 + $0x28] sm:$0xff]  ;;  %s6313_s30 = smov %s6312_s28 }
 0x45b   : > { %4303 = vmatprep.subr.bf16.mxu0 %v4302_v50  ;;  %v3935_v50 = vld [vmem:[%s6283_s11] sm:$0xff] }
 0x45c   : > { %4305 = vmatpush1.bf16.msra.mxu0 %v4304_v39  ;;  %v2357_v40 = vpop.permute.xlu1 %2356  ;;  %v2407_v43 = vpop.permute.xlu0 %2406 }
 0x45d   : > { %v2411_v42 = vsel %vm674_vm1, %v2399_v15, %v2407_v43  ;;  %v2415_v46 = vsel %vm674_vm1, %v2407_v43, %v2399_v15 }
 0x45e   : > { %3637 = vperm.xlu1 %4596, %v3623_v37   ;;  %v2422_v51 = vmul.f32 %v2415_v46, %v5135_v23  ;;  %v2423_v53 = vmul.f32 %v2411_v42, %v5138_v24  ;;  %3632 = vperm.xlu0 %4595, %v3622_v41   ;;  %v3905_v23 = vld [vmem:[%s6282_s10 + $0x10] sm:$0xff] }
 0x45f   : > { %v3937_v46 = vld [vmem:[%s6283_s11 + $0x10] sm:$0xff] }
 0x460   : > { %v2365_v57 = vpop.permute.xlu1 %2364  ;;  %v4308_v61 = vpack.c.bf16 %v2422_v51, %v2420_v25  ;;  %v2359_v62 = vpop.permute.xlu0 %2358  ;;  %v4306_v2 = vpack.c.bf16 %v2423_v53, %v2421_v10  ;;  %v3936_v51 = vld [vmem:[%s6283_s11 + $0x8] sm:$0xff]  ;;  %v2427_v53 = vld [vmem:[#allocation5 + $0x30] sm:$0xff] }
 0x461   : > { %v2376_v32 = vsel %vm625_vm2, %v2365_v57, %v2357_v40  ;;  %v2372_v24 = vsel %vm625_vm2, %v2357_v40, %v2365_v57 }
 0x462   : > { %3914 = vperm.xlu1 %4596, %v3904_v22   ;;  %3642 = vperm.xlu0 %4595, %v3624_v60   ;;  %v2380_v11 = vmul.f32 %v2376_v32, %v5181_v54  ;;  %v2381_v7 = vmul.f32 %v2372_v24, %v5184_v55 }
 0x463   : > { %4307 = vmatprep.subr.bf16.mxu0 %v4306_v2 }
 0x464   : > { %4309 = vmatpush1.bf16.msra.mxu0 %v4308_v61  ;;  %v2361_v30 = vpop.permute.xlu1 %2360  ;;  %v2367_v29 = vpop.permute.xlu0 %2366 }
 0x465   : > { %v2373_v19 = vsel %vm625_vm2, %v2359_v62, %v2367_v29  ;;  %v2377_v31 = vsel %vm625_vm2, %v2367_v29, %v2359_v62 }
 0x466   : > { %3919 = vperm.xlu1 %4596, %v3905_v23   ;;  %v2382_v39 = vmul.f32 %v2377_v31, %v5181_v54  ;;  %v2383_v15 = vmul.f32 %v2373_v19, %v5184_v55  ;;  %3909 = vperm.xlu0 %4595, %v3903_v3   ;;  %v481_v23 = vld [vmem:[%s6275_s3] sm:$0xff]  ;;  %v2428_v3 = vld [vmem:[#allocation5 + $0x38] sm:$0xff]  ;;  %v482_v31 = vld [vmem:[%s6275_s3 + $0x8] sm:$0xff] }
 0x467   : > { %4155 = vmatmul.mubr.msk.f32.vlgmr.msra.gmra.mrb[20].mxu0 %vm505_vm0, %v2425_v4 }
 0x468   : > { %v2369_v37 = vpop.permute.xlu1 %2368  ;;  %2511 = vmatprep.mubr.f32.mxu0 %v4749_v0  ;;  %v4312_v40 = vpack.c.bf16 %v2382_v39, %v2380_v11  ;;  %v2363_v41 = vpop.permute.xlu0 %2362  ;;  %v4310_v43 = vpack.c.bf16 %v2383_v15, %v2381_v7  ;;  %v2388_v39 = vld [vmem:[#allocation5] sm:$0xff] }
 0x469   : > { %v2378_v42 = vsel %vm625_vm2, %v2369_v37, %v2361_v30  ;;  %v2374_v25 = vsel %vm625_vm2, %v2361_v30, %v2369_v37  ;;  %v3938_v30 = vld [vmem:[%s6283_s11 + $0x18] sm:$0xff] }
 0x46a   : > { %3941 = vperm.xlu1 %4596, %v3935_v50   ;;  %3924 = vperm.xlu0 %4595, %v3906_v9   ;;  %v2384_v57 = vmul.f32 %v2378_v42, %v5181_v54  ;;  %v2385_v62 = vmul.f32 %v2374_v25, %v5184_v55 }
 0x46b   : > { %4156 = vmatmul.mubr.msk.f32.gmra.mrb[22].mxu0 %vm505_vm0, %v2426_v33  ;;  %4311 = vmatprep.subr.bf16.mxu0 %v4310_v43 }
 0x46c   : > { %v2632_v10 = vpop.permute.xlu1 %2631  ;;  %2517 = vmatprep.mubr.f32.mxu0 %v4749_v0  ;;  %4313 = vmatpush1.bf16.msra.mxu0 %v4312_v40  ;;  %v2371_v22 = vpop.permute.xlu0 %2370 }
 0x46d   : > { %v2375_v60 = vsel %vm625_vm2, %v2363_v41, %v2371_v22  ;;  %v2379_v61 = vsel %vm625_vm2, %v2371_v22, %v2363_v41 }
 0x46e   : > { %3951 = vperm.xlu1 %4596, %v3937_v46   ;;  %v2386_v2 = vmul.f32 %v2379_v61, %v5181_v54  ;;  %v2387_v32 = vmul.f32 %v2375_v60, %v5184_v55  ;;  %3946 = vperm.xlu0 %4595, %v3936_v51   ;;  %v2389_v46 = vld [vmem:[#allocation5 + $0x8] sm:$0xff] }
 0x46f   : > { %4157 = vmatmul.mubr.msk.f32.gmra.mrb[24].mxu0 %vm505_vm0, %v2427_v53 }
 0x470   : > { %v2640_v24 = vpop.permute.xlu1 %2639  ;;  %2523 = vmatprep.mubr.f32.mxu0 %v4749_v0  ;;  %v4316_v4 = vpack.c.bf16 %v2386_v2, %v2384_v57  ;;  %v2634_v29 = vpop.permute.xlu0 %2633  ;;  %v4314_v54 = vpack.c.bf16 %v2387_v32, %v2385_v62  ;;  %v2390_v57 = vld [vmem:[#allocation5 + $0x10] sm:$0xff] }
 0x471   : > { %v2647_v55 = vsel %vm927_vm3, %v2632_v10, %v2640_v24  ;;  %v2651_v11 = vsel %vm927_vm3, %v2640_v24, %v2632_v10 }
 0x472   : > { %487 = vperm.xlu1 %4596, %v481_v23   ;;  %3956 = vperm.xlu0 %4595, %v3938_v30   ;;  %v2655_v37 = vmul.f32 %v2651_v11, %v5222_v35  ;;  %v2656_v9 = vmul.f32 %v2647_v55, %v5225_v36  ;;  %v2664_v11 = vld [vmem:[#allocation5 + $0x40] sm:$0xff] }
 0x473   : > { %4158 = vmatmul.mubr.msk.f32.gmra.mrb[26].mxu0 %vm505_vm0, %v2428_v3  ;;  %4315 = vmatprep.subr.bf16.mxu0 %v4314_v54 }
 0x474   : > { %v2636_v19 = vpop.permute.xlu1 %2635  ;;  %2606 = vmatprep.mubr.f32.mxu0 %v4749_v0  ;;  %4317 = vmatpush1.bf16.msra.mxu0 %v4316_v4  ;;  %v2642_v7 = vpop.permute.xlu0 %2641  ;;  %v2391_v4 = vld [vmem:[#allocation5 + $0x18] sm:$0xff] }
 0x475   : > { %v2648_v15 = vsel %vm927_vm3, %v2634_v29, %v2642_v7  ;;  %v2652_v50 = vsel %vm927_vm3, %v2642_v7, %v2634_v29 }
 0x476   : > { %v2657_v33 = vmul.f32 %v2652_v50, %v5222_v35  ;;  %v2658_v40 = vmul.f32 %v2648_v15, %v5225_v36  ;;  %492 = vperm.xlu0 %4595, %v482_v31  }
 0x477   : > { %4159 = vmatmul.mubr.msk.f32.vlgmr.msra.gmra.mrb[20].mxu0 %vm505_vm0, %v2388_v39 }
 0x478   : > { %v2644_v41 = vpop.permute.xlu1 %2643  ;;  %v4320_v43 = vpack.c.bf16 %v2657_v33, %v2655_v37  ;;  %v2638_v42 = vpop.permute.xlu0 %2637  ;;  %2612 = vmatprep.mubr.f32.mxu0 %v4749_v0  ;;  %v4318_v25 = vpack.c.bf16 %v2658_v40, %v2656_v9  ;;  %v2665_v40 = vld [vmem:[#allocation5 + $0x48] sm:$0xff] }
 0x479   : > { %v2649_v10 = vsel %vm927_vm3, %v2636_v19, %v2644_v41  ;;  %v2653_v51 = vsel %vm927_vm3, %v2644_v41, %v2636_v19 }
 0x47a   : > { %4319 = vmatprep.subr.bf16.mxu0 %v4318_v25  ;;  %v2659_v62 = vmul.f32 %v2653_v51, %v5222_v35  ;;  %v2660_v2 = vmul.f32 %v2649_v10, %v5225_v36  ;;  %v2666_v10 = vld [vmem:[#allocation5 + $0x50] sm:$0xff] }
 0x47b   : > { %4160 = vmatmul.mubr.msk.f32.gmra.mrb[22].mxu0 %vm505_vm0, %v2389_v46 }
 0x47c   : > { %v2778_v53 = vpop.permute.xlu1 %2777  ;;  %4321 = vmatpush1.bf16.msra.mxu0 %v4320_v43  ;;  %v2646_v22 = vpop.permute.xlu0 %2645  ;;  %2618 = vmatprep.mubr.f32.mxu0 %v4749_v0 }
 0x47d   : > { %v2650_v60 = vsel %vm927_vm3, %v2638_v42, %v2646_v22  ;;  %v2654_v61 = vsel %vm927_vm3, %v2646_v22, %v2638_v42 }
 0x47e   : > { %v2661_v32 = vmul.f32 %v2654_v61, %v5222_v35  ;;  %v2662_v23 = vmul.f32 %v2650_v60, %v5225_v36 }
 0x47f   : > { %4161 = vmatmul.mubr.msk.f32.gmra.mrb[24].mxu0 %vm505_vm0, %v2390_v57 }
 0x480   : > { %v2786_v24 = vpop.permute.xlu1 %2785  ;;  %v4324_v30 = vpack.c.bf16 %v2661_v32, %v2659_v62  ;;  %v2780_v3 = vpop.permute.xlu0 %2779  ;;  %2624 = vmatprep.mubr.f32.mxu0 %v4749_v0  ;;  %v4322_v29 = vpack.c.bf16 %v2662_v23, %v2660_v2  ;;  %v2667_v23 = vld [vmem:[#allocation5 + $0x58] sm:$0xff] }
 0x481   : > { %v2793_v54 = vsel %vm1087_vm4, %v2778_v53, %v2786_v24  ;;  %v2797_v55 = vsel %vm1087_vm4, %v2786_v24, %v2778_v53 }
 0x482   : > { %4323 = vmatprep.subr.bf16.mxu0 %v4322_v29  ;;  %v2801_v7 = vmul.f32 %v2797_v55, %v5288_v27  ;;  %v2802_v39 = vmul.f32 %v2793_v54, %v5291_v28  ;;  %v4336_v54 = vpack.c.bf16 %v5639_v18, %v5630_v12 }
 0x483   : > { %4162 = vmatmul.mubr.msk.f32.gmra.mrb[26].mxu0 %vm505_vm0, %v2391_v4 }
 0x484   : > { %v2782_v35 = vpop.permute.xlu1 %2781  ;;  %4325 = vmatpush1.bf16.msra.mxu0 %v4324_v30  ;;  %v2788_v36 = vpop.permute.xlu0 %2787  ;;  %2744 = vmatprep.mubr.f32.mxu0 %v4749_v0  ;;  %v4334_v30 = vpack.c.bf16 %v5649_v45, %v5637_v47  ;;  %v4338_v47 = vpack.c.bf16 %v5664_v56, %v5658_v52  ;;  %v2812_v52 = vld [vmem:[#allocation5 + $0x70] sm:$0xff] }
 0x485   : > { %v2794_v19 = vsel %vm1087_vm4, %v2780_v3, %v2788_v36  ;;  %v2798_v31 = vsel %vm1087_vm4, %v2788_v36, %v2780_v3  ;;  %v2811_v36 = vld [vmem:[#allocation5 + $0x68] sm:$0xff] }
 0x486   : > { %v2803_v15 = vmul.f32 %v2798_v31, %v5288_v27  ;;  %v2804_v50 = vmul.f32 %v2794_v19, %v5291_v28  ;;  %v4340_v19 = vpack.c.bf16 %v5656_v34, %v5647_v59  ;;  %v2813_v34 = vld [vmem:[#allocation5 + $0x78] sm:$0xff] }
 0x487   : > { %4163 = vmatmul.mubr.msk.f32.vlgmr.msra.gmra.mrb[20].mxu0 %vm505_vm0, %v2664_v11 }
 0x488   : > { %v2790_v37 = vpop.permute.xlu1 %2789  ;;  %v4328_v9 = vpack.c.bf16 %v2803_v15, %v2801_v7  ;;  %v2784_v33 = vpop.permute.xlu0 %2783  ;;  %2750 = vmatprep.mubr.f32.mxu0 %v4749_v0  ;;  %v4326_v41 = vpack.c.bf16 %v2804_v50, %v2802_v39 }
 0x489   : > { %v2795_v43 = vsel %vm1087_vm4, %v2782_v35, %v2790_v37  ;;  %v2799_v42 = vsel %vm1087_vm4, %v2790_v37, %v2782_v35 }
 0x48a   : > { %4327 = vmatprep.subr.bf16.mxu0 %v4326_v41  ;;  %v2805_v22 = vmul.f32 %v2799_v42, %v5288_v27  ;;  %v2806_v57 = vmul.f32 %v2795_v43, %v5291_v28 }
 0x48b   : > { %4164 = vmatmul.mubr.msk.f32.gmra.mrb[22].mxu0 %vm505_vm0, %v2665_v40 }
 0x48c   : > { %v3038_v46 = vpop.permute.xlu1 %3037  ;;  %4329 = vmatpush1.bf16.msra.mxu0 %v4328_v9  ;;  %v2792_v25 = vpop.permute.xlu0 %2791  ;;  %2756 = vmatprep.mubr.f32.mxu0 %v4749_v0 }
 0x48d   : > { %v2796_v51 = vsel %vm1087_vm4, %v2784_v33, %v2792_v25  ;;  %v2800_v53 = vsel %vm1087_vm4, %v2792_v25, %v2784_v33 }
 0x48e   : > { %v2807_v60 = vmul.f32 %v2800_v53, %v5288_v27  ;;  %v2808_v61 = vmul.f32 %v2796_v51, %v5291_v28  ;;  %v2810_v28 = vld [vmem:[#allocation5 + $0x60] sm:$0xff] }
 0x48f   : > { %4165 = vmatmul.mubr.msk.f32.gmra.mrb[24].mxu0 %vm505_vm0, %v2666_v10 }
 0x490   : > { %v3046_v62 = vpop.permute.xlu1 %3045  ;;  %v4332_v2 = vpack.c.bf16 %v2807_v60, %v2805_v22  ;;  %v3040_v32 = vpop.permute.xlu0 %3039  ;;  %2762 = vmatprep.mubr.f32.mxu0 %v4749_v0  ;;  %v4330_v24 = vpack.c.bf16 %v2808_v61, %v2806_v57 }
 0x491   : > { %v3057_v29 = vsel %vm1361_vm5, %v3046_v62, %v3038_v46  ;;  %v3053_v15 = vsel %vm1361_vm5, %v3038_v46, %v3046_v62  ;;  %v2924_v46 = vld [vmem:[#allocation5 + $0x80] sm:$0xff] }
 0x492   : > { %4331 = vmatprep.subr.bf16.mxu0 %v4330_v24  ;;  %v3062_v11 = vmul.f32 %v3057_v29, %v5336_v6  ;;  %v3061_v41 = vmul.f32 %v3053_v15, %v5353_v26 }
 0x493   : > { %4166 = vmatmul.mubr.msk.f32.gmra.mrb[26].mxu0 %vm505_vm0, %v2667_v23 }
 0x494   : > { %v3042_v3 = vpop.permute.xlu1 %3041  ;;  %4333 = vmatpush1.bf16.msra.mxu0 %v4332_v2  ;;  %v3048_v27 = vpop.permute.xlu0 %3047  ;;  %2890 = vmatprep.mubr.f32.mxu0 %v4749_v0 }
 0x495   : > { %v3058_v4 = vsel %vm1361_vm5, %v3048_v27, %v3040_v32  ;;  %4335 = vmatprep.subr.bf16.mxu0 %v4334_v30  ;;  %v3054_v56 = vsel %vm1361_vm5, %v3040_v32, %v3048_v27  ;;  %v2926_v27 = vld [vmem:[#allocation5 + $0x90] sm:$0xff] }
 0x496   : > { %v3064_v55 = vmul.f32 %v3058_v4, %v5336_v6  ;;  %v3063_v50 = vmul.f32 %v3054_v56, %v5353_v26 }
 0x497   : > { %4167 = vmatmul.mubr.msk.f32.vlgmr.msra.gmra.mrb[20].mxu0 %vm505_vm0, %v2810_v28 }
 0x498   : > { %v3050_v45 = vpop.permute.xlu1 %3049  ;;  %4337 = vmatpush1.bf16.msra.mxu0 %v4336_v54  ;;  %v3044_v35 = vpop.permute.xlu0 %3043  ;;  %2896 = vmatprep.mubr.f32.mxu0 %v4749_v0  ;;  %v4342_v12 = vpack.c.bf16 %v3064_v55, %v3062_v11  ;;  %v4344_v53 = vpack.c.bf16 %v3063_v50, %v3061_v41  ;;  %v2927_v54 = vld [vmem:[#allocation5 + $0x98] sm:$0xff] }
 0x499   : > { %4339 = vmatprep.subr.bf16.mxu0 %v4338_v47  ;;  %v3059_v37 = vsel %vm1361_vm5, %v3050_v45, %v3042_v3  ;;  %v3055_v25 = vsel %vm1361_vm5, %v3042_v3, %v3050_v45 }
 0x49a   : > { %v3066_v10 = vmul.f32 %v3059_v37, %v5336_v6  ;;  %v3065_v2 = vmul.f32 %v3055_v25, %v5353_v26 }
 0x49b   : > { %4168 = vmatmul.mubr.msk.f32.gmra.mrb[22].mxu0 %vm505_vm0, %v2811_v36 }
 0x49c   : > { %v3184_v18 = vpop.permute.xlu1 %3183  ;;  %4341 = vmatpush1.bf16.msra.mxu0 %v4340_v19  ;;  %v3052_v31 = vpop.permute.xlu0 %3051  ;;  %2902 = vmatprep.mubr.f32.mxu0 %v4749_v0 }
 0x49d   : > { %4343 = vmatprep.subr.bf16.mxu0 %v4342_v12  ;;  %v3060_v39 = vsel %vm1361_vm5, %v3052_v31, %v3044_v35  ;;  %v3056_v9 = vsel %vm1361_vm5, %v3044_v35, %v3052_v31 }
 0x49e   : > { %v3068_v33 = vmul.f32 %v3060_v39, %v5336_v6  ;;  %v3067_v22 = vmul.f32 %v3056_v9, %v5353_v26  ;;  %v2925_v6 = vld [vmem:[#allocation5 + $0x88] sm:$0xff] }
 0x49f   : > { %4169 = vmatmul.mubr.msk.f32.gmra.mrb[24].mxu0 %vm505_vm0, %v2812_v52 }
 0x4a0   : > { %v3192_v7 = vpop.permute.xlu1 %3191  ;;  %v3186_v59 = vpop.permute.xlu0 %3185  ;;  %2908 = vmatprep.mubr.f32.mxu0 %v4749_v0  ;;  %v4346_v61 = vpack.c.bf16 %v3068_v33, %v3066_v10  ;;  %v4348_v24 = vpack.c.bf16 %v3067_v22, %v3065_v2 }
 0x4a1   : > { %v3203_v43 = vsel %vm1521_vm6, %v3192_v7, %v3184_v18  ;;  %v3199_v55 = vsel %vm1521_vm6, %v3184_v18, %v3192_v7  ;;  %v3070_v18 = vld [vmem:[#allocation5 + $0xa0] sm:$0xff] }
 0x4a2   : > { %v3208_v60 = vmul.f32 %v3203_v43, %v5380_v44  ;;  %v3207_v19 = vmul.f32 %v3199_v55, %v5396_v1 }
 0x4a3   : > { %4170 = vmatmul.mubr.msk.f32.gmra.mrb[26].mxu0 %vm505_vm0, %v2813_v34 }
 0x4a4   : > { %v3188_v40 = vpop.permute.xlu1 %3187  ;;  %v3194_v42 = vpop.permute.xlu0 %3193  ;;  %3004 = vmatprep.mubr.f32.mxu0 %v4749_v0 }
 0x4a5   : > { %v3204_v51 = vsel %vm1521_vm6, %v3194_v42, %v3186_v59  ;;  %v3200_v26 = vsel %vm1521_vm6, %v3186_v59, %v3194_v42 }
 0x4a6   : > { %v3210_v57 = vmul.f32 %v3204_v51, %v5380_v44  ;;  %v3209_v47 = vmul.f32 %v3200_v26, %v5396_v1  ;;  %v3073_v51 = vld [vmem:[#allocation5 + $0xb8] sm:$0xff] }
 0x4a7   : > { %4171 = vmatmul.mubr.msk.f32.vlgmr.msra.gmra.mrb[20].mxu0 %vm505_vm0, %v2924_v46  ;;  %v3072_v46 = vld [vmem:[#allocation5 + $0xb0] sm:$0xff] }
 0x4a8   : > { %v3196_v62 = vpop.permute.xlu1 %3195  ;;  %4345 = vmatpush1.bf16.msra.mxu0 %v4344_v53  ;;  %v3190_v32 = vpop.permute.xlu0 %3189  ;;  %3010 = vmatprep.mubr.f32.mxu0 %v4749_v0  ;;  %v4350_v23 = vpack.c.bf16 %v3210_v57, %v3208_v60  ;;  %v4352_v39 = vpack.c.bf16 %v3209_v47, %v3207_v19 }
 0x4a9   : > { %4347 = vmatprep.subr.bf16.mxu0 %v4346_v61  ;;  %v3205_v45 = vsel %vm1521_vm6, %v3196_v62, %v3188_v40  ;;  %v3201_v52 = vsel %vm1521_vm6, %v3188_v40, %v3196_v62 }
 0x4aa   : > { %v3212_v56 = vmul.f32 %v3205_v45, %v5380_v44  ;;  %v3211_v9 = vmul.f32 %v3201_v52, %v5396_v1 }
 0x4ab   : > { %4172 = vmatmul.mubr.msk.f32.gmra.mrb[22].mxu0 %vm505_vm0, %v2925_v6 }
 0x4ac   : > { %v3330_v30 = vpop.permute.xlu1 %3329  ;;  %4349 = vmatpush1.bf16.msra.mxu0 %v4348_v24  ;;  %v3198_v3 = vpop.permute.xlu0 %3197  ;;  %3016 = vmatprep.mubr.f32.mxu0 %v4749_v0 }
 0x4ad   : > { %4351 = vmatprep.subr.bf16.mxu0 %v4350_v23  ;;  %v3206_v4 = vsel %vm1521_vm6, %v3198_v3, %v3190_v32  ;;  %v3202_v35 = vsel %vm1521_vm6, %v3190_v32, %v3198_v3  ;;  %v3216_v23 = vld [vmem:[#allocation5 + $0xc0] sm:$0xff] }
 0x4ae   : > { %v3214_v36 = vmul.f32 %v3206_v4, %v5380_v44  ;;  %v3213_v59 = vmul.f32 %v3202_v35, %v5396_v1  ;;  %v3071_v44 = vld [vmem:[#allocation5 + $0xa8] sm:$0xff] }
 0x4af   : > { %4173 = vmatmul.mubr.msk.f32.gmra.mrb[24].mxu0 %vm505_vm0, %v2926_v27 }
 0x4b0   : > { %v3338_v28 = vpop.permute.xlu1 %3337  ;;  %v3332_v29 = vpop.permute.xlu0 %3331  ;;  %3022 = vmatprep.mubr.f32.mxu0 %v4749_v0  ;;  %v4354_v50 = vpack.c.bf16 %v3214_v36, %v3212_v56  ;;  %v4356_v41 = vpack.c.bf16 %v3213_v59, %v3211_v9  ;;  %v3218_v36 = vld [vmem:[#allocation5 + $0xd0] sm:$0xff] }
 0x4b1   : > { %v3349_v12 = vsel %vm1681_vm7, %v3338_v28, %v3330_v30  ;;  %v3345_v53 = vsel %vm1681_vm7, %v3330_v30, %v3338_v28 }
 0x4b2   : > { %v3354_v15 = vmul.f32 %v3349_v12, %v5422_v8  ;;  %v3353_v2 = vmul.f32 %v3345_v53, %v5438_v48 }
 0x4b3   : > { %4174 = vmatmul.mubr.msk.f32.gmra.mrb[26].mxu0 %vm505_vm0, %v2927_v54 }
 0x4b4   : > { %v3334_v11 = vpop.permute.xlu1 %3333  ;;  %v3340_v31 = vpop.permute.xlu0 %3339  ;;  %3150 = vmatprep.mubr.f32.mxu0 %v4749_v0 }
 0x4b5   : > { %v3350_v7 = vsel %vm1681_vm7, %v3340_v31, %v3332_v29  ;;  %v3346_v1 = vsel %vm1681_vm7, %v3332_v29, %v3340_v31  ;;  %v3219_v31 = vld [vmem:[#allocation5 + $0xd8] sm:$0xff] }
 0x4b6   : > { %v3356_v34 = vmul.f32 %v3350_v7, %v5422_v8  ;;  %v3355_v57 = vmul.f32 %v3346_v1, %v5438_v48 }
 0x4b7   : > { %4175 = vmatmul.mubr.msk.f32.vlgmr.msra.gmra.mrb[20].mxu0 %vm505_vm0, %v3070_v18 }
 0x4b8   : > { %v3342_v37 = vpop.permute.xlu1 %3341  ;;  %4353 = vmatpush1.bf16.msra.mxu0 %v4352_v39  ;;  %v3336_v33 = vpop.permute.xlu0 %3335  ;;  %3156 = vmatprep.mubr.f32.mxu0 %v4749_v0  ;;  %v4358_v40 = vpack.c.bf16 %v3356_v34, %v3354_v15  ;;  %v4360_v27 = vpack.c.bf16 %v3355_v57, %v3353_v2  ;;  %v3362_v34 = vld [vmem:[#allocation5 + $0xe0] sm:$0xff] }
 0x4b9   : > { %4355 = vmatprep.subr.bf16.mxu0 %v4354_v50  ;;  %v3351_v60 = vsel %vm1681_vm7, %v3342_v37, %v3334_v11  ;;  %v3347_v24 = vsel %vm1681_vm7, %v3334_v11, %v3342_v37 }
 0x4ba   : > { %v3358_v30 = vmul.f32 %v3351_v60, %v5422_v8  ;;  %v3357_v54 = vmul.f32 %v3347_v24, %v5438_v48 }
 0x4bb   : > { %4176 = vmatmul.mubr.msk.f32.gmra.mrb[22].mxu0 %vm505_vm0, %v3071_v44 }
 0x4bc   : > { %v3476_v43 = vpop.permute.xlu1 %3475  ;;  %4357 = vmatpush1.bf16.msra.mxu0 %v4356_v41  ;;  %v3344_v42 = vpop.permute.xlu0 %3343  ;;  %3162 = vmatprep.mubr.f32.mxu0 %v4749_v0 }
 0x4bd   : > { %4359 = vmatprep.subr.bf16.mxu0 %v4358_v40  ;;  %v3352_v25 = vsel %vm1681_vm7, %v3344_v42, %v3336_v33  ;;  %v3348_v61 = vsel %vm1681_vm7, %v3336_v33, %v3344_v42  ;;  %v3363_v40 = vld [vmem:[#allocation5 + $0xe8] sm:$0xff]  ;;  %v3510_v42 = vld [vmem:[#allocation5 + $0x110] sm:$0xff] }
 0x4be   : > { %v3360_v62 = vmul.f32 %v3352_v25, %v5422_v8  ;;  %v3359_v26 = vmul.f32 %v3348_v61, %v5438_v48  ;;  %v3217_v8 = vld [vmem:[#allocation5 + $0xc8] sm:$0xff] }
 0x4bf   : > { %4177 = vmatmul.mubr.msk.f32.gmra.mrb[24].mxu0 %vm505_vm0, %v3072_v46  ;;  %v3511_v46 = vld [vmem:[#allocation5 + $0x118] sm:$0xff] }
 0x4c0   : > { %v3478_v10 = vpop.permute.xlu0 %3477  ;;  %3168 = vmatprep.mubr.f32.mxu0 %v4749_v0  ;;  %v3484_v22 = vpop.permute.xlu1 %3483  ;;  %v4362_v29 = vpack.c.bf16 %v3360_v62, %v3358_v30  ;;  %v4364_v35 = vpack.c.bf16 %v3359_v26, %v3357_v54 }
 0x4c1   : > { %v3495_v32 = vsel %vm1841_vm8, %v3484_v22, %v3476_v43  ;;  %v3491_v18 = vsel %vm1841_vm8, %v3476_v43, %v3484_v22  ;;  %v3509_v43 = vld [vmem:[#allocation5 + $0x108] sm:$0xff] }
 0x4c2   : > { %v3500_v4 = vmul.f32 %v3495_v32, %v5472_v14  ;;  %v3499_v59 = vmul.f32 %v3491_v18, %v5488_v38 }
 0x4c3   : > { %4178 = vmatmul.mubr.msk.f32.gmra.mrb[26].mxu0 %vm505_vm0, %v3073_v51 }
 0x4c4   : > { %v3486_v6 = vpop.permute.xlu0 %3485  ;;  %3296 = vmatprep.mubr.f32.mxu0 %v4749_v0  ;;  %v3480_v47 = vpop.permute.xlu1 %3479 }
 0x4c5   : > { %v3496_v3 = vsel %vm1841_vm8, %v3486_v6, %v3478_v10  ;;  %v3492_v48 = vsel %vm1841_vm8, %v3478_v10, %v3486_v6 }
 0x4c6   : > { %v3502_v28 = vmul.f32 %v3496_v3, %v5472_v14  ;;  %v3501_v52 = vmul.f32 %v3492_v48, %v5488_v38 }
 0x4c7   : > { %4179 = vmatmul.mubr.msk.f32.vlgmr.msra.gmra.mrb[20].mxu0 %vm505_vm0, %v3216_v23 }
 0x4c8   : > { %4361 = vmatpush1.bf16.msra.mxu0 %v4360_v27  ;;  %v3482_v55 = vpop.permute.xlu0 %3481  ;;  %3302 = vmatprep.mubr.f32.mxu0 %v4749_v0  ;;  %v4366_v45 = vpack.c.bf16 %v3502_v28, %v3500_v4  ;;  %v3488_v19 = vpop.permute.xlu1 %3487  ;;  %v4368_v37 = vpack.c.bf16 %v3501_v52, %v3499_v59  ;;  %v4616_v59 = vld [vmem:[%s6284_s12 + $0x18] sm:$0xff] }
 0x4c9   : > { %4363 = vmatprep.subr.bf16.mxu0 %v4362_v29  ;;  %v3497_v56 = vsel %vm1841_vm8, %v3488_v19, %v3480_v47  ;;  %v3493_v15 = vsel %vm1841_vm8, %v3480_v47, %v3488_v19 }
 0x4ca   : > { %v3504_v50 = vmul.f32 %v3497_v56, %v5472_v14  ;;  %v3503_v44 = vmul.f32 %v3493_v15, %v5488_v38 }
 0x4cb   : > { %4180 = vmatmul.mubr.msk.f32.gmra.mrb[22].mxu0 %vm505_vm0, %v3217_v8 }
 0x4cc   : > { %4365 = vmatpush1.bf16.msra.mxu0 %v4364_v35  ;;  %3308 = vmatprep.mubr.f32.mxu0 %v4749_v0  ;;  %v3490_v11 = vpop.permute.xlu0 %3489 }
 0x4cd   : > { %4367 = vmatprep.subr.bf16.mxu0 %v4366_v45  ;;  %v3498_v12 = vsel %vm1841_vm8, %v3490_v11, %v3482_v55  ;;  %v3494_v7 = vsel %vm1841_vm8, %v3482_v55, %v3490_v11 }
 0x4ce   : > { %v3506_v39 = vmul.f32 %v3498_v12, %v5472_v14  ;;  %v3505_v9 = vmul.f32 %v3494_v7, %v5488_v38  ;;  %v3365_v14 = vld [vmem:[#allocation5 + $0xf8] sm:$0xff]  ;;  %v3508_v38 = vld [vmem:[#allocation5 + $0x100] sm:$0xff]  ;;  %v4614_v7 = vld [vmem:[%s6284_s12 + $0x8] sm:$0xff] }
 0x4cf   : > { %4181 = vmatmul.mubr.msk.f32.gmra.mrb[24].mxu0 %vm505_vm0, %v3218_v36 }
 0x4d0   : > { %3314 = vmatprep.mubr.f32.mxu0 %v4749_v0  ;;  %v4370_v33 = vpack.c.bf16 %v3506_v39, %v3504_v50  ;;  %v4372_v41 = vpack.c.bf16 %v3505_v9, %v3503_v44  ;;  %v4615_v39 = vld [vmem:[%s6284_s12 + $0x10] sm:$0xff] }
 0x4d3   : > { %4182 = vmatmul.mubr.msk.f32.gmra.mrb[26].mxu0 %vm505_vm0, %v3219_v31  ;;  %v4613_v31 = vld [vmem:[%s6284_s12] sm:$0xff] }
 0x4d4   : > { %3442 = vmatprep.mubr.f32.mxu0 %v4749_v0 }
 0x4d7   : > { %4183 = vmatmul.mubr.msk.f32.vlgmr.msra.gmra.mrb[20].mxu0 %vm505_vm0, %v3362_v34 }
 0x4d8   : > { %4369 = vmatpush1.bf16.msra.mxu0 %v4368_v37  ;;  %3448 = vmatprep.mubr.f32.mxu0 %v4749_v0 }
 0x4d9   : > { %4371 = vmatprep.subr.bf16.mxu0 %v4370_v33  ;;  %v3628_v53 = vpop.permute.xlu1 %3627 }
 0x4db   : > { %4184 = vmatmul.mubr.msk.f32.gmra.mrb[22].mxu0 %vm505_vm0, %v3363_v40 }
 0x4dc   : > { %4373 = vmatpush1.bf16.msra.mxu0 %v4372_v41  ;;  %3454 = vmatprep.mubr.f32.mxu0 %v4749_v0 }
 0x4dd   : > { %v3633_v10 = vpop.permute.xlu0 %3632  ;;  %v3638_v3 = vpop.permute.xlu1 %3637 }
 0x4df   : > { %4185 = vmatmul.mubr.msk.f32.gmra.mrb[24].mxu0 %vm505_vm0, %v3364_v17 }
 0x4e0   : > { %3460 = vmatprep.mubr.f32.mxu0 %v4749_v0 }
 0x4e1   : > { %v3643_v24 = vpop.permute.xlu0 %3642 }
 0x4e3   : > { %4186 = vmatmul.mubr.msk.f32.gmra.mrb[26].mxu0 %vm505_vm0, %v3365_v14 }
 0x4e4   : > { %3588 = vmatprep.mubr.f32.mxu0 %v4749_v0 }
 0x4e7   : > { %4187 = vmatmul.mubr.msk.f32.vlgmr.msra.gmra.mrb[20].mxu0 %vm505_vm0, %v3508_v38 }
 0x4e8   : > { %3594 = vmatprep.mubr.f32.mxu0 %v4749_v0 }
 0x4eb   : > { %4188 = vmatmul.mubr.msk.f32.gmra.mrb[22].mxu0 %vm505_vm0, %v3509_v43 }
 0x4ec   : > { %3600 = vmatprep.mubr.f32.mxu0 %v4749_v0 }
 0x4ef   : > { %4189 = vmatmul.mubr.msk.f32.gmra.mrb[24].mxu0 %vm505_vm0, %v3510_v42 }
 0x4f0   : > { %3606 = vmatprep.mubr.f32.mxu0 %v4749_v0 }
 0x4f3   : > { %4190 = vmatmul.mubr.msk.f32.gmra.mrb[26].mxu0 %vm505_vm0, %v3511_v46 }
 0x5ba   : > { %v3590_v1 = vpop.f32.mrb[20].mxu0 }
 0x5bb   : > { %v3592_v25 = vpop.f32.mrb[21].mxu0  ;;  %v6099_v62 = vadd.f32 %v3628_v53, %v3590_v1 }
 0x5bc   : > { %v6095_v60 = vadd.f32 %v3628_v53, %v3592_v25 }
 0x5bd   : > { %v3758_v11 = vmul.f32 %v6099_v62, %v6099_v62 }
 0x5be   : > { %v3596_v51 = vpop.f32.mrb[22].mxu0  ;;  %v3759_v55 = vmul.f32 %v6095_v60, %v6095_v60 }
 0x5bf   : > { %v6093_v22 = vadd.f32 %v3633_v10, %v3596_v51  ;;  %v3598_v57 = vpop.f32.mrb[23].mxu0 }
 0x5c0   : > { %v6097_v61 = vadd.f32 %v3633_v10, %v3598_v57 }
 0x5c1   : > { %v4376_v6 = vpack.c.bf16 %v6093_v22, %v6099_v62  ;;  %v3760_v47 = vmul.f32 %v6093_v22, %v6093_v22 }
 0x5c2   : > { %v3602_v2 = vpop.f32.mrb[24].mxu0  ;;  %v4374_v32 = vpack.c.bf16 %v6097_v61, %v6095_v60  ;;  %v3761_v28 = vmul.f32 %v6097_v61, %v6097_v61 }
 0x5c3   : > { %v3604_v23 = vpop.f32.mrb[25].mxu0  ;;  %v6113_v54 = vadd.f32 %v3638_v3, %v3602_v2  ;;  %v4384_v19 = vpack.c.bf16 %v3760_v47, %v3758_v11 }
 0x5c4   : > { %4375 = vmatprep.subr.bf16.mxu1 %v4374_v32  ;;  %v6109_v4 = vadd.f32 %v3638_v3, %v3604_v23  ;;  %v4382_v36 = vpack.c.bf16 %v3761_v28, %v3759_v55  ;;  %v484_v23 = vld [vmem:[%s6275_s3 + $0x18] sm:$0xff] }
 0x5c5   : > { %4377 = vmatpush1.bf16.msra.mxu1 %v4376_v6  ;;  %v3762_v52 = vmul.f32 %v6113_v54, %v6113_v54  ;;  %v483_v6 = vld [vmem:[%s6275_s3 + $0x10] sm:$0xff] }
 0x5c6   : > { %v3608_v30 = vpop.f32.mrb[26].mxu0  ;;  %v3763_v48 = vmul.f32 %v6109_v4, %v6109_v4 }
 0x5c7   : > { %v6105_v27 = vadd.f32 %v3643_v24, %v3608_v30  ;;  %v3610_v26 = vpop.f32.mrb[27].mxu0  ;;  %v3915_v30 = vpop.permute.xlu1 %3914 }
 0x5c8   : > { %v6111_v29 = vadd.f32 %v3643_v24, %v3610_v26  ;;  %v3910_v24 = vpop.permute.xlu0 %3909 }
 0x5c9   : > { %v4380_v45 = vpack.c.bf16 %v6105_v27, %v6113_v54  ;;  %v3764_v12 = vmul.f32 %v6105_v27, %v6105_v27 }
 0x5ca   : > { %v4378_v8 = vpack.c.bf16 %v6111_v29, %v6109_v4  ;;  %v3765_v35 = vmul.f32 %v6111_v29, %v6111_v29 }
 0x5cb   : > { %v4388_v56 = vpack.c.bf16 %v3764_v12, %v3762_v52  ;;  %v6168_v26 = vpop.permute.xlu1 %3919 }
 0x5cc   : > { %4379 = vmatprep.subr.bf16.mxu1 %v4378_v8  ;;  %v4386_v18 = vpack.c.bf16 %v3765_v35, %v3763_v48  ;;  %v6166_v3 = vpop.permute.xlu0 %3924 }
 0x5cd   : > { %4381 = vmatpush1.bf16.msra.mxu1 %v4380_v45 }
 0x5ce   : > { %4383 = vmatprep.subr.bf16.mxu1 %v4382_v36 }
 0x5cf   : > { %v3942_v55 = vpop.permute.xlu1 %3941 }
 0x5d0   : > { %4191 = vmatmul.mubr.msk.f32.vlgmr.msra.gmra.mrb[12].mxu1 %vm505_vm0, %v4613_v31  ;;  %v6170_v28 = vpop.permute.xlu0 %3946 }
 0x5d1   : > { %4385 = vmatpush1.bf16.msra.mxu1 %v4384_v19  ;;  %3723 = vmatprep.mubr.f32.mxu1 %v4749_v0 }
 0x5d2   : > { %4387 = vmatprep.subr.bf16.mxu1 %v4386_v18 }
 0x5d3   : > { %v6174_v47 = vpop.permute.xlu1 %3951 }
 0x5d4   : > { %4192 = vmatmul.mubr.msk.f32.gmra.mrb[14].mxu1 %vm505_vm0, %v4614_v7  ;;  %v6172_v8 = vpop.permute.xlu0 %3956 }
 0x5d5   : > { %4389 = vmatpush1.bf16.msra.mxu1 %v4388_v56  ;;  %3729 = vmatprep.mubr.f32.mxu1 %v4749_v0 }
 0x5d7   : > { %v488_v35 = vpop.permute.xlu1 %487 }
 0x5d8   : > { %4193 = vmatmul.mubr.msk.f32.gmra.mrb[16].mxu1 %vm505_vm0, %v4615_v39  ;;  %v6176_v45 = vpop.permute.xlu0 %492 }
 0x5d9   : > { %3735 = vmatprep.mubr.f32.mxu1 %v4749_v0 }
 0x5dc   : > { %4194 = vmatmul.mubr.msk.f32.gmra.mrb[18].mxu1 %vm505_vm0, %v4616_v59 }
 0x5dd   : > { %3830 = vmatprep.mubr.f32.mxu1 %v4749_v0 }
 0x5e0   : > { %4195 = vmatmul.mubr.msk.f32.vlgmr.msra.gmra.mrb[20].mxu1 %vm505_vm0, %v4613_v31 }
 0x5e1   : > { %3836 = vmatprep.mubr.f32.mxu1 %v4749_v0 }
 0x5e4   : > { %4196 = vmatmul.mubr.msk.f32.gmra.mrb[22].mxu1 %vm505_vm0, %v4614_v7 }
 0x5e5   : > { %3842 = vmatprep.mubr.f32.mxu1 %v4749_v0 }
 0x5e8   : > { %4197 = vmatmul.mubr.msk.f32.gmra.mrb[24].mxu1 %vm505_vm0, %v4615_v39 }
 0x5e9   : > { %3848 = vmatprep.mubr.f32.mxu1 %v4749_v0 }
 0x5ec   : > { %4198 = vmatmul.mubr.msk.f32.gmra.mrb[26].mxu1 %vm505_vm0, %v4616_v59 }
 0x6a3   : > { %v3719_v34 = vpop.f32.mrb[12].mxu1 }
 0x6a4   : > { %v3721_v15 = vpop.f32.mrb[13].mxu1 }
 0x6a5   : > { %v3742_v50 = vadd.f32 %v3721_v15, %v3719_v34 }
 0x6a7   : > { %3743 = vadd.xlane.f32.xlu1 %v3742_v50  ;;  %v3725_v37 = vpop.f32.mrb[14].mxu1 }
 0x6a8   : > { %v3727_v9 = vpop.f32.mrb[15].mxu1 }
 0x6a9   : > { %v3745_v33 = vadd.f32 %v3727_v9, %v3725_v37 }
 0x6ab   : > { %3746 = vadd.xlane.f32.xlu0 %v3745_v33  ;;  %v3731_v44 = vpop.f32.mrb[16].mxu1 }
 0x6ac   : > { %v3733_v40 = vpop.f32.mrb[17].mxu1 }
 0x6ad   : > { %v3748_v41 = vadd.f32 %v3733_v40, %v3731_v44 }
 0x6af   : > { %3749 = vadd.xlane.f32.xlu0 %v3748_v41  ;;  %v3737_v17 = vpop.f32.mrb[18].mxu1 }
 0x6b0   : > { %v3739_v14 = vpop.f32.mrb[19].mxu1 }
 0x6b1   : > { %v3751_v38 = vadd.f32 %v3739_v14, %v3737_v17 }
 0x6b3   : > { %v3832_v43 = vpop.f32.mrb[20].mxu1  ;;  %3752 = vadd.xlane.f32.xlu1 %v3751_v38 }
 0x6b4   : > { %v3834_v0 = vpop.f32.mrb[21].mxu1 }
 0x6b5   : > { %v3855_v42 = vadd.f32 %v3834_v0, %v3832_v43 }
 0x6b7   : > { %3856 = vadd.xlane.f32.xlu0 %v3855_v42  ;;  %v3838_v46 = vpop.f32.mrb[22].mxu1 }
 0x6b8   : > { %v3840_v1 = vpop.f32.mrb[23].mxu1 }
 0x6b9   : > { %v3858_v25 = vadd.f32 %v3840_v1, %v3838_v46 }
 0x6bb   : > { %v3844_v10 = vpop.f32.mrb[24].mxu1  ;;  %3859 = vadd.xlane.f32.xlu1 %v3858_v25 }
 0x6bc   : > { %v3846_v51 = vpop.f32.mrb[25].mxu1 }
 0x6bd   : > { %v3861_v53 = vadd.f32 %v3846_v51, %v3844_v10 }
 0x6bf   : > { %3862 = vadd.xlane.f32.xlu0 %v3861_v53  ;;  %v3850_v57 = vpop.f32.mrb[26].mxu1 }
 0x6c0   : > { %v3852_v2 = vpop.f32.mrb[27].mxu1 }
 0x6c1   : > { %v3864_v32 = vadd.f32 %v3852_v2, %v3850_v57 }
 0x6c3   : > { %3865 = vadd.xlane.f32.xlu1 %v3864_v32 }
 0x6d4   : > { %497 = vperm.xlu1 %4596, %v483_v6  }
 0x6d5   : > { %502 = vperm.xlu0 %4595, %v484_v23  }
 0x734   : > { %v3744_v11 = vpop.xlane.xlu1 %3743 }
 0x735   : > { %v3754_v19 = vmul.f32 0.00390625, %v3744_v11 }
 0x737   : > { %v3871_v56 = vmul.f32 %v3754_v19, %v3754_v19  ;;  %v3879_v46 = vsub.f32 %v6099_v62, %v3754_v19  ;;  %v3880_v1 = vsub.f32 %v6095_v60, %v3754_v19  ;;  %v585_v60 = vadd.f32 %v5606_v16, %v488_v35 }
 0x738   : > { %v3747_v36 = vpop.xlane.xlu0 %3746  ;;  %v587_v19 = vadd.f32 %v5608_v20, %v488_v35  ;;  %v591_v16 = vadd.f32 %v5610_v5, %v6176_v45  ;;  %v593_v20 = vadd.f32 %v5612_v21, %v6176_v45 }
 0x739   : > { %v3755_v18 = vmul.f32 0.00390625, %v3747_v36 }
 0x73b   : > { %v3872_v15 = vmul.f32 %v3755_v18, %v3755_v18  ;;  %v3881_v57 = vsub.f32 %v6093_v22, %v3755_v18  ;;  %v3882_v2 = vsub.f32 %v6097_v61, %v3755_v18 }
 0x73c   : > { %v3750_v48 = vpop.xlane.xlu0 %3749 }
 0x73d   : > { %v3756_v59 = vmul.f32 0.00390625, %v3750_v48 }
 0x73f   : > { %v3873_v40 = vmul.f32 %v3756_v59, %v3756_v59  ;;  %v3883_v61 = vsub.f32 %v6113_v54, %v3756_v59 }
 0x740   : > { %v3753_v12 = vpop.xlane.xlu1 %3752 }
 0x741   : > { %v3757_v33 = vmul.f32 0.00390625, %v3753_v12 }
 0x743   : > { %v3874_v43 = vmul.f32 %v3757_v33, %v3757_v33  ;;  %v3886_v54 = vsub.f32 %v6111_v29, %v3757_v33 }
 0x744   : > { %v3857_v31 = vpop.xlane.xlu0 %3856 }
 0x745   : > { %v3867_v52 = vmul.f32 0.00390625, %v3857_v31 }
 0x747   : > { %v3875_v7 = vsub.f32 %v3867_v52, %v3871_v56 }
 0x748   : > { %v3860_v39 = vpop.xlane.xlu1 %3859 }
 0x749   : > { %v3887_v34 = vadd.f32 1e-05, %v3875_v7  ;;  %v3868_v50 = vmul.f32 0.00390625, %v3860_v39 }
 0x74b   : > { %4605 = vrsqrt.f32 %v3887_v34  ;;  %v3876_v37 = vsub.f32 %v3868_v50, %v3872_v15 }
 0x74c   : > { %v3863_v9 = vpop.xlane.xlu0 %3862 }
 0x74d   : > { %v3888_v44 = vadd.f32 1e-05, %v3876_v37  ;;  %v3869_v41 = vmul.f32 0.00390625, %v3863_v9 }
 0x74f   : > { %4607 = vrsqrt.f32 %v3888_v44  ;;  %v3877_v17 = vsub.f32 %v3869_v41, %v3873_v40 }
 0x750   : > { %v3866_v14 = vpop.xlane.xlu1 %3865 }
 0x751   : > { %v3889_v38 = vadd.f32 1e-05, %v3877_v17  ;;  %v3870_v0 = vmul.f32 0.00390625, %v3866_v14 }
 0x753   : > { %4609 = vrsqrt.f32 %v3889_v38  ;;  %v3878_v42 = vsub.f32 %v3870_v0, %v3874_v43 }
 0x754   : > { %v498_v50 = vpop.permute.xlu1 %497  ;;  %v503_v40 = vpop.permute.xlu0 %502 }
 0x755   : > { %v4606_v25 = vpop.eup %4605  ;;  %v3890_v10 = vadd.f32 1e-05, %v3878_v42  ;;  %v597_v17 = vadd.f32 %v5440_v49, %v498_v50  ;;  %v599_v14 = vadd.f32 %v5450_v58, %v498_v50  ;;  %v605_v42 = vadd.f32 %v5467_v13, %v503_v40 }
 0x756   : > { %v3895_v51 = vmul.f32 %v4606_v25, %v3879_v46  ;;  %v3896_v53 = vmul.f32 %v4606_v25, %v3880_v1 }
 0x757   : > { %4611 = vrsqrt.f32 %v3890_v10 }
 0x758   : > { %v3927_v32 = vmul.f32 %v3910_v24, %v3895_v51  ;;  %v3928_v6 = vmul.f32 %v3910_v24, %v3896_v53  ;;  %v3884_v24 = vsub.f32 %v6109_v4, %v3756_v59 }
 0x759   : > { %v4608_v23 = vpop.eup %4607 }
 0x75a   : > { %v3959_v36 = vadd.f32 %v3942_v55, %v3927_v32  ;;  %v3960_v11 = vadd.f32 %v3942_v55, %v3928_v6  ;;  %v3897_v62 = vmul.f32 %v4608_v23, %v3881_v57  ;;  %v3898_v48 = vmul.f32 %v4608_v23, %v3882_v2 }
 0x75c   : > { %v3967_v12 = vmax.f32 %v3959_v36, 0.0  ;;  %v3968_v31 = vmax.f32 %v3960_v11, 0.0  ;;  %v3929_v52 = vmul.f32 %v3915_v30, %v3897_v62  ;;  %v3930_v56 = vmul.f32 %v3915_v30, %v3898_v48 }
 0x75d   : > { %v4610_v22 = vpop.eup %4609  ;;  %v3885_v30 = vsub.f32 %v6105_v27, %v3757_v33 }
 0x75e   : > { %v3975_v18 = vadd.f32 %v3967_v12, %v585_v60  ;;  %v3976_v7 = vadd.f32 %v3968_v31, %v587_v19  ;;  %v3961_v39 = vadd.f32 %v6170_v28, %v3929_v52  ;;  %v3962_v55 = vadd.f32 %v6170_v28, %v3930_v56 }
 0x75f   : > { %v3899_v35 = vmul.f32 %v4610_v22, %v3883_v61  ;;  %v3900_v34 = vmul.f32 %v4610_v22, %v3884_v24 }
 0x760   : > { %3983 = vst [vmem:[%s6197_s21] sm:$0xff] %v3975_v18  ;;  %3984 = vst [vmem:[%s6197_s21 + $0x8] sm:$0xff] %v3976_v7  ;;  %v3969_v4 = vmax.f32 %v3961_v39, 0.0  ;;  %v3970_v28 = vmax.f32 %v3962_v55, 0.0 }
 0x761   : > { %v4612_v5 = vpop.eup %4611  ;;  %v3931_v59 = vmul.f32 %v6168_v26, %v3899_v35  ;;  %v3932_v21 = vmul.f32 %v6168_v26, %v3900_v34 }
 0x762   : > { %v3977_v45 = vadd.f32 %v3969_v4, %v591_v16  ;;  %v3978_v15 = vadd.f32 %v3970_v28, %v593_v20  ;;  %v3901_v27 = vmul.f32 %v4612_v5, %v3885_v30  ;;  %v3902_v29 = vmul.f32 %v4612_v5, %v3886_v54 }
 0x763   : > { %v3963_v37 = vadd.f32 %v6174_v47, %v3931_v59  ;;  %v3964_v9 = vadd.f32 %v6174_v47, %v3932_v21 }
 0x764   : > { %3985 = vst [vmem:[%s6197_s21 + $0x10] sm:$0xff] %v3977_v45  ;;  %3986 = vst [vmem:[%s6197_s21 + $0x18] sm:$0xff] %v3978_v15  ;;  %v3933_v33 = vmul.f32 %v6166_v3, %v3901_v27  ;;  %v3934_v44 = vmul.f32 %v6166_v3, %v3902_v29  ;;  %v603_v3 = vadd.f32 %v5459_v63, %v503_v40 }
 0x765   : > { %v3971_v26 = vmax.f32 %v3963_v37, 0.0  ;;  %v3972_v41 = vmax.f32 %v3964_v9, 0.0 }
 0x766   : > { %v3965_v38 = vadd.f32 %v6172_v8, %v3933_v33  ;;  %v3966_v47 = vadd.f32 %v6172_v8, %v3934_v44 }
 0x767   : > { %v3979_v43 = vadd.f32 %v3971_v26, %v597_v17  ;;  %v3980_v0 = vadd.f32 %v3972_v41, %v599_v14 }
 0x768   : > { %v3973_v46 = vmax.f32 %v3965_v38, 0.0  ;;  %v3974_v49 = vmax.f32 %v3966_v47, 0.0 }
 0x769   : > { %3987 = vst [vmem:[%s6197_s21 + $0x20] sm:$0xff] %v3979_v43  ;;  %3988 = vst [vmem:[%s6197_s21 + $0x28] sm:$0xff] %v3980_v0 }
 0x76a   : > { %v3981_v58 = vadd.f32 %v3973_v46, %v603_v3  ;;  %v3982_v8 = vadd.f32 %v3974_v49, %v605_v42 }
 0x76c   : > { %3989 = vst [vmem:[%s6197_s21 + $0x30] sm:$0xff] %v3981_v58  ;;  %3990 = vst [vmem:[%s6197_s21 + $0x38] sm:$0xff] %v3982_v8 }
 0x76d   : > { %4686 = shalt.err (!%p4683_p11)
}
 0x76e   : > { %s4687_s23 = scalar_lea.hbm %s6222_s14, 1024  ;;  %s4691_s24 = scalar_lea.hbm %s6313_s30, 2048 }
 0x76f   : > { %p4688_p13 = scmp.ne.s32.totalorder %s6222_s14, %s4687_s23  ;;  %p4692_p6 = scmp.lt.u32.totalorder %s6222_s14, %s6313_s30 }
 0x770   : > { %p4693_p9 = scmp.lt.u32.totalorder %s4691_s24, %s4687_s23  ;;  %p4695_p12 = scmp.lt.u32.totalorder %s4687_s23, %s6222_s14 }
 0x771   : > { %p4689_p5 = pnand %p4688_p13, %p6314_p1 }
 0x772   : > { %p4694_p10 = por %p4693_p9, %p4692_p6 }
 0x773   : > { %p4690_p0 = pneg %p4689_p5 }
 0x774   : > { %p4696_p2 = por %p4695_p12, %p4694_p10 }
 0x776   : > { %p4697_p3 = pnand %p4696_p2, %p4690_p0 }
 0x778   : > { %4700 = shalt.err (!%p4697_p3)
}
 0x779   : > { %s4760_s28 = smov 256  }
 0x77a   : > { %4530 = dma.vmem_to_hbm [thread:$0]  (%p6314_p1), %s6224_s22, 1024, %s6222_s14, %s6230_s29, %s4760_s28, %s4760_s28, %s4750_s15  }
 0x77b PF: > { %s6315_s17 = sld [smem:[#allocation13_spill]]  ;;  %s6316_s19 = sld [smem:[#allocation11_spill]] }
 0x77c   : > { %s6317_s16 = sld [smem:[#allocation16_spill]] }
 0x781   : > { %p4547_p4 = scmp.ge.s32.totalorder %s6315_s17, 2  ;;  %s4020_s20 = sand.u32 1, %s6316_s19  }
 0x782   : > { %p6318_p7 = scmp.ne.s32.totalorder %s6317_s16, 0  ;;  %s4021_s23 = scalar_lea.sflag [#allocation4], %s4020_s20 }
 0x784   : > { %p4540_p8 = pnand %p4547_p4, %p6318_p7 }
 0x786   : > { %4726 = dma.done.wait (!%p4540_p8), %s4021_s23, 1024  }
 0x787   : > { %4728 = vsyncadd (!%p4540_p8), %s4021_s23, 4294966272  ;;  %s6319_s28 = sld [smem:[#allocation14_spill]]  ;;  %s6320_s27 = sld [smem:[#allocation12_spill]] }
 0x788   : > { %s6321_s18 = sld [smem:[#allocation15_spill]]  ;;  %s6322_s25 = smov %s4735_s26 }
 0x78d   : > { %p25_p11 = scmp.ge.s32.totalorder %s6319_s28, 4   ;;  %s6323_s26 = smov %s6320_s27 }
 0x78e   : > { %s6324_s27 = smov %s6321_s18 }
 0x78f   :  { %27 = sbr.rel (!%p25_p11) target bundleno = 7 (0x7), region = 139 }
 0x796   :  { %4026 = vsyncpa [#allocation3], 1 }
 0x797   :  { %4028 = vsyncpa [#allocation3 + $0x1], 1 }
 0x798   :  { %4029 = vsyncpa [#allocation6], 1 }
 0x799   :  { %4030 = vsyncpa [#allocation4], 1 }
 0x79a   :  { %4032 = vsyncpa [#allocation4 + $0x1], 1 }

</bundles_post_ra>
